<compile_context>
chip_gen: v7x
topology: tpu7x:2x2x1
jax: 0.10.0
libtpu: 0.0.40
codegen_flags: <defaults>
</compile_context>

<pallas_src>
import math

import numpy as np
import jax
import jax.numpy as jnp
from jax.experimental import pallas as pl
from jax.experimental.pallas import tpu as pltpu

# ----- small, Leaf-consistent configuration ----------------------------------
BATCH = 2
T_IN = 256             # audio samples
N_FILTERS = 16         # mel filters (PCEN channels); Gabor conv has 2*N_FILTERS real channels
SR = 4000
WINDOW_LEN_MS = 10.0
WINDOW_STRIDE_MS = 4.0
MIN_FREQ = 60.0
MAX_FREQ = 1900.0
N_FFT = 512

KSIZE = int(SR * WINDOW_LEN_MS // 1000 + 1)     # 41  (Gabor + low-pass kernel size)
STRIDE = int(SR * WINDOW_STRIDE_MS // 1000)     # 16  (low-pass stride)
T_OUT = -(-T_IN // STRIDE)                      # 16  ("SAME" strided output length)

CONV_PAD = (KSIZE - 1) // 2                                   # 20 (stride-1 'same')
LP_PAD_TOTAL = max((T_OUT - 1) * STRIDE + KSIZE - T_IN, 0)    # 25
LP_PAD_L = LP_PAD_TOTAL // 2                                  # 12
FEATPAD_LEN = LP_PAD_L + T_IN + (LP_PAD_TOTAL - LP_PAD_L)     # 281

PCEN_ALPHA = 0.96
PCEN_SMOOTH = 0.04
PCEN_DELTA = 2.0
PCEN_ROOT = 2.0
PCEN_FLOOR = 1e-12


# =============================================================================
# Deterministic parameter construction (plain numpy glue; mirrors __init__)
# =============================================================================
def _melscale_fbanks(n_freqs, f_min, f_max, n_mels, sample_rate):
    """numpy port of torchaudio.functional.melscale_fbanks (HTK, norm=None)."""
    all_freqs = np.linspace(0.0, sample_rate // 2, n_freqs)
    hz2mel = lambda f: 2595.0 * np.log10(1.0 + f / 700.0)
    mel2hz = lambda m: 700.0 * (10.0 ** (m / 2595.0) - 1.0)
    m_pts = np.linspace(hz2mel(f_min), hz2mel(f_max), n_mels + 2)
    f_pts = mel2hz(m_pts)
    f_diff = f_pts[1:] - f_pts[:-1]
    slopes = f_pts[None, :] - all_freqs[:, None]
    down = (-1.0 * slopes[:, :-2]) / f_diff[:-1]
    up = slopes[:, 2:] / f_diff[1:]
    return np.maximum(0.0, np.minimum(down, up))      # (n_freqs, n_mels)


def _gabor_params():
    """GaborConv1d._init_weights followed by _constraint (deterministic)."""
    coeff = math.sqrt(2.0 * math.log(2.0)) * N_FFT
    mel = _melscale_fbanks(N_FFT // 2 + 1, MIN_FREQ, MAX_FREQ, N_FILTERS, SR).T   # (F, n_freqs)
    sqrt_f = np.sqrt(mel)
    center = np.argmax(sqrt_f, axis=1)
    peaks = np.max(sqrt_f, axis=1, keepdims=True)
    fwhms = np.sum((sqrt_f >= peaks / 2.0).astype(np.float64), axis=1)
    mu = center * 2.0 * np.pi / N_FFT
    sig = coeff / (np.pi * fwhms)
    params = np.stack([mu, sig], axis=1)
    # _constraint: sort by mu, clamp mu and sigma
    params = params[np.argsort(params[:, 0])]
    sigma_lower = 4.0 * math.sqrt(2.0 * math.log(2.0)) / math.pi
    sigma_upper = KSIZE * math.sqrt(2.0 * math.log(2.0)) / math.pi
    mu_c = np.clip(params[:, 0], 0.0, math.pi)
    sig_c = np.clip(params[:, 1], sigma_lower, sigma_upper)
    return mu_c, sig_c


def _gabor_filters():
    """GaborConv1d.gabor_filters -> real / imag parts, each shape (F, K)."""
    mu, sig = _gabor_params()
    t = np.arange(-(KSIZE // 2), (KSIZE + 1) // 2, dtype=np.float64)
    denom = 1.0 / (np.sqrt(2.0 * np.pi) * sig)                            # (F,)
    gauss = np.exp(-(t[None, :] ** 2) / (2.0 * sig[:, None] ** 2))        # (F, K)
    w_r = denom[:, None] * np.cos(mu[:, None] * t[None, :]) * gauss
    w_i = denom[:, None] * np.sin(mu[:, None] * t[None, :]) * gauss
    return w_r.astype(np.float32), w_i.astype(np.float32)


def _gaussian_lowpass_params():
    # TODO(synk): GaussianLowPass class body was not provided; this follows the
    # canonical LEAF implementation (per-channel sigma weight init 0.4, zero bias,
    # unnormalized gaussian window of length kernel_size, TF-style SAME padding).
    w = np.full((N_FILTERS,), 0.4)
    sigma = np.clip(w, 2.0 / KSIZE, 0.5) * KSIZE
    t = np.arange(KSIZE, dtype=np.float64)
    num = t - 0.5 * (KSIZE - 1)
    gk = np.exp(-0.5 * (num[None, :] / sigma[:, None]) ** 2)   # (F, K) channel-major
    bias = np.zeros((N_FILTERS,))
    return gk.astype(np.float32), bias.astype(np.float32)


# =============================================================================
# Fused Pallas kernel: Gabor conv + |.|^2 + Gaussian low-pass + PCEN
# =============================================================================
def _leaf_kernel(x_ref, w_ref, p_ref, out_ref,
                 xbuf, patch, featpad, pooled, msmooth):
    b_sz = x_ref.shape[0]
    t_in = x_ref.shape[2]
    f = out_ref.shape[1]
    t_out = out_ref.shape[2]
    k = w_ref.shape[1]

    # ---------- Gabor conv (stride 1, 'same') fused with SquaredModulus -------
    # zero-padded audio (SAME padding done in-kernel, no XLA pad op)
    xbuf[...] = jnp.zeros_like(xbuf)
    xbuf[:, CONV_PAD:CONV_PAD + t_in] = x_ref[:, 0, :]
    xv = xbuf[...]                                            # (B, T + K - 1)

    # im2col: patch[kk, b*T + t] = xpad[b, t + kk]   (batch folded into lanes)
    for kk in range(k):
        sl = xv[:, kk:kk + t_in]                              # (B, T)
        for b in range(b_sz):
            patch[kk:kk + 1, b * t_in:(b + 1) * t_in] = sl[b:b + 1, :]

    # one MXU matmul for real + imag channels of both batches
    res = jnp.dot(w_ref[0:2 * f, :], patch[...],
                  preferred_element_type=jnp.float32)          # (2F, B*T)
    # SquaredModulus: 2 * avgpool_2(conv_out**2) over channel pairs == re^2 + im^2
    feat = res[0:f, :] * res[0:f, :] + res[f:2 * f, :] * res[f:2 * f, :]   # (F, B*T)

    # ---------- channel-major padded feature map, batches stacked on sublanes -
    featpad[...] = jnp.zeros_like(featpad)
    for b in range(b_sz):
        featpad[b * f:(b + 1) * f, LP_PAD_L:LP_PAD_L + t_in] = \
            feat[:, b * t_in:(b + 1) * t_in]
    fp = featpad[...]                                          # (B*F, FEATPAD_LEN)

    # ---------- Gaussian low-pass (depthwise, stride) + bias + clamp(1e-5) -----
    gk2 = jnp.concatenate([w_ref[2 * f:3 * f, :]] * b_sz, axis=0)    # (B*F, K)
    bias2 = jnp.concatenate([p_ref[:, 0:1]] * b_sz, axis=0)          # (B*F, 1)
    for j in range(t_out):
        win = fp[:, j * STRIDE:j * STRIDE + k]                       # (B*F, K) slab
        pooled[:, j:j + 1] = jnp.sum(win * gk2, axis=1, keepdims=True)
    pooled_all = jnp.maximum(pooled[...] + bias2, 1e-5)              # (B*F, T_OUT)

    # ---------- PCEN ------------------------------------------------------------
    # TODO(synk): PCENLayer class body was not provided; canonical LEAF PCEN used
    # (per-channel alpha/delta/root/smooth, EMA seeded with frame 0).
    alpha2 = jnp.concatenate([p_ref[:, 1:2]] * b_sz, axis=0)         # (B*F, 1)
    delta2 = jnp.concatenate([p_ref[:, 2:3]] * b_sz, axis=0)
    root2 = jnp.concatenate([p_ref[:, 3:4]] * b_sz, axis=0)
    smooth2 = jnp.concatenate([p_ref[:, 4:5]] * b_sz, axis=0)
    r = 1.0 / root2

    # (a) sequential EMA over time (cheap per-column VPU ops, state in VMEM)
    m = pooled_all[:, 0:1]
    msmooth[:, 0:1] = m
    for j in range(1, t_out):
        m = smooth2 * pooled_all[:, j:j + 1] + (1.0 - smooth2) * m
        msmooth[:, j:j + 1] = m
    m_all = msmooth[...]                                             # (B*F, T_OUT)

    # (b) single vectorized compression over the whole slab
    delta_r = jnp.exp(r * jnp.log(delta2))
    smooth_pow = jnp.exp(alpha2 * jnp.log(PCEN_FLOOR + m_all))       # (floor + M)**alpha
    comp = jnp.exp(r * jnp.log(pooled_all / smooth_pow + delta2)) - delta_r

    # ---------- single store of the (B, F, T_OUT) result (normalizer == Identity)
    for b in range(b_sz):
        out_ref[b, :, :] = comp[b * f:(b + 1) * f, :]


# =============================================================================
# Wrapper
# =============================================================================
@jax.jit
def leaf_forward(x, weights, params):
    # x: (B, 1, T) -- PyTorch NCW audio with a single input channel.
    # weights: (3F, K) = [gabor_real (F,K); gabor_imag (F,K); gaussian_lowpass (F,K)]
    # params : (F, 5)  = [bias, pcen_alpha, pcen_delta, pcen_root, pcen_smooth] columns
    b = x.shape[0]
    t_in = x.shape[2]
    f = params.shape[0]
    k = weights.shape[1]
    t_out = -(-t_in // STRIDE)
    return pl.pallas_call(
        _leaf_kernel,
        out_shape=jax.ShapeDtypeStruct((b, f, t_out), jnp.float32),
        scratch_shapes=[
            pltpu.VMEM((b, t_in + k - 1), jnp.float32),      # zero-padded audio
            pltpu.VMEM((k, b * t_in), jnp.float32),          # im2col patch
            pltpu.VMEM((b * f, FEATPAD_LEN), jnp.float32),   # padded feature map
            pltpu.VMEM((b * f, t_out), jnp.float32),         # pooled frames
            pltpu.VMEM((b * f, t_out), jnp.float32),         # PCEN EMA state
        ],
    )(x, weights, params)


if __name__ == "__main__":
    w_r, w_i = _gabor_filters()                       # each (F, K)
    gk, gbias = _gaussian_lowpass_params()            # (F, K), (F,)
    weights = np.concatenate([w_r, w_i, gk], axis=0).astype(np.float32)   # (3F, K)
    params = np.stack([
        gbias,
        np.full((N_FILTERS,), PCEN_ALPHA),
        np.full((N_FILTERS,), PCEN_DELTA),
        np.full((N_FILTERS,), PCEN_ROOT),
        np.full((N_FILTERS,), PCEN_SMOOTH),
    ], axis=1).astype(np.float32)                                         # (F, 5)

    x = jax.random.normal(jax.random.PRNGKey(0), (BATCH, 1, T_IN), dtype=jnp.float32)
    out = leaf_forward(x, jnp.asarray(weights), jnp.asarray(params))
    out = jax.block_until_ready(out)
    assert out.shape == (BATCH, N_FILTERS, T_OUT), out.shape
    assert bool(jnp.all(jnp.isfinite(out)))
    print("KERNEL_OK")
</pallas_src>

<mosaic_0001>
module attributes {stable_mosaic.version = 11 : i64} {
  func.func @_leaf_kernel(%arg0: memref<2x1x256xf32, #tpu.memory_space<vmem>>, %arg1: memref<48x41xf32, #tpu.memory_space<vmem>>, %arg2: memref<16x5xf32, #tpu.memory_space<vmem>>, %arg3: memref<2x16x16xf32, #tpu.memory_space<vmem>>, %arg4: memref<2x296xf32, #tpu.memory_space<vmem>>, %arg5: memref<41x512xf32, #tpu.memory_space<vmem>>, %arg6: memref<32x281xf32, #tpu.memory_space<vmem>>, %arg7: memref<32x16xf32, #tpu.memory_space<vmem>>, %arg8: memref<32x16xf32, #tpu.memory_space<vmem>>) attributes {dimension_semantics = [], scalar_prefetch = 0 : i64, scratch_operands = 5 : i64, tpu.core_type = #tpu.core_type<tc>} {
    %cst = arith.constant 0.000000e+00 : f32
    %0 = vector.broadcast %cst : f32 to vector<2x296xf32>
    %c0 = arith.constant 0 : index
    %c0_0 = arith.constant 0 : index
    %1 = vector.load %arg4[%c0, %c0_0] : memref<2x296xf32, #tpu.memory_space<vmem>>, vector<2x296xf32>
    tpu.vector_store %arg4[%c0, %c0_0], %0 {strides = array<i32>} : memref<2x296xf32, #tpu.memory_space<vmem>>, vector<2x296xf32>,
    %c0_1 = arith.constant 0 : index
    %c0_2 = arith.constant 0 : index
    %c0_3 = arith.constant 0 : index
    %2 = vector.load %arg0[%c0_1, %c0_2, %c0_3] : memref<2x1x256xf32, #tpu.memory_space<vmem>>, vector<2x1x256xf32>
    %3 = vector.shape_cast %2 : vector<2x1x256xf32> to vector<2x256xf32>
    %c0_4 = arith.constant 0 : index
    %c20 = arith.constant 20 : index
    %4 = vector.load %arg4[%c0_4, %c20] : memref<2x296xf32, #tpu.memory_space<vmem>>, vector<2x256xf32>
    tpu.vector_store %arg4[%c0_4, %c20], %3 {strides = array<i32>} : memref<2x296xf32, #tpu.memory_space<vmem>>, vector<2x256xf32>,
    %c0_5 = arith.constant 0 : index
    %c0_6 = arith.constant 0 : index
    %5 = vector.load %arg4[%c0_5, %c0_6] : memref<2x296xf32, #tpu.memory_space<vmem>>, vector<2x296xf32>
    %6 = vector.extract_strided_slice %5 {offsets = [0, 0], sizes = [2, 256], strides = [1, 1]} : vector<2x296xf32> to vector<2x256xf32>
    %7 = vector.extract_strided_slice %6 {offsets = [0, 0], sizes = [1, 256], strides = [1, 1]} : vector<2x256xf32> to vector<1x256xf32>
    %c0_7 = arith.constant 0 : index
    %c0_8 = arith.constant 0 : index
    %8 = vector.load %arg5[%c0_7, %c0_8] : memref<41x512xf32, #tpu.memory_space<vmem>>, vector<1x256xf32>
    tpu.vector_store %arg5[%c0_7, %c0_8], %7 {strides = array<i32>} : memref<41x512xf32, #tpu.memory_space<vmem>>, vector<1x256xf32>,
    %9 = vector.extract_strided_slice %6 {offsets = [1, 0], sizes = [1, 256], strides = [1, 1]} : vector<2x256xf32> to vector<1x256xf32>
    %c0_9 = arith.constant 0 : index
    %c256 = arith.constant 256 : index
    %10 = vector.load %arg5[%c0_9, %c256] : memref<41x512xf32, #tpu.memory_space<vmem>>, vector<1x256xf32>
    tpu.vector_store %arg5[%c0_9, %c256], %9 {strides = array<i32>} : memref<41x512xf32, #tpu.memory_space<vmem>>, vector<1x256xf32>,
    %11 = vector.extract_strided_slice %5 {offsets = [0, 1], sizes = [2, 256], strides = [1, 1]} : vector<2x296xf32> to vector<2x256xf32>
    %12 = vector.extract_strided_slice %11 {offsets = [0, 0], sizes = [1, 256], strides = [1, 1]} : vector<2x256xf32> to vector<1x256xf32>
    %c1 = arith.constant 1 : index
    %c0_10 = arith.constant 0 : index
    %13 = vector.load %arg5[%c1, %c0_10] : memref<41x512xf32, #tpu.memory_space<vmem>>, vector<1x256xf32>
    tpu.vector_store %arg5[%c1, %c0_10], %12 {strides = array<i32>} : memref<41x512xf32, #tpu.memory_space<vmem>>, vector<1x256xf32>,
    %14 = vector.extract_strided_slice %11 {offsets = [1, 0], sizes = [1, 256], strides = [1, 1]} : vector<2x256xf32> to vector<1x256xf32>
    %c1_11 = arith.constant 1 : index
    %c256_12 = arith.constant 256 : index
    %15 = vector.load %arg5[%c1_11, %c256_12] : memref<41x512xf32, #tpu.memory_space<vmem>>, vector<1x256xf32>
    tpu.vector_store %arg5[%c1_11, %c256_12], %14 {strides = array<i32>} : memref<41x512xf32, #tpu.memory_space<vmem>>, vector<1x256xf32>,
    %16 = vector.extract_strided_slice %5 {offsets = [0, 2], sizes = [2, 256], strides = [1, 1]} : vector<2x296xf32> to vector<2x256xf32>
    %17 = vector.extract_strided_slice %16 {offsets = [0, 0], sizes = [1, 256], strides = [1, 1]} : vector<2x256xf32> to vector<1x256xf32>
    %c2 = arith.constant 2 : index
    %c0_13 = arith.constant 0 : index
    %18 = vector.load %arg5[%c2, %c0_13] : memref<41x512xf32, #tpu.memory_space<vmem>>, vector<1x256xf32>
    tpu.vector_store %arg5[%c2, %c0_13], %17 {strides = array<i32>} : memref<41x512xf32, #tpu.memory_space<vmem>>, vector<1x256xf32>,
    %19 = vector.extract_strided_slice %16 {offsets = [1, 0], sizes = [1, 256], strides = [1, 1]} : vector<2x256xf32> to vector<1x256xf32>
    %c2_14 = arith.constant 2 : index
    %c256_15 = arith.constant 256 : index
    %20 = vector.load %arg5[%c2_14, %c256_15] : memref<41x512xf32, #tpu.memory_space<vmem>>, vector<1x256xf32>
    tpu.vector_store %arg5[%c2_14, %c256_15], %19 {strides = array<i32>} : memref<41x512xf32, #tpu.memory_space<vmem>>, vector<1x256xf32>,
    %21 = vector.extract_strided_slice %5 {offsets = [0, 3], sizes = [2, 256], strides = [1, 1]} : vector<2x296xf32> to vector<2x256xf32>
    %22 = vector.extract_strided_slice %21 {offsets = [0, 0], sizes = [1, 256], strides = [1, 1]} : vector<2x256xf32> to vector<1x256xf32>
    %c3 = arith.constant 3 : index
    %c0_16 = arith.constant 0 : index
    %23 = vector.load %arg5[%c3, %c0_16] : memref<41x512xf32, #tpu.memory_space<vmem>>, vector<1x256xf32>
    tpu.vector_store %arg5[%c3, %c0_16], %22 {strides = array<i32>} : memref<41x512xf32, #tpu.memory_space<vmem>>, vector<1x256xf32>,
    %24 = vector.extract_strided_slice %21 {offsets = [1, 0], sizes = [1, 256], strides = [1, 1]} : vector<2x256xf32> to vector<1x256xf32>
    %c3_17 = arith.constant 3 : index
    %c256_18 = arith.constant 256 : index
    %25 = vector.load %arg5[%c3_17, %c256_18] : memref<41x512xf32, #tpu.memory_space<vmem>>, vector<1x256xf32>
    tpu.vector_store %arg5[%c3_17, %c256_18], %24 {strides = array<i32>} : memref<41x512xf32, #tpu.memory_space<vmem>>, vector<1x256xf32>,
    %26 = vector.extract_strided_slice %5 {offsets = [0, 4], sizes = [2, 256], strides = [1, 1]} : vector<2x296xf32> to vector<2x256xf32>
    %27 = vector.extract_strided_slice %26 {offsets = [0, 0], sizes = [1, 256], strides = [1, 1]} : vector<2x256xf32> to vector<1x256xf32>
    %c4 = arith.constant 4 : index
    %c0_19 = arith.constant 0 : index
    %28 = vector.load %arg5[%c4, %c0_19] : memref<41x512xf32, #tpu.memory_space<vmem>>, vector<1x256xf32>
    tpu.vector_store %arg5[%c4, %c0_19], %27 {strides = array<i32>} : memref<41x512xf32, #tpu.memory_space<vmem>>, vector<1x256xf32>,
    %29 = vector.extract_strided_slice %26 {offsets = [1, 0], sizes = [1, 256], strides = [1, 1]} : vector<2x256xf32> to vector<1x256xf32>
    %c4_20 = arith.constant 4 : index
    %c256_21 = arith.constant 256 : index
    %30 = vector.load %arg5[%c4_20, %c256_21] : memref<41x512xf32, #tpu.memory_space<vmem>>, vector<1x256xf32>
    tpu.vector_store %arg5[%c4_20, %c256_21], %29 {strides = array<i32>} : memref<41x512xf32, #tpu.memory_space<vmem>>, vector<1x256xf32>,
    %31 = vector.extract_strided_slice %5 {offsets = [0, 5], sizes = [2, 256], strides = [1, 1]} : vector<2x296xf32> to vector<2x256xf32>
    %32 = vector.extract_strided_slice %31 {offsets = [0, 0], sizes = [1, 256], strides = [1, 1]} : vector<2x256xf32> to vector<1x256xf32>
    %c5 = arith.constant 5 : index
    %c0_22 = arith.constant 0 : index
    %33 = vector.load %arg5[%c5, %c0_22] : memref<41x512xf32, #tpu.memory_space<vmem>>, vector<1x256xf32>
    tpu.vector_store %arg5[%c5, %c0_22], %32 {strides = array<i32>} : memref<41x512xf32, #tpu.memory_space<vmem>>, vector<1x256xf32>,
    %34 = vector.extract_strided_slice %31 {offsets = [1, 0], sizes = [1, 256], strides = [1, 1]} : vector<2x256xf32> to vector<1x256xf32>
    %c5_23 = arith.constant 5 : index
    %c256_24 = arith.constant 256 : index
    %35 = vector.load %arg5[%c5_23, %c256_24] : memref<41x512xf32, #tpu.memory_space<vmem>>, vector<1x256xf32>
    tpu.vector_store %arg5[%c5_23, %c256_24], %34 {strides = array<i32>} : memref<41x512xf32, #tpu.memory_space<vmem>>, vector<1x256xf32>,
    %36 = vector.extract_strided_slice %5 {offsets = [0, 6], sizes = [2, 256], strides = [1, 1]} : vector<2x296xf32> to vector<2x256xf32>
    %37 = vector.extract_strided_slice %36 {offsets = [0, 0], sizes = [1, 256], strides = [1, 1]} : vector<2x256xf32> to vector<1x256xf32>
    %c6 = arith.constant 6 : index
    %c0_25 = arith.constant 0 : index
    %38 = vector.load %arg5[%c6, %c0_25] : memref<41x512xf32, #tpu.memory_space<vmem>>, vector<1x256xf32>
    tpu.vector_store %arg5[%c6, %c0_25], %37 {strides = array<i32>} : memref<41x512xf32, #tpu.memory_space<vmem>>, vector<1x256xf32>,
    %39 = vector.extract_strided_slice %36 {offsets = [1, 0], sizes = [1, 256], strides = [1, 1]} : vector<2x256xf32> to vector<1x256xf32>
    %c6_26 = arith.constant 6 : index
    %c256_27 = arith.constant 256 : index
    %40 = vector.load %arg5[%c6_26, %c256_27] : memref<41x512xf32, #tpu.memory_space<vmem>>, vector<1x256xf32>
    tpu.vector_store %arg5[%c6_26, %c256_27], %39 {strides = array<i32>} : memref<41x512xf32, #tpu.memory_space<vmem>>, vector<1x256xf32>,
    %41 = vector.extract_strided_slice %5 {offsets = [0, 7], sizes = [2, 256], strides = [1, 1]} : vector<2x296xf32> to vector<2x256xf32>
    %42 = vector.extract_strided_slice %41 {offsets = [0, 0], sizes = [1, 256], strides = [1, 1]} : vector<2x256xf32> to vector<1x256xf32>
    %c7 = arith.constant 7 : index
    %c0_28 = arith.constant 0 : index
    %43 = vector.load %arg5[%c7, %c0_28] : memref<41x512xf32, #tpu.memory_space<vmem>>, vector<1x256xf32>
    tpu.vector_store %arg5[%c7, %c0_28], %42 {strides = array<i32>} : memref<41x512xf32, #tpu.memory_space<vmem>>, vector<1x256xf32>,
    %44 = vector.extract_strided_slice %41 {offsets = [1, 0], sizes = [1, 256], strides = [1, 1]} : vector<2x256xf32> to vector<1x256xf32>
    %c7_29 = arith.constant 7 : index
    %c256_30 = arith.constant 256 : index
    %45 = vector.load %arg5[%c7_29, %c256_30] : memref<41x512xf32, #tpu.memory_space<vmem>>, vector<1x256xf32>
    tpu.vector_store %arg5[%c7_29, %c256_30], %44 {strides = array<i32>} : memref<41x512xf32, #tpu.memory_space<vmem>>, vector<1x256xf32>,
    %46 = vector.extract_strided_slice %5 {offsets = [0, 8], sizes = [2, 256], strides = [1, 1]} : vector<2x296xf32> to vector<2x256xf32>
    %47 = vector.extract_strided_slice %46 {offsets = [0, 0], sizes = [1, 256], strides = [1, 1]} : vector<2x256xf32> to vector<1x256xf32>
    %c8 = arith.constant 8 : index
    %c0_31 = arith.constant 0 : index
    %48 = vector.load %arg5[%c8, %c0_31] : memref<41x512xf32, #tpu.memory_space<vmem>>, vector<1x256xf32>
    tpu.vector_store %arg5[%c8, %c0_31], %47 {strides = array<i32>} : memref<41x512xf32, #tpu.memory_space<vmem>>, vector<1x256xf32>,
    %49 = vector.extract_strided_slice %46 {offsets = [1, 0], sizes = [1, 256], strides = [1, 1]} : vector<2x256xf32> to vector<1x256xf32>
    %c8_32 = arith.constant 8 : index
    %c256_33 = arith.constant 256 : index
    %50 = vector.load %arg5[%c8_32, %c256_33] : memref<41x512xf32, #tpu.memory_space<vmem>>, vector<1x256xf32>
    tpu.vector_store %arg5[%c8_32, %c256_33], %49 {strides = array<i32>} : memref<41x512xf32, #tpu.memory_space<vmem>>, vector<1x256xf32>,
    %51 = vector.extract_strided_slice %5 {offsets = [0, 9], sizes = [2, 256], strides = [1, 1]} : vector<2x296xf32> to vector<2x256xf32>
    %52 = vector.extract_strided_slice %51 {offsets = [0, 0], sizes = [1, 256], strides = [1, 1]} : vector<2x256xf32> to vector<1x256xf32>
    %c9 = arith.constant 9 : index
    %c0_34 = arith.constant 0 : index
    %53 = vector.load %arg5[%c9, %c0_34] : memref<41x512xf32, #tpu.memory_space<vmem>>, vector<1x256xf32>
    tpu.vector_store %arg5[%c9, %c0_34], %52 {strides = array<i32>} : memref<41x512xf32, #tpu.memory_space<vmem>>, vector<1x256xf32>,
    %54 = vector.extract_strided_slice %51 {offsets = [1, 0], sizes = [1, 256], strides = [1, 1]} : vector<2x256xf32> to vector<1x256xf32>
    %c9_35 = arith.constant 9 : index
    %c256_36 = arith.constant 256 : index
    %55 = vector.load %arg5[%c9_35, %c256_36] : memref<41x512xf32, #tpu.memory_space<vmem>>, vector<1x256xf32>
    tpu.vector_store %arg5[%c9_35, %c256_36], %54 {strides = array<i32>} : memref<41x512xf32, #tpu.memory_space<vmem>>, vector<1x256xf32>,
    %56 = vector.extract_strided_slice %5 {offsets = [0, 10], sizes = [2, 256], strides = [1, 1]} : vector<2x296xf32> to vector<2x256xf32>
    %57 = vector.extract_strided_slice %56 {offsets = [0, 0], sizes = [1, 256], strides = [1, 1]} : vector<2x256xf32> to vector<1x256xf32>
    %c10 = arith.constant 10 : index
    %c0_37 = arith.constant 0 : index
    %58 = vector.load %arg5[%c10, %c0_37] : memref<41x512xf32, #tpu.memory_space<vmem>>, vector<1x256xf32>
    tpu.vector_store %arg5[%c10, %c0_37], %57 {strides = array<i32>} : memref<41x512xf32, #tpu.memory_space<vmem>>, vector<1x256xf32>,
    %59 = vector.extract_strided_slice %56 {offsets = [1, 0], sizes = [1, 256], strides = [1, 1]} : vector<2x256xf32> to vector<1x256xf32>
    %c10_38 = arith.constant 10 : index
    %c256_39 = arith.constant 256 : index
    %60 = vector.load %arg5[%c10_38, %c256_39] : memref<41x512xf32, #tpu.memory_space<vmem>>, vector<1x256xf32>
    tpu.vector_store %arg5[%c10_38, %c256_39], %59 {strides = array<i32>} : memref<41x512xf32, #tpu.memory_space<vmem>>, vector<1x256xf32>,
    %61 = vector.extract_strided_slice %5 {offsets = [0, 11], sizes = [2, 256], strides = [1, 1]} : vector<2x296xf32> to vector<2x256xf32>
    %62 = vector.extract_strided_slice %61 {offsets = [0, 0], sizes = [1, 256], strides = [1, 1]} : vector<2x256xf32> to vector<1x256xf32>
    %c11 = arith.constant 11 : index
    %c0_40 = arith.constant 0 : index
    %63 = vector.load %arg5[%c11, %c0_40] : memref<41x512xf32, #tpu.memory_space<vmem>>, vector<1x256xf32>
    tpu.vector_store %arg5[%c11, %c0_40], %62 {strides = array<i32>} : memref<41x512xf32, #tpu.memory_space<vmem>>, vector<1x256xf32>,
    %64 = vector.extract_strided_slice %61 {offsets = [1, 0], sizes = [1, 256], strides = [1, 1]} : vector<2x256xf32> to vector<1x256xf32>
    %c11_41 = arith.constant 11 : index
    %c256_42 = arith.constant 256 : index
    %65 = vector.load %arg5[%c11_41, %c256_42] : memref<41x512xf32, #tpu.memory_space<vmem>>, vector<1x256xf32>
    tpu.vector_store %arg5[%c11_41, %c256_42], %64 {strides = array<i32>} : memref<41x512xf32, #tpu.memory_space<vmem>>, vector<1x256xf32>,
    %66 = vector.extract_strided_slice %5 {offsets = [0, 12], sizes = [2, 256], strides = [1, 1]} : vector<2x296xf32> to vector<2x256xf32>
    %67 = vector.extract_strided_slice %66 {offsets = [0, 0], sizes = [1, 256], strides = [1, 1]} : vector<2x256xf32> to vector<1x256xf32>
    %c12 = arith.constant 12 : index
    %c0_43 = arith.constant 0 : index
    %68 = vector.load %arg5[%c12, %c0_43] : memref<41x512xf32, #tpu.memory_space<vmem>>, vector<1x256xf32>
    tpu.vector_store %arg5[%c12, %c0_43], %67 {strides = array<i32>} : memref<41x512xf32, #tpu.memory_space<vmem>>, vector<1x256xf32>,
    %69 = vector.extract_strided_slice %66 {offsets = [1, 0], sizes = [1, 256], strides = [1, 1]} : vector<2x256xf32> to vector<1x256xf32>
    %c12_44 = arith.constant 12 : index
    %c256_45 = arith.constant 256 : index
    %70 = vector.load %arg5[%c12_44, %c256_45] : memref<41x512xf32, #tpu.memory_space<vmem>>, vector<1x256xf32>
    tpu.vector_store %arg5[%c12_44, %c256_45], %69 {strides = array<i32>} : memref<41x512xf32, #tpu.memory_space<vmem>>, vector<1x256xf32>,
    %71 = vector.extract_strided_slice %5 {offsets = [0, 13], sizes = [2, 256], strides = [1, 1]} : vector<2x296xf32> to vector<2x256xf32>
    %72 = vector.extract_strided_slice %71 {offsets = [0, 0], sizes = [1, 256], strides = [1, 1]} : vector<2x256xf32> to vector<1x256xf32>
    %c13 = arith.constant 13 : index
    %c0_46 = arith.constant 0 : index
    %73 = vector.load %arg5[%c13, %c0_46] : memref<41x512xf32, #tpu.memory_space<vmem>>, vector<1x256xf32>
    tpu.vector_store %arg5[%c13, %c0_46], %72 {strides = array<i32>} : memref<41x512xf32, #tpu.memory_space<vmem>>, vector<1x256xf32>,
    %74 = vector.extract_strided_slice %71 {offsets = [1, 0], sizes = [1, 256], strides = [1, 1]} : vector<2x256xf32> to vector<1x256xf32>
    %c13_47 = arith.constant 13 : index
    %c256_48 = arith.constant 256 : index
    %75 = vector.load %arg5[%c13_47, %c256_48] : memref<41x512xf32, #tpu.memory_space<vmem>>, vector<1x256xf32>
    tpu.vector_store %arg5[%c13_47, %c256_48], %74 {strides = array<i32>} : memref<41x512xf32, #tpu.memory_space<vmem>>, vector<1x256xf32>,
    %76 = vector.extract_strided_slice %5 {offsets = [0, 14], sizes = [2, 256], strides = [1, 1]} : vector<2x296xf32> to vector<2x256xf32>
    %77 = vector.extract_strided_slice %76 {offsets = [0, 0], sizes = [1, 256], strides = [1, 1]} : vector<2x256xf32> to vector<1x256xf32>
    %c14 = arith.constant 14 : index
    %c0_49 = arith.constant 0 : index
    %78 = vector.load %arg5[%c14, %c0_49] : memref<41x512xf32, #tpu.memory_space<vmem>>, vector<1x256xf32>
    tpu.vector_store %arg5[%c14, %c0_49], %77 {strides = array<i32>} : memref<41x512xf32, #tpu.memory_space<vmem>>, vector<1x256xf32>,
    %79 = vector.extract_strided_slice %76 {offsets = [1, 0], sizes = [1, 256], strides = [1, 1]} : vector<2x256xf32> to vector<1x256xf32>
    %c14_50 = arith.constant 14 : index
    %c256_51 = arith.constant 256 : index
    %80 = vector.load %arg5[%c14_50, %c256_51] : memref<41x512xf32, #tpu.memory_space<vmem>>, vector<1x256xf32>
    tpu.vector_store %arg5[%c14_50, %c256_51], %79 {strides = array<i32>} : memref<41x512xf32, #tpu.memory_space<vmem>>, vector<1x256xf32>,
    %81 = vector.extract_strided_slice %5 {offsets = [0, 15], sizes = [2, 256], strides = [1, 1]} : vector<2x296xf32> to vector<2x256xf32>
    %82 = vector.extract_strided_slice %81 {offsets = [0, 0], sizes = [1, 256], strides = [1, 1]} : vector<2x256xf32> to vector<1x256xf32>
    %c15 = arith.constant 15 : index
    %c0_52 = arith.constant 0 : index
    %83 = vector.load %arg5[%c15, %c0_52] : memref<41x512xf32, #tpu.memory_space<vmem>>, vector<1x256xf32>
    tpu.vector_store %arg5[%c15, %c0_52], %82 {strides = array<i32>} : memref<41x512xf32, #tpu.memory_space<vmem>>, vector<1x256xf32>,
    %84 = vector.extract_strided_slice %81 {offsets = [1, 0], sizes = [1, 256], strides = [1, 1]} : vector<2x256xf32> to vector<1x256xf32>
    %c15_53 = arith.constant 15 : index
    %c256_54 = arith.constant 256 : index
    %85 = vector.load %arg5[%c15_53, %c256_54] : memref<41x512xf32, #tpu.memory_space<vmem>>, vector<1x256xf32>
    tpu.vector_store %arg5[%c15_53, %c256_54], %84 {strides = array<i32>} : memref<41x512xf32, #tpu.memory_space<vmem>>, vector<1x256xf32>,
    %86 = vector.extract_strided_slice %5 {offsets = [0, 16], sizes = [2, 256], strides = [1, 1]} : vector<2x296xf32> to vector<2x256xf32>
    %87 = vector.extract_strided_slice %86 {offsets = [0, 0], sizes = [1, 256], strides = [1, 1]} : vector<2x256xf32> to vector<1x256xf32>
    %c16 = arith.constant 16 : index
    %c0_55 = arith.constant 0 : index
    %88 = vector.load %arg5[%c16, %c0_55] : memref<41x512xf32, #tpu.memory_space<vmem>>, vector<1x256xf32>
    tpu.vector_store %arg5[%c16, %c0_55], %87 {strides = array<i32>} : memref<41x512xf32, #tpu.memory_space<vmem>>, vector<1x256xf32>,
    %89 = vector.extract_strided_slice %86 {offsets = [1, 0], sizes = [1, 256], strides = [1, 1]} : vector<2x256xf32> to vector<1x256xf32>
    %c16_56 = arith.constant 16 : index
    %c256_57 = arith.constant 256 : index
    %90 = vector.load %arg5[%c16_56, %c256_57] : memref<41x512xf32, #tpu.memory_space<vmem>>, vector<1x256xf32>
    tpu.vector_store %arg5[%c16_56, %c256_57], %89 {strides = array<i32>} : memref<41x512xf32, #tpu.memory_space<vmem>>, vector<1x256xf32>,
    %91 = vector.extract_strided_slice %5 {offsets = [0, 17], sizes = [2, 256], strides = [1, 1]} : vector<2x296xf32> to vector<2x256xf32>
    %92 = vector.extract_strided_slice %91 {offsets = [0, 0], sizes = [1, 256], strides = [1, 1]} : vector<2x256xf32> to vector<1x256xf32>
    %c17 = arith.constant 17 : index
    %c0_58 = arith.constant 0 : index
    %93 = vector.load %arg5[%c17, %c0_58] : memref<41x512xf32, #tpu.memory_space<vmem>>, vector<1x256xf32>
    tpu.vector_store %arg5[%c17, %c0_58], %92 {strides = array<i32>} : memref<41x512xf32, #tpu.memory_space<vmem>>, vector<1x256xf32>,
    %94 = vector.extract_strided_slice %91 {offsets = [1, 0], sizes = [1, 256], strides = [1, 1]} : vector<2x256xf32> to vector<1x256xf32>
    %c17_59 = arith.constant 17 : index
    %c256_60 = arith.constant 256 : index
    %95 = vector.load %arg5[%c17_59, %c256_60] : memref<41x512xf32, #tpu.memory_space<vmem>>, vector<1x256xf32>
    tpu.vector_store %arg5[%c17_59, %c256_60], %94 {strides = array<i32>} : memref<41x512xf32, #tpu.memory_space<vmem>>, vector<1x256xf32>,
    %96 = vector.extract_strided_slice %5 {offsets = [0, 18], sizes = [2, 256], strides = [1, 1]} : vector<2x296xf32> to vector<2x256xf32>
    %97 = vector.extract_strided_slice %96 {offsets = [0, 0], sizes = [1, 256], strides = [1, 1]} : vector<2x256xf32> to vector<1x256xf32>
    %c18 = arith.constant 18 : index
    %c0_61 = arith.constant 0 : index
    %98 = vector.load %arg5[%c18, %c0_61] : memref<41x512xf32, #tpu.memory_space<vmem>>, vector<1x256xf32>
    tpu.vector_store %arg5[%c18, %c0_61], %97 {strides = array<i32>} : memref<41x512xf32, #tpu.memory_space<vmem>>, vector<1x256xf32>,
    %99 = vector.extract_strided_slice %96 {offsets = [1, 0], sizes = [1, 256], strides = [1, 1]} : vector<2x256xf32> to vector<1x256xf32>
    %c18_62 = arith.constant 18 : index
    %c256_63 = arith.constant 256 : index
    %100 = vector.load %arg5[%c18_62, %c256_63] : memref<41x512xf32, #tpu.memory_space<vmem>>, vector<1x256xf32>
    tpu.vector_store %arg5[%c18_62, %c256_63], %99 {strides = array<i32>} : memref<41x512xf32, #tpu.memory_space<vmem>>, vector<1x256xf32>,
    %101 = vector.extract_strided_slice %5 {offsets = [0, 19], sizes = [2, 256], strides = [1, 1]} : vector<2x296xf32> to vector<2x256xf32>
    %102 = vector.extract_strided_slice %101 {offsets = [0, 0], sizes = [1, 256], strides = [1, 1]} : vector<2x256xf32> to vector<1x256xf32>
    %c19 = arith.constant 19 : index
    %c0_64 = arith.constant 0 : index
    %103 = vector.load %arg5[%c19, %c0_64] : memref<41x512xf32, #tpu.memory_space<vmem>>, vector<1x256xf32>
    tpu.vector_store %arg5[%c19, %c0_64], %102 {strides = array<i32>} : memref<41x512xf32, #tpu.memory_space<vmem>>, vector<1x256xf32>,
    %104 = vector.extract_strided_slice %101 {offsets = [1, 0], sizes = [1, 256], strides = [1, 1]} : vector<2x256xf32> to vector<1x256xf32>
    %c19_65 = arith.constant 19 : index
    %c256_66 = arith.constant 256 : index
    %105 = vector.load %arg5[%c19_65, %c256_66] : memref<41x512xf32, #tpu.memory_space<vmem>>, vector<1x256xf32>
    tpu.vector_store %arg5[%c19_65, %c256_66], %104 {strides = array<i32>} : memref<41x512xf32, #tpu.memory_space<vmem>>, vector<1x256xf32>,
    %106 = vector.extract_strided_slice %5 {offsets = [0, 20], sizes = [2, 256], strides = [1, 1]} : vector<2x296xf32> to vector<2x256xf32>
    %107 = vector.extract_strided_slice %106 {offsets = [0, 0], sizes = [1, 256], strides = [1, 1]} : vector<2x256xf32> to vector<1x256xf32>
    %c20_67 = arith.constant 20 : index
    %c0_68 = arith.constant 0 : index
    %108 = vector.load %arg5[%c20_67, %c0_68] : memref<41x512xf32, #tpu.memory_space<vmem>>, vector<1x256xf32>
    tpu.vector_store %arg5[%c20_67, %c0_68], %107 {strides = array<i32>} : memref<41x512xf32, #tpu.memory_space<vmem>>, vector<1x256xf32>,
    %109 = vector.extract_strided_slice %106 {offsets = [1, 0], sizes = [1, 256], strides = [1, 1]} : vector<2x256xf32> to vector<1x256xf32>
    %c20_69 = arith.constant 20 : index
    %c256_70 = arith.constant 256 : index
    %110 = vector.load %arg5[%c20_69, %c256_70] : memref<41x512xf32, #tpu.memory_space<vmem>>, vector<1x256xf32>
    tpu.vector_store %arg5[%c20_69, %c256_70], %109 {strides = array<i32>} : memref<41x512xf32, #tpu.memory_space<vmem>>, vector<1x256xf32>,
    %111 = vector.extract_strided_slice %5 {offsets = [0, 21], sizes = [2, 256], strides = [1, 1]} : vector<2x296xf32> to vector<2x256xf32>
    %112 = vector.extract_strided_slice %111 {offsets = [0, 0], sizes = [1, 256], strides = [1, 1]} : vector<2x256xf32> to vector<1x256xf32>
    %c21 = arith.constant 21 : index
    %c0_71 = arith.constant 0 : index
    %113 = vector.load %arg5[%c21, %c0_71] : memref<41x512xf32, #tpu.memory_space<vmem>>, vector<1x256xf32>
    tpu.vector_store %arg5[%c21, %c0_71], %112 {strides = array<i32>} : memref<41x512xf32, #tpu.memory_space<vmem>>, vector<1x256xf32>,
    %114 = vector.extract_strided_slice %111 {offsets = [1, 0], sizes = [1, 256], strides = [1, 1]} : vector<2x256xf32> to vector<1x256xf32>
    %c21_72 = arith.constant 21 : index
    %c256_73 = arith.constant 256 : index
    %115 = vector.load %arg5[%c21_72, %c256_73] : memref<41x512xf32, #tpu.memory_space<vmem>>, vector<1x256xf32>
    tpu.vector_store %arg5[%c21_72, %c256_73], %114 {strides = array<i32>} : memref<41x512xf32, #tpu.memory_space<vmem>>, vector<1x256xf32>,
    %116 = vector.extract_strided_slice %5 {offsets = [0, 22], sizes = [2, 256], strides = [1, 1]} : vector<2x296xf32> to vector<2x256xf32>
    %117 = vector.extract_strided_slice %116 {offsets = [0, 0], sizes = [1, 256], strides = [1, 1]} : vector<2x256xf32> to vector<1x256xf32>
    %c22 = arith.constant 22 : index
    %c0_74 = arith.constant 0 : index
    %118 = vector.load %arg5[%c22, %c0_74] : memref<41x512xf32, #tpu.memory_space<vmem>>, vector<1x256xf32>
    tpu.vector_store %arg5[%c22, %c0_74], %117 {strides = array<i32>} : memref<41x512xf32, #tpu.memory_space<vmem>>, vector<1x256xf32>,
    %119 = vector.extract_strided_slice %116 {offsets = [1, 0], sizes = [1, 256], strides = [1, 1]} : vector<2x256xf32> to vector<1x256xf32>
    %c22_75 = arith.constant 22 : index
    %c256_76 = arith.constant 256 : index
    %120 = vector.load %arg5[%c22_75, %c256_76] : memref<41x512xf32, #tpu.memory_space<vmem>>, vector<1x256xf32>
    tpu.vector_store %arg5[%c22_75, %c256_76], %119 {strides = array<i32>} : memref<41x512xf32, #tpu.memory_space<vmem>>, vector<1x256xf32>,
    %121 = vector.extract_strided_slice %5 {offsets = [0, 23], sizes = [2, 256], strides = [1, 1]} : vector<2x296xf32> to vector<2x256xf32>
    %122 = vector.extract_strided_slice %121 {offsets = [0, 0], sizes = [1, 256], strides = [1, 1]} : vector<2x256xf32> to vector<1x256xf32>
    %c23 = arith.constant 23 : index
    %c0_77 = arith.constant 0 : index
    %123 = vector.load %arg5[%c23, %c0_77] : memref<41x512xf32, #tpu.memory_space<vmem>>, vector<1x256xf32>
    tpu.vector_store %arg5[%c23, %c0_77], %122 {strides = array<i32>} : memref<41x512xf32, #tpu.memory_space<vmem>>, vector<1x256xf32>,
    %124 = vector.extract_strided_slice %121 {offsets = [1, 0], sizes = [1, 256], strides = [1, 1]} : vector<2x256xf32> to vector<1x256xf32>
    %c23_78 = arith.constant 23 : index
    %c256_79 = arith.constant 256 : index
    %125 = vector.load %arg5[%c23_78, %c256_79] : memref<41x512xf32, #tpu.memory_space<vmem>>, vector<1x256xf32>
    tpu.vector_store %arg5[%c23_78, %c256_79], %124 {strides = array<i32>} : memref<41x512xf32, #tpu.memory_space<vmem>>, vector<1x256xf32>,
    %126 = vector.extract_strided_slice %5 {offsets = [0, 24], sizes = [2, 256], strides = [1, 1]} : vector<2x296xf32> to vector<2x256xf32>
    %127 = vector.extract_strided_slice %126 {offsets = [0, 0], sizes = [1, 256], strides = [1, 1]} : vector<2x256xf32> to vector<1x256xf32>
    %c24 = arith.constant 24 : index
    %c0_80 = arith.constant 0 : index
    %128 = vector.load %arg5[%c24, %c0_80] : memref<41x512xf32, #tpu.memory_space<vmem>>, vector<1x256xf32>
    tpu.vector_store %arg5[%c24, %c0_80], %127 {strides = array<i32>} : memref<41x512xf32, #tpu.memory_space<vmem>>, vector<1x256xf32>,
    %129 = vector.extract_strided_slice %126 {offsets = [1, 0], sizes = [1, 256], strides = [1, 1]} : vector<2x256xf32> to vector<1x256xf32>
    %c24_81 = arith.constant 24 : index
    %c256_82 = arith.constant 256 : index
    %130 = vector.load %arg5[%c24_81, %c256_82] : memref<41x512xf32, #tpu.memory_space<vmem>>, vector<1x256xf32>
    tpu.vector_store %arg5[%c24_81, %c256_82], %129 {strides = array<i32>} : memref<41x512xf32, #tpu.memory_space<vmem>>, vector<1x256xf32>,
    %131 = vector.extract_strided_slice %5 {offsets = [0, 25], sizes = [2, 256], strides = [1, 1]} : vector<2x296xf32> to vector<2x256xf32>
    %132 = vector.extract_strided_slice %131 {offsets = [0, 0], sizes = [1, 256], strides = [1, 1]} : vector<2x256xf32> to vector<1x256xf32>
    %c25 = arith.constant 25 : index
    %c0_83 = arith.constant 0 : index
    %133 = vector.load %arg5[%c25, %c0_83] : memref<41x512xf32, #tpu.memory_space<vmem>>, vector<1x256xf32>
    tpu.vector_store %arg5[%c25, %c0_83], %132 {strides = array<i32>} : memref<41x512xf32, #tpu.memory_space<vmem>>, vector<1x256xf32>,
    %134 = vector.extract_strided_slice %131 {offsets = [1, 0], sizes = [1, 256], strides = [1, 1]} : vector<2x256xf32> to vector<1x256xf32>
    %c25_84 = arith.constant 25 : index
    %c256_85 = arith.constant 256 : index
    %135 = vector.load %arg5[%c25_84, %c256_85] : memref<41x512xf32, #tpu.memory_space<vmem>>, vector<1x256xf32>
    tpu.vector_store %arg5[%c25_84, %c256_85], %134 {strides = array<i32>} : memref<41x512xf32, #tpu.memory_space<vmem>>, vector<1x256xf32>,
    %136 = vector.extract_strided_slice %5 {offsets = [0, 26], sizes = [2, 256], strides = [1, 1]} : vector<2x296xf32> to vector<2x256xf32>
    %137 = vector.extract_strided_slice %136 {offsets = [0, 0], sizes = [1, 256], strides = [1, 1]} : vector<2x256xf32> to vector<1x256xf32>
    %c26 = arith.constant 26 : index
    %c0_86 = arith.constant 0 : index
    %138 = vector.load %arg5[%c26, %c0_86] : memref<41x512xf32, #tpu.memory_space<vmem>>, vector<1x256xf32>
    tpu.vector_store %arg5[%c26, %c0_86], %137 {strides = array<i32>} : memref<41x512xf32, #tpu.memory_space<vmem>>, vector<1x256xf32>,
    %139 = vector.extract_strided_slice %136 {offsets = [1, 0], sizes = [1, 256], strides = [1, 1]} : vector<2x256xf32> to vector<1x256xf32>
    %c26_87 = arith.constant 26 : index
    %c256_88 = arith.constant 256 : index
    %140 = vector.load %arg5[%c26_87, %c256_88] : memref<41x512xf32, #tpu.memory_space<vmem>>, vector<1x256xf32>
    tpu.vector_store %arg5[%c26_87, %c256_88], %139 {strides = array<i32>} : memref<41x512xf32, #tpu.memory_space<vmem>>, vector<1x256xf32>,
    %141 = vector.extract_strided_slice %5 {offsets = [0, 27], sizes = [2, 256], strides = [1, 1]} : vector<2x296xf32> to vector<2x256xf32>
    %142 = vector.extract_strided_slice %141 {offsets = [0, 0], sizes = [1, 256], strides = [1, 1]} : vector<2x256xf32> to vector<1x256xf32>
    %c27 = arith.constant 27 : index
    %c0_89 = arith.constant 0 : index
    %143 = vector.load %arg5[%c27, %c0_89] : memref<41x512xf32, #tpu.memory_space<vmem>>, vector<1x256xf32>
    tpu.vector_store %arg5[%c27, %c0_89], %142 {strides = array<i32>} : memref<41x512xf32, #tpu.memory_space<vmem>>, vector<1x256xf32>,
    %144 = vector.extract_strided_slice %141 {offsets = [1, 0], sizes = [1, 256], strides = [1, 1]} : vector<2x256xf32> to vector<1x256xf32>
    %c27_90 = arith.constant 27 : index
    %c256_91 = arith.constant 256 : index
    %145 = vector.load %arg5[%c27_90, %c256_91] : memref<41x512xf32, #tpu.memory_space<vmem>>, vector<1x256xf32>
    tpu.vector_store %arg5[%c27_90, %c256_91], %144 {strides = array<i32>} : memref<41x512xf32, #tpu.memory_space<vmem>>, vector<1x256xf32>,
    %146 = vector.extract_strided_slice %5 {offsets = [0, 28], sizes = [2, 256], strides = [1, 1]} : vector<2x296xf32> to vector<2x256xf32>
    %147 = vector.extract_strided_slice %146 {offsets = [0, 0], sizes = [1, 256], strides = [1, 1]} : vector<2x256xf32> to vector<1x256xf32>
    %c28 = arith.constant 28 : index
    %c0_92 = arith.constant 0 : index
    %148 = vector.load %arg5[%c28, %c0_92] : memref<41x512xf32, #tpu.memory_space<vmem>>, vector<1x256xf32>
    tpu.vector_store %arg5[%c28, %c0_92], %147 {strides = array<i32>} : memref<41x512xf32, #tpu.memory_space<vmem>>, vector<1x256xf32>,
    %149 = vector.extract_strided_slice %146 {offsets = [1, 0], sizes = [1, 256], strides = [1, 1]} : vector<2x256xf32> to vector<1x256xf32>
    %c28_93 = arith.constant 28 : index
    %c256_94 = arith.constant 256 : index
    %150 = vector.load %arg5[%c28_93, %c256_94] : memref<41x512xf32, #tpu.memory_space<vmem>>, vector<1x256xf32>
    tpu.vector_store %arg5[%c28_93, %c256_94], %149 {strides = array<i32>} : memref<41x512xf32, #tpu.memory_space<vmem>>, vector<1x256xf32>,
    %151 = vector.extract_strided_slice %5 {offsets = [0, 29], sizes = [2, 256], strides = [1, 1]} : vector<2x296xf32> to vector<2x256xf32>
    %152 = vector.extract_strided_slice %151 {offsets = [0, 0], sizes = [1, 256], strides = [1, 1]} : vector<2x256xf32> to vector<1x256xf32>
    %c29 = arith.constant 29 : index
    %c0_95 = arith.constant 0 : index
    %153 = vector.load %arg5[%c29, %c0_95] : memref<41x512xf32, #tpu.memory_space<vmem>>, vector<1x256xf32>
    tpu.vector_store %arg5[%c29, %c0_95], %152 {strides = array<i32>} : memref<41x512xf32, #tpu.memory_space<vmem>>, vector<1x256xf32>,
    %154 = vector.extract_strided_slice %151 {offsets = [1, 0], sizes = [1, 256], strides = [1, 1]} : vector<2x256xf32> to vector<1x256xf32>
    %c29_96 = arith.constant 29 : index
    %c256_97 = arith.constant 256 : index
    %155 = vector.load %arg5[%c29_96, %c256_97] : memref<41x512xf32, #tpu.memory_space<vmem>>, vector<1x256xf32>
    tpu.vector_store %arg5[%c29_96, %c256_97], %154 {strides = array<i32>} : memref<41x512xf32, #tpu.memory_space<vmem>>, vector<1x256xf32>,
    %156 = vector.extract_strided_slice %5 {offsets = [0, 30], sizes = [2, 256], strides = [1, 1]} : vector<2x296xf32> to vector<2x256xf32>
    %157 = vector.extract_strided_slice %156 {offsets = [0, 0], sizes = [1, 256], strides = [1, 1]} : vector<2x256xf32> to vector<1x256xf32>
    %c30 = arith.constant 30 : index
    %c0_98 = arith.constant 0 : index
    %158 = vector.load %arg5[%c30, %c0_98] : memref<41x512xf32, #tpu.memory_space<vmem>>, vector<1x256xf32>
    tpu.vector_store %arg5[%c30, %c0_98], %157 {strides = array<i32>} : memref<41x512xf32, #tpu.memory_space<vmem>>, vector<1x256xf32>,
    %159 = vector.extract_strided_slice %156 {offsets = [1, 0], sizes = [1, 256], strides = [1, 1]} : vector<2x256xf32> to vector<1x256xf32>
    %c30_99 = arith.constant 30 : index
    %c256_100 = arith.constant 256 : index
    %160 = vector.load %arg5[%c30_99, %c256_100] : memref<41x512xf32, #tpu.memory_space<vmem>>, vector<1x256xf32>
    tpu.vector_store %arg5[%c30_99, %c256_100], %159 {strides = array<i32>} : memref<41x512xf32, #tpu.memory_space<vmem>>, vector<1x256xf32>,
    %161 = vector.extract_strided_slice %5 {offsets = [0, 31], sizes = [2, 256], strides = [1, 1]} : vector<2x296xf32> to vector<2x256xf32>
    %162 = vector.extract_strided_slice %161 {offsets = [0, 0], sizes = [1, 256], strides = [1, 1]} : vector<2x256xf32> to vector<1x256xf32>
    %c31 = arith.constant 31 : index
    %c0_101 = arith.constant 0 : index
    %163 = vector.load %arg5[%c31, %c0_101] : memref<41x512xf32, #tpu.memory_space<vmem>>, vector<1x256xf32>
    tpu.vector_store %arg5[%c31, %c0_101], %162 {strides = array<i32>} : memref<41x512xf32, #tpu.memory_space<vmem>>, vector<1x256xf32>,
    %164 = vector.extract_strided_slice %161 {offsets = [1, 0], sizes = [1, 256], strides = [1, 1]} : vector<2x256xf32> to vector<1x256xf32>
    %c31_102 = arith.constant 31 : index
    %c256_103 = arith.constant 256 : index
    %165 = vector.load %arg5[%c31_102, %c256_103] : memref<41x512xf32, #tpu.memory_space<vmem>>, vector<1x256xf32>
    tpu.vector_store %arg5[%c31_102, %c256_103], %164 {strides = array<i32>} : memref<41x512xf32, #tpu.memory_space<vmem>>, vector<1x256xf32>,
    %166 = vector.extract_strided_slice %5 {offsets = [0, 32], sizes = [2, 256], strides = [1, 1]} : vector<2x296xf32> to vector<2x256xf32>
    %167 = vector.extract_strided_slice %166 {offsets = [0, 0], sizes = [1, 256], strides = [1, 1]} : vector<2x256xf32> to vector<1x256xf32>
    %c32 = arith.constant 32 : index
    %c0_104 = arith.constant 0 : index
    %168 = vector.load %arg5[%c32, %c0_104] : memref<41x512xf32, #tpu.memory_space<vmem>>, vector<1x256xf32>
    tpu.vector_store %arg5[%c32, %c0_104], %167 {strides = array<i32>} : memref<41x512xf32, #tpu.memory_space<vmem>>, vector<1x256xf32>,
    %169 = vector.extract_strided_slice %166 {offsets = [1, 0], sizes = [1, 256], strides = [1, 1]} : vector<2x256xf32> to vector<1x256xf32>
    %c32_105 = arith.constant 32 : index
    %c256_106 = arith.constant 256 : index
    %170 = vector.load %arg5[%c32_105, %c256_106] : memref<41x512xf32, #tpu.memory_space<vmem>>, vector<1x256xf32>
    tpu.vector_store %arg5[%c32_105, %c256_106], %169 {strides = array<i32>} : memref<41x512xf32, #tpu.memory_space<vmem>>, vector<1x256xf32>,
    %171 = vector.extract_strided_slice %5 {offsets = [0, 33], sizes = [2, 256], strides = [1, 1]} : vector<2x296xf32> to vector<2x256xf32>
    %172 = vector.extract_strided_slice %171 {offsets = [0, 0], sizes = [1, 256], strides = [1, 1]} : vector<2x256xf32> to vector<1x256xf32>
    %c33 = arith.constant 33 : index
    %c0_107 = arith.constant 0 : index
    %173 = vector.load %arg5[%c33, %c0_107] : memref<41x512xf32, #tpu.memory_space<vmem>>, vector<1x256xf32>
    tpu.vector_store %arg5[%c33, %c0_107], %172 {strides = array<i32>} : memref<41x512xf32, #tpu.memory_space<vmem>>, vector<1x256xf32>,
    %174 = vector.extract_strided_slice %171 {offsets = [1, 0], sizes = [1, 256], strides = [1, 1]} : vector<2x256xf32> to vector<1x256xf32>
    %c33_108 = arith.constant 33 : index
    %c256_109 = arith.constant 256 : index
    %175 = vector.load %arg5[%c33_108, %c256_109] : memref<41x512xf32, #tpu.memory_space<vmem>>, vector<1x256xf32>
    tpu.vector_store %arg5[%c33_108, %c256_109], %174 {strides = array<i32>} : memref<41x512xf32, #tpu.memory_space<vmem>>, vector<1x256xf32>,
    %176 = vector.extract_strided_slice %5 {offsets = [0, 34], sizes = [2, 256], strides = [1, 1]} : vector<2x296xf32> to vector<2x256xf32>
    %177 = vector.extract_strided_slice %176 {offsets = [0, 0], sizes = [1, 256], strides = [1, 1]} : vector<2x256xf32> to vector<1x256xf32>
    %c34 = arith.constant 34 : index
    %c0_110 = arith.constant 0 : index
    %178 = vector.load %arg5[%c34, %c0_110] : memref<41x512xf32, #tpu.memory_space<vmem>>, vector<1x256xf32>
    tpu.vector_store %arg5[%c34, %c0_110], %177 {strides = array<i32>} : memref<41x512xf32, #tpu.memory_space<vmem>>, vector<1x256xf32>,
    %179 = vector.extract_strided_slice %176 {offsets = [1, 0], sizes = [1, 256], strides = [1, 1]} : vector<2x256xf32> to vector<1x256xf32>
    %c34_111 = arith.constant 34 : index
    %c256_112 = arith.constant 256 : index
    %180 = vector.load %arg5[%c34_111, %c256_112] : memref<41x512xf32, #tpu.memory_space<vmem>>, vector<1x256xf32>
    tpu.vector_store %arg5[%c34_111, %c256_112], %179 {strides = array<i32>} : memref<41x512xf32, #tpu.memory_space<vmem>>, vector<1x256xf32>,
    %181 = vector.extract_strided_slice %5 {offsets = [0, 35], sizes = [2, 256], strides = [1, 1]} : vector<2x296xf32> to vector<2x256xf32>
    %182 = vector.extract_strided_slice %181 {offsets = [0, 0], sizes = [1, 256], strides = [1, 1]} : vector<2x256xf32> to vector<1x256xf32>
    %c35 = arith.constant 35 : index
    %c0_113 = arith.constant 0 : index
    %183 = vector.load %arg5[%c35, %c0_113] : memref<41x512xf32, #tpu.memory_space<vmem>>, vector<1x256xf32>
    tpu.vector_store %arg5[%c35, %c0_113], %182 {strides = array<i32>} : memref<41x512xf32, #tpu.memory_space<vmem>>, vector<1x256xf32>,
    %184 = vector.extract_strided_slice %181 {offsets = [1, 0], sizes = [1, 256], strides = [1, 1]} : vector<2x256xf32> to vector<1x256xf32>
    %c35_114 = arith.constant 35 : index
    %c256_115 = arith.constant 256 : index
    %185 = vector.load %arg5[%c35_114, %c256_115] : memref<41x512xf32, #tpu.memory_space<vmem>>, vector<1x256xf32>
    tpu.vector_store %arg5[%c35_114, %c256_115], %184 {strides = array<i32>} : memref<41x512xf32, #tpu.memory_space<vmem>>, vector<1x256xf32>,
    %186 = vector.extract_strided_slice %5 {offsets = [0, 36], sizes = [2, 256], strides = [1, 1]} : vector<2x296xf32> to vector<2x256xf32>
    %187 = vector.extract_strided_slice %186 {offsets = [0, 0], sizes = [1, 256], strides = [1, 1]} : vector<2x256xf32> to vector<1x256xf32>
    %c36 = arith.constant 36 : index
    %c0_116 = arith.constant 0 : index
    %188 = vector.load %arg5[%c36, %c0_116] : memref<41x512xf32, #tpu.memory_space<vmem>>, vector<1x256xf32>
    tpu.vector_store %arg5[%c36, %c0_116], %187 {strides = array<i32>} : memref<41x512xf32, #tpu.memory_space<vmem>>, vector<1x256xf32>,
    %189 = vector.extract_strided_slice %186 {offsets = [1, 0], sizes = [1, 256], strides = [1, 1]} : vector<2x256xf32> to vector<1x256xf32>
    %c36_117 = arith.constant 36 : index
    %c256_118 = arith.constant 256 : index
    %190 = vector.load %arg5[%c36_117, %c256_118] : memref<41x512xf32, #tpu.memory_space<vmem>>, vector<1x256xf32>
    tpu.vector_store %arg5[%c36_117, %c256_118], %189 {strides = array<i32>} : memref<41x512xf32, #tpu.memory_space<vmem>>, vector<1x256xf32>,
    %191 = vector.extract_strided_slice %5 {offsets = [0, 37], sizes = [2, 256], strides = [1, 1]} : vector<2x296xf32> to vector<2x256xf32>
    %192 = vector.extract_strided_slice %191 {offsets = [0, 0], sizes = [1, 256], strides = [1, 1]} : vector<2x256xf32> to vector<1x256xf32>
    %c37 = arith.constant 37 : index
    %c0_119 = arith.constant 0 : index
    %193 = vector.load %arg5[%c37, %c0_119] : memref<41x512xf32, #tpu.memory_space<vmem>>, vector<1x256xf32>
    tpu.vector_store %arg5[%c37, %c0_119], %192 {strides = array<i32>} : memref<41x512xf32, #tpu.memory_space<vmem>>, vector<1x256xf32>,
    %194 = vector.extract_strided_slice %191 {offsets = [1, 0], sizes = [1, 256], strides = [1, 1]} : vector<2x256xf32> to vector<1x256xf32>
    %c37_120 = arith.constant 37 : index
    %c256_121 = arith.constant 256 : index
    %195 = vector.load %arg5[%c37_120, %c256_121] : memref<41x512xf32, #tpu.memory_space<vmem>>, vector<1x256xf32>
    tpu.vector_store %arg5[%c37_120, %c256_121], %194 {strides = array<i32>} : memref<41x512xf32, #tpu.memory_space<vmem>>, vector<1x256xf32>,
    %196 = vector.extract_strided_slice %5 {offsets = [0, 38], sizes = [2, 256], strides = [1, 1]} : vector<2x296xf32> to vector<2x256xf32>
    %197 = vector.extract_strided_slice %196 {offsets = [0, 0], sizes = [1, 256], strides = [1, 1]} : vector<2x256xf32> to vector<1x256xf32>
    %c38 = arith.constant 38 : index
    %c0_122 = arith.constant 0 : index
    %198 = vector.load %arg5[%c38, %c0_122] : memref<41x512xf32, #tpu.memory_space<vmem>>, vector<1x256xf32>
    tpu.vector_store %arg5[%c38, %c0_122], %197 {strides = array<i32>} : memref<41x512xf32, #tpu.memory_space<vmem>>, vector<1x256xf32>,
    %199 = vector.extract_strided_slice %196 {offsets = [1, 0], sizes = [1, 256], strides = [1, 1]} : vector<2x256xf32> to vector<1x256xf32>
    %c38_123 = arith.constant 38 : index
    %c256_124 = arith.constant 256 : index
    %200 = vector.load %arg5[%c38_123, %c256_124] : memref<41x512xf32, #tpu.memory_space<vmem>>, vector<1x256xf32>
    tpu.vector_store %arg5[%c38_123, %c256_124], %199 {strides = array<i32>} : memref<41x512xf32, #tpu.memory_space<vmem>>, vector<1x256xf32>,
    %201 = vector.extract_strided_slice %5 {offsets = [0, 39], sizes = [2, 256], strides = [1, 1]} : vector<2x296xf32> to vector<2x256xf32>
    %202 = vector.extract_strided_slice %201 {offsets = [0, 0], sizes = [1, 256], strides = [1, 1]} : vector<2x256xf32> to vector<1x256xf32>
    %c39 = arith.constant 39 : index
    %c0_125 = arith.constant 0 : index
    %203 = vector.load %arg5[%c39, %c0_125] : memref<41x512xf32, #tpu.memory_space<vmem>>, vector<1x256xf32>
    tpu.vector_store %arg5[%c39, %c0_125], %202 {strides = array<i32>} : memref<41x512xf32, #tpu.memory_space<vmem>>, vector<1x256xf32>,
    %204 = vector.extract_strided_slice %201 {offsets = [1, 0], sizes = [1, 256], strides = [1, 1]} : vector<2x256xf32> to vector<1x256xf32>
    %c39_126 = arith.constant 39 : index
    %c256_127 = arith.constant 256 : index
    %205 = vector.load %arg5[%c39_126, %c256_127] : memref<41x512xf32, #tpu.memory_space<vmem>>, vector<1x256xf32>
    tpu.vector_store %arg5[%c39_126, %c256_127], %204 {strides = array<i32>} : memref<41x512xf32, #tpu.memory_space<vmem>>, vector<1x256xf32>,
    %206 = vector.extract_strided_slice %5 {offsets = [0, 40], sizes = [2, 256], strides = [1, 1]} : vector<2x296xf32> to vector<2x256xf32>
    %207 = vector.extract_strided_slice %206 {offsets = [0, 0], sizes = [1, 256], strides = [1, 1]} : vector<2x256xf32> to vector<1x256xf32>
    %c40 = arith.constant 40 : index
    %c0_128 = arith.constant 0 : index
    %208 = vector.load %arg5[%c40, %c0_128] : memref<41x512xf32, #tpu.memory_space<vmem>>, vector<1x256xf32>
    tpu.vector_store %arg5[%c40, %c0_128], %207 {strides = array<i32>} : memref<41x512xf32, #tpu.memory_space<vmem>>, vector<1x256xf32>,
    %209 = vector.extract_strided_slice %206 {offsets = [1, 0], sizes = [1, 256], strides = [1, 1]} : vector<2x256xf32> to vector<1x256xf32>
    %c40_129 = arith.constant 40 : index
    %c256_130 = arith.constant 256 : index
    %210 = vector.load %arg5[%c40_129, %c256_130] : memref<41x512xf32, #tpu.memory_space<vmem>>, vector<1x256xf32>
    tpu.vector_store %arg5[%c40_129, %c256_130], %209 {strides = array<i32>} : memref<41x512xf32, #tpu.memory_space<vmem>>, vector<1x256xf32>,
    %c0_131 = arith.constant 0 : index
    %c0_132 = arith.constant 0 : index
    %211 = vector.load %arg1[%c0_131, %c0_132] : memref<48x41xf32, #tpu.memory_space<vmem>>, vector<32x41xf32>
    %c0_133 = arith.constant 0 : index
    %c0_134 = arith.constant 0 : index
    %212 = vector.load %arg5[%c0_133, %c0_134] : memref<41x512xf32, #tpu.memory_space<vmem>>, vector<41x512xf32>
    %cst_135 = arith.constant dense<0.000000e+00> : vector<32x512xf32>
    %213 = tpu.matmul %211, %212, %cst_135 {dimension_numbers = #tpu.dot_dimension_numbers<[1], [0], [0], [1], [0, 0, 1, 1], [], []>} : vector<32x41xf32>, vector<41x512xf32>, vector<32x512xf32> -> vector<32x512xf32>
    %214 = vector.extract_strided_slice %213 {offsets = [0, 0], sizes = [16, 512], strides = [1, 1]} : vector<32x512xf32> to vector<16x512xf32>
    %215 = vector.extract_strided_slice %213 {offsets = [0, 0], sizes = [16, 512], strides = [1, 1]} : vector<32x512xf32> to vector<16x512xf32>
    %216 = arith.mulf %214, %215 : vector<16x512xf32>
    %217 = vector.extract_strided_slice %213 {offsets = [16, 0], sizes = [16, 512], strides = [1, 1]} : vector<32x512xf32> to vector<16x512xf32>
    %218 = vector.extract_strided_slice %213 {offsets = [16, 0], sizes = [16, 512], strides = [1, 1]} : vector<32x512xf32> to vector<16x512xf32>
    %219 = arith.mulf %217, %218 : vector<16x512xf32>
    %220 = arith.addf %216, %219 : vector<16x512xf32>
    %cst_136 = arith.constant 0.000000e+00 : f32
    %221 = vector.broadcast %cst_136 : f32 to vector<32x281xf32>
    %c0_137 = arith.constant 0 : index
    %c0_138 = arith.constant 0 : index
    %222 = vector.load %arg6[%c0_137, %c0_138] : memref<32x281xf32, #tpu.memory_space<vmem>>, vector<32x281xf32>
    tpu.vector_store %arg6[%c0_137, %c0_138], %221 {strides = array<i32>} : memref<32x281xf32, #tpu.memory_space<vmem>>, vector<32x281xf32>,
    %223 = vector.extract_strided_slice %220 {offsets = [0, 0], sizes = [16, 256], strides = [1, 1]} : vector<16x512xf32> to vector<16x256xf32>
    %c0_139 = arith.constant 0 : index
    %c12_140 = arith.constant 12 : index
    %224 = vector.load %arg6[%c0_139, %c12_140] : memref<32x281xf32, #tpu.memory_space<vmem>>, vector<16x256xf32>
    tpu.vector_store %arg6[%c0_139, %c12_140], %223 {strides = array<i32>} : memref<32x281xf32, #tpu.memory_space<vmem>>, vector<16x256xf32>,
    %225 = vector.extract_strided_slice %220 {offsets = [0, 256], sizes = [16, 256], strides = [1, 1]} : vector<16x512xf32> to vector<16x256xf32>
    %c16_141 = arith.constant 16 : index
    %c12_142 = arith.constant 12 : index
    %226 = vector.load %arg6[%c16_141, %c12_142] : memref<32x281xf32, #tpu.memory_space<vmem>>, vector<16x256xf32>
    tpu.vector_store %arg6[%c16_141, %c12_142], %225 {strides = array<i32>} : memref<32x281xf32, #tpu.memory_space<vmem>>, vector<16x256xf32>,
    %c0_143 = arith.constant 0 : index
    %c0_144 = arith.constant 0 : index
    %227 = vector.load %arg6[%c0_143, %c0_144] : memref<32x281xf32, #tpu.memory_space<vmem>>, vector<32x281xf32>
    %c32_145 = arith.constant 32 : index
    %c0_146 = arith.constant 0 : index
    %228 = vector.load %arg1[%c32_145, %c0_146] : memref<48x41xf32, #tpu.memory_space<vmem>>, vector<16x41xf32>
    %229 = tpu.concatenate %228, %228 in 0 : vector<16x41xf32>, vector<16x41xf32> -> vector<32x41xf32>
    %c0_147 = arith.constant 0 : index
    %c0_148 = arith.constant 0 : index
    %230 = vector.load %arg2[%c0_147, %c0_148] : memref<16x5xf32, #tpu.memory_space<vmem>>, vector<16x1xf32>
    %231 = tpu.concatenate %230, %230 in 0 : vector<16x1xf32>, vector<16x1xf32> -> vector<32x1xf32>
    %232 = vector.extract_strided_slice %227 {offsets = [0, 0], sizes = [32, 41], strides = [1, 1]} : vector<32x281xf32> to vector<32x41xf32>
    %233 = arith.mulf %232, %229 : vector<32x41xf32>
    %cst_149 = arith.constant dense<0.000000e+00> : vector<32xf32>
    %234 = vector.multi_reduction <add>, %233, %cst_149 [1] : vector<32x41xf32> to vector<32xf32>
    %235 = vector.shape_cast %234 : vector<32xf32> to vector<32x1xf32>
    %c0_150 = arith.constant 0 : index
    %c0_151 = arith.constant 0 : index
    %236 = vector.load %arg7[%c0_150, %c0_151] : memref<32x16xf32, #tpu.memory_space<vmem>>, vector<32x1xf32>
    tpu.vector_store %arg7[%c0_150, %c0_151], %235 {strides = array<i32>} : memref<32x16xf32, #tpu.memory_space<vmem>>, vector<32x1xf32>,
    %237 = vector.extract_strided_slice %227 {offsets = [0, 16], sizes = [32, 41], strides = [1, 1]} : vector<32x281xf32> to vector<32x41xf32>
    %238 = arith.mulf %237, %229 : vector<32x41xf32>
    %cst_152 = arith.constant dense<0.000000e+00> : vector<32xf32>
    %239 = vector.multi_reduction <add>, %238, %cst_152 [1] : vector<32x41xf32> to vector<32xf32>
    %240 = vector.shape_cast %239 : vector<32xf32> to vector<32x1xf32>
    %c0_153 = arith.constant 0 : index
    %c1_154 = arith.constant 1 : index
    %241 = vector.load %arg7[%c0_153, %c1_154] : memref<32x16xf32, #tpu.memory_space<vmem>>, vector<32x1xf32>
    tpu.vector_store %arg7[%c0_153, %c1_154], %240 {strides = array<i32>} : memref<32x16xf32, #tpu.memory_space<vmem>>, vector<32x1xf32>,
    %242 = vector.extract_strided_slice %227 {offsets = [0, 32], sizes = [32, 41], strides = [1, 1]} : vector<32x281xf32> to vector<32x41xf32>
    %243 = arith.mulf %242, %229 : vector<32x41xf32>
    %cst_155 = arith.constant dense<0.000000e+00> : vector<32xf32>
    %244 = vector.multi_reduction <add>, %243, %cst_155 [1] : vector<32x41xf32> to vector<32xf32>
    %245 = vector.shape_cast %244 : vector<32xf32> to vector<32x1xf32>
    %c0_156 = arith.constant 0 : index
    %c2_157 = arith.constant 2 : index
    %246 = vector.load %arg7[%c0_156, %c2_157] : memref<32x16xf32, #tpu.memory_space<vmem>>, vector<32x1xf32>
    tpu.vector_store %arg7[%c0_156, %c2_157], %245 {strides = array<i32>} : memref<32x16xf32, #tpu.memory_space<vmem>>, vector<32x1xf32>,
    %247 = vector.extract_strided_slice %227 {offsets = [0, 48], sizes = [32, 41], strides = [1, 1]} : vector<32x281xf32> to vector<32x41xf32>
    %248 = arith.mulf %247, %229 : vector<32x41xf32>
    %cst_158 = arith.constant dense<0.000000e+00> : vector<32xf32>
    %249 = vector.multi_reduction <add>, %248, %cst_158 [1] : vector<32x41xf32> to vector<32xf32>
    %250 = vector.shape_cast %249 : vector<32xf32> to vector<32x1xf32>
    %c0_159 = arith.constant 0 : index
    %c3_160 = arith.constant 3 : index
    %251 = vector.load %arg7[%c0_159, %c3_160] : memref<32x16xf32, #tpu.memory_space<vmem>>, vector<32x1xf32>
    tpu.vector_store %arg7[%c0_159, %c3_160], %250 {strides = array<i32>} : memref<32x16xf32, #tpu.memory_space<vmem>>, vector<32x1xf32>,
    %252 = vector.extract_strided_slice %227 {offsets = [0, 64], sizes = [32, 41], strides = [1, 1]} : vector<32x281xf32> to vector<32x41xf32>
    %253 = arith.mulf %252, %229 : vector<32x41xf32>
    %cst_161 = arith.constant dense<0.000000e+00> : vector<32xf32>
    %254 = vector.multi_reduction <add>, %253, %cst_161 [1] : vector<32x41xf32> to vector<32xf32>
    %255 = vector.shape_cast %254 : vector<32xf32> to vector<32x1xf32>
    %c0_162 = arith.constant 0 : index
    %c4_163 = arith.constant 4 : index
    %256 = vector.load %arg7[%c0_162, %c4_163] : memref<32x16xf32, #tpu.memory_space<vmem>>, vector<32x1xf32>
    tpu.vector_store %arg7[%c0_162, %c4_163], %255 {strides = array<i32>} : memref<32x16xf32, #tpu.memory_space<vmem>>, vector<32x1xf32>,
    %257 = vector.extract_strided_slice %227 {offsets = [0, 80], sizes = [32, 41], strides = [1, 1]} : vector<32x281xf32> to vector<32x41xf32>
    %258 = arith.mulf %257, %229 : vector<32x41xf32>
    %cst_164 = arith.constant dense<0.000000e+00> : vector<32xf32>
    %259 = vector.multi_reduction <add>, %258, %cst_164 [1] : vector<32x41xf32> to vector<32xf32>
    %260 = vector.shape_cast %259 : vector<32xf32> to vector<32x1xf32>
    %c0_165 = arith.constant 0 : index
    %c5_166 = arith.constant 5 : index
    %261 = vector.load %arg7[%c0_165, %c5_166] : memref<32x16xf32, #tpu.memory_space<vmem>>, vector<32x1xf32>
    tpu.vector_store %arg7[%c0_165, %c5_166], %260 {strides = array<i32>} : memref<32x16xf32, #tpu.memory_space<vmem>>, vector<32x1xf32>,
    %262 = vector.extract_strided_slice %227 {offsets = [0, 96], sizes = [32, 41], strides = [1, 1]} : vector<32x281xf32> to vector<32x41xf32>
    %263 = arith.mulf %262, %229 : vector<32x41xf32>
    %cst_167 = arith.constant dense<0.000000e+00> : vector<32xf32>
    %264 = vector.multi_reduction <add>, %263, %cst_167 [1] : vector<32x41xf32> to vector<32xf32>
    %265 = vector.shape_cast %264 : vector<32xf32> to vector<32x1xf32>
    %c0_168 = arith.constant 0 : index
    %c6_169 = arith.constant 6 : index
    %266 = vector.load %arg7[%c0_168, %c6_169] : memref<32x16xf32, #tpu.memory_space<vmem>>, vector<32x1xf32>
    tpu.vector_store %arg7[%c0_168, %c6_169], %265 {strides = array<i32>} : memref<32x16xf32, #tpu.memory_space<vmem>>, vector<32x1xf32>,
    %267 = vector.extract_strided_slice %227 {offsets = [0, 112], sizes = [32, 41], strides = [1, 1]} : vector<32x281xf32> to vector<32x41xf32>
    %268 = arith.mulf %267, %229 : vector<32x41xf32>
    %cst_170 = arith.constant dense<0.000000e+00> : vector<32xf32>
    %269 = vector.multi_reduction <add>, %268, %cst_170 [1] : vector<32x41xf32> to vector<32xf32>
    %270 = vector.shape_cast %269 : vector<32xf32> to vector<32x1xf32>
    %c0_171 = arith.constant 0 : index
    %c7_172 = arith.constant 7 : index
    %271 = vector.load %arg7[%c0_171, %c7_172] : memref<32x16xf32, #tpu.memory_space<vmem>>, vector<32x1xf32>
    tpu.vector_store %arg7[%c0_171, %c7_172], %270 {strides = array<i32>} : memref<32x16xf32, #tpu.memory_space<vmem>>, vector<32x1xf32>,
    %272 = vector.extract_strided_slice %227 {offsets = [0, 128], sizes = [32, 41], strides = [1, 1]} : vector<32x281xf32> to vector<32x41xf32>
    %273 = arith.mulf %272, %229 : vector<32x41xf32>
    %cst_173 = arith.constant dense<0.000000e+00> : vector<32xf32>
    %274 = vector.multi_reduction <add>, %273, %cst_173 [1] : vector<32x41xf32> to vector<32xf32>
    %275 = vector.shape_cast %274 : vector<32xf32> to vector<32x1xf32>
    %c0_174 = arith.constant 0 : index
    %c8_175 = arith.constant 8 : index
    %276 = vector.load %arg7[%c0_174, %c8_175] : memref<32x16xf32, #tpu.memory_space<vmem>>, vector<32x1xf32>
    tpu.vector_store %arg7[%c0_174, %c8_175], %275 {strides = array<i32>} : memref<32x16xf32, #tpu.memory_space<vmem>>, vector<32x1xf32>,
    %277 = vector.extract_strided_slice %227 {offsets = [0, 144], sizes = [32, 41], strides = [1, 1]} : vector<32x281xf32> to vector<32x41xf32>
    %278 = arith.mulf %277, %229 : vector<32x41xf32>
    %cst_176 = arith.constant dense<0.000000e+00> : vector<32xf32>
    %279 = vector.multi_reduction <add>, %278, %cst_176 [1] : vector<32x41xf32> to vector<32xf32>
    %280 = vector.shape_cast %279 : vector<32xf32> to vector<32x1xf32>
    %c0_177 = arith.constant 0 : index
    %c9_178 = arith.constant 9 : index
    %281 = vector.load %arg7[%c0_177, %c9_178] : memref<32x16xf32, #tpu.memory_space<vmem>>, vector<32x1xf32>
    tpu.vector_store %arg7[%c0_177, %c9_178], %280 {strides = array<i32>} : memref<32x16xf32, #tpu.memory_space<vmem>>, vector<32x1xf32>,
    %282 = vector.extract_strided_slice %227 {offsets = [0, 160], sizes = [32, 41], strides = [1, 1]} : vector<32x281xf32> to vector<32x41xf32>
    %283 = arith.mulf %282, %229 : vector<32x41xf32>
    %cst_179 = arith.constant dense<0.000000e+00> : vector<32xf32>
    %284 = vector.multi_reduction <add>, %283, %cst_179 [1] : vector<32x41xf32> to vector<32xf32>
    %285 = vector.shape_cast %284 : vector<32xf32> to vector<32x1xf32>
    %c0_180 = arith.constant 0 : index
    %c10_181 = arith.constant 10 : index
    %286 = vector.load %arg7[%c0_180, %c10_181] : memref<32x16xf32, #tpu.memory_space<vmem>>, vector<32x1xf32>
    tpu.vector_store %arg7[%c0_180, %c10_181], %285 {strides = array<i32>} : memref<32x16xf32, #tpu.memory_space<vmem>>, vector<32x1xf32>,
    %287 = vector.extract_strided_slice %227 {offsets = [0, 176], sizes = [32, 41], strides = [1, 1]} : vector<32x281xf32> to vector<32x41xf32>
    %288 = arith.mulf %287, %229 : vector<32x41xf32>
    %cst_182 = arith.constant dense<0.000000e+00> : vector<32xf32>
    %289 = vector.multi_reduction <add>, %288, %cst_182 [1] : vector<32x41xf32> to vector<32xf32>
    %290 = vector.shape_cast %289 : vector<32xf32> to vector<32x1xf32>
    %c0_183 = arith.constant 0 : index
    %c11_184 = arith.constant 11 : index
    %291 = vector.load %arg7[%c0_183, %c11_184] : memref<32x16xf32, #tpu.memory_space<vmem>>, vector<32x1xf32>
    tpu.vector_store %arg7[%c0_183, %c11_184], %290 {strides = array<i32>} : memref<32x16xf32, #tpu.memory_space<vmem>>, vector<32x1xf32>,
    %292 = vector.extract_strided_slice %227 {offsets = [0, 192], sizes = [32, 41], strides = [1, 1]} : vector<32x281xf32> to vector<32x41xf32>
    %293 = arith.mulf %292, %229 : vector<32x41xf32>
    %cst_185 = arith.constant dense<0.000000e+00> : vector<32xf32>
    %294 = vector.multi_reduction <add>, %293, %cst_185 [1] : vector<32x41xf32> to vector<32xf32>
    %295 = vector.shape_cast %294 : vector<32xf32> to vector<32x1xf32>
    %c0_186 = arith.constant 0 : index
    %c12_187 = arith.constant 12 : index
    %296 = vector.load %arg7[%c0_186, %c12_187] : memref<32x16xf32, #tpu.memory_space<vmem>>, vector<32x1xf32>
    tpu.vector_store %arg7[%c0_186, %c12_187], %295 {strides = array<i32>} : memref<32x16xf32, #tpu.memory_space<vmem>>, vector<32x1xf32>,
    %297 = vector.extract_strided_slice %227 {offsets = [0, 208], sizes = [32, 41], strides = [1, 1]} : vector<32x281xf32> to vector<32x41xf32>
    %298 = arith.mulf %297, %229 : vector<32x41xf32>
    %cst_188 = arith.constant dense<0.000000e+00> : vector<32xf32>
    %299 = vector.multi_reduction <add>, %298, %cst_188 [1] : vector<32x41xf32> to vector<32xf32>
    %300 = vector.shape_cast %299 : vector<32xf32> to vector<32x1xf32>
    %c0_189 = arith.constant 0 : index
    %c13_190 = arith.constant 13 : index
    %301 = vector.load %arg7[%c0_189, %c13_190] : memref<32x16xf32, #tpu.memory_space<vmem>>, vector<32x1xf32>
    tpu.vector_store %arg7[%c0_189, %c13_190], %300 {strides = array<i32>} : memref<32x16xf32, #tpu.memory_space<vmem>>, vector<32x1xf32>,
    %302 = vector.extract_strided_slice %227 {offsets = [0, 224], sizes = [32, 41], strides = [1, 1]} : vector<32x281xf32> to vector<32x41xf32>
    %303 = arith.mulf %302, %229 : vector<32x41xf32>
    %cst_191 = arith.constant dense<0.000000e+00> : vector<32xf32>
    %304 = vector.multi_reduction <add>, %303, %cst_191 [1] : vector<32x41xf32> to vector<32xf32>
    %305 = vector.shape_cast %304 : vector<32xf32> to vector<32x1xf32>
    %c0_192 = arith.constant 0 : index
    %c14_193 = arith.constant 14 : index
    %306 = vector.load %arg7[%c0_192, %c14_193] : memref<32x16xf32, #tpu.memory_space<vmem>>, vector<32x1xf32>
    tpu.vector_store %arg7[%c0_192, %c14_193], %305 {strides = array<i32>} : memref<32x16xf32, #tpu.memory_space<vmem>>, vector<32x1xf32>,
    %307 = vector.extract_strided_slice %227 {offsets = [0, 240], sizes = [32, 41], strides = [1, 1]} : vector<32x281xf32> to vector<32x41xf32>
    %308 = arith.mulf %307, %229 : vector<32x41xf32>
    %cst_194 = arith.constant dense<0.000000e+00> : vector<32xf32>
    %309 = vector.multi_reduction <add>, %308, %cst_194 [1] : vector<32x41xf32> to vector<32xf32>
    %310 = vector.shape_cast %309 : vector<32xf32> to vector<32x1xf32>
    %c0_195 = arith.constant 0 : index
    %c15_196 = arith.constant 15 : index
    %311 = vector.load %arg7[%c0_195, %c15_196] : memref<32x16xf32, #tpu.memory_space<vmem>>, vector<32x1xf32>
    tpu.vector_store %arg7[%c0_195, %c15_196], %310 {strides = array<i32>} : memref<32x16xf32, #tpu.memory_space<vmem>>, vector<32x1xf32>,
    %c0_197 = arith.constant 0 : index
    %c0_198 = arith.constant 0 : index
    %312 = vector.load %arg7[%c0_197, %c0_198] : memref<32x16xf32, #tpu.memory_space<vmem>>, vector<32x16xf32>
    %313 = vector.broadcast %231 : vector<32x1xf32> to vector<32x16xf32>
    %314 = arith.addf %312, %313 : vector<32x16xf32>
    %cst_199 = arith.constant 9.99999974E-6 : f32
    %315 = vector.broadcast %cst_199 : f32 to vector<32x16xf32>
    %316 = arith.maximumf %314, %315 : vector<32x16xf32>
    %c0_200 = arith.constant 0 : index
    %c1_201 = arith.constant 1 : index
    %317 = vector.load %arg2[%c0_200, %c1_201] : memref<16x5xf32, #tpu.memory_space<vmem>>, vector<16x1xf32>
    %318 = tpu.concatenate %317, %317 in 0 : vector<16x1xf32>, vector<16x1xf32> -> vector<32x1xf32>
    %c0_202 = arith.constant 0 : index
    %c2_203 = arith.constant 2 : index
    %319 = vector.load %arg2[%c0_202, %c2_203] : memref<16x5xf32, #tpu.memory_space<vmem>>, vector<16x1xf32>
    %320 = tpu.concatenate %319, %319 in 0 : vector<16x1xf32>, vector<16x1xf32> -> vector<32x1xf32>
    %c0_204 = arith.constant 0 : index
    %c3_205 = arith.constant 3 : index
    %321 = vector.load %arg2[%c0_204, %c3_205] : memref<16x5xf32, #tpu.memory_space<vmem>>, vector<16x1xf32>
    %322 = tpu.concatenate %321, %321 in 0 : vector<16x1xf32>, vector<16x1xf32> -> vector<32x1xf32>
    %c0_206 = arith.constant 0 : index
    %c4_207 = arith.constant 4 : index
    %323 = vector.load %arg2[%c0_206, %c4_207] : memref<16x5xf32, #tpu.memory_space<vmem>>, vector<16x1xf32>
    %324 = tpu.concatenate %323, %323 in 0 : vector<16x1xf32>, vector<16x1xf32> -> vector<32x1xf32>
    %cst_208 = arith.constant 1.000000e+00 : f32
    %325 = vector.broadcast %cst_208 : f32 to vector<32x1xf32>
    %326 = arith.divf %325, %322 : vector<32x1xf32>
    %327 = vector.extract_strided_slice %316 {offsets = [0, 0], sizes = [32, 1], strides = [1, 1]} : vector<32x16xf32> to vector<32x1xf32>
    %c0_209 = arith.constant 0 : index
    %c0_210 = arith.constant 0 : index
    %328 = vector.load %arg8[%c0_209, %c0_210] : memref<32x16xf32, #tpu.memory_space<vmem>>, vector<32x1xf32>
    tpu.vector_store %arg8[%c0_209, %c0_210], %327 {strides = array<i32>} : memref<32x16xf32, #tpu.memory_space<vmem>>, vector<32x1xf32>,
    %329 = vector.extract_strided_slice %316 {offsets = [0, 1], sizes = [32, 1], strides = [1, 1]} : vector<32x16xf32> to vector<32x1xf32>
    %330 = arith.mulf %324, %329 : vector<32x1xf32>
    %cst_211 = arith.constant 1.000000e+00 : f32
    %331 = vector.broadcast %cst_211 : f32 to vector<32x1xf32>
    %332 = arith.subf %331, %324 : vector<32x1xf32>
    %333 = arith.mulf %332, %327 : vector<32x1xf32>
    %334 = arith.addf %330, %333 : vector<32x1xf32>
    %c0_212 = arith.constant 0 : index
    %c1_213 = arith.constant 1 : index
    %335 = vector.load %arg8[%c0_212, %c1_213] : memref<32x16xf32, #tpu.memory_space<vmem>>, vector<32x1xf32>
    tpu.vector_store %arg8[%c0_212, %c1_213], %334 {strides = array<i32>} : memref<32x16xf32, #tpu.memory_space<vmem>>, vector<32x1xf32>,
    %336 = vector.extract_strided_slice %316 {offsets = [0, 2], sizes = [32, 1], strides = [1, 1]} : vector<32x16xf32> to vector<32x1xf32>
    %337 = arith.mulf %324, %336 : vector<32x1xf32>
    %cst_214 = arith.constant 1.000000e+00 : f32
    %338 = vector.broadcast %cst_214 : f32 to vector<32x1xf32>
    %339 = arith.subf %338, %324 : vector<32x1xf32>
    %340 = arith.mulf %339, %334 : vector<32x1xf32>
    %341 = arith.addf %337, %340 : vector<32x1xf32>
    %c0_215 = arith.constant 0 : index
    %c2_216 = arith.constant 2 : index
    %342 = vector.load %arg8[%c0_215, %c2_216] : memref<32x16xf32, #tpu.memory_space<vmem>>, vector<32x1xf32>
    tpu.vector_store %arg8[%c0_215, %c2_216], %341 {strides = array<i32>} : memref<32x16xf32, #tpu.memory_space<vmem>>, vector<32x1xf32>,
    %343 = vector.extract_strided_slice %316 {offsets = [0, 3], sizes = [32, 1], strides = [1, 1]} : vector<32x16xf32> to vector<32x1xf32>
    %344 = arith.mulf %324, %343 : vector<32x1xf32>
    %cst_217 = arith.constant 1.000000e+00 : f32
    %345 = vector.broadcast %cst_217 : f32 to vector<32x1xf32>
    %346 = arith.subf %345, %324 : vector<32x1xf32>
    %347 = arith.mulf %346, %341 : vector<32x1xf32>
    %348 = arith.addf %344, %347 : vector<32x1xf32>
    %c0_218 = arith.constant 0 : index
    %c3_219 = arith.constant 3 : index
    %349 = vector.load %arg8[%c0_218, %c3_219] : memref<32x16xf32, #tpu.memory_space<vmem>>, vector<32x1xf32>
    tpu.vector_store %arg8[%c0_218, %c3_219], %348 {strides = array<i32>} : memref<32x16xf32, #tpu.memory_space<vmem>>, vector<32x1xf32>,
    %350 = vector.extract_strided_slice %316 {offsets = [0, 4], sizes = [32, 1], strides = [1, 1]} : vector<32x16xf32> to vector<32x1xf32>
    %351 = arith.mulf %324, %350 : vector<32x1xf32>
    %cst_220 = arith.constant 1.000000e+00 : f32
    %352 = vector.broadcast %cst_220 : f32 to vector<32x1xf32>
    %353 = arith.subf %352, %324 : vector<32x1xf32>
    %354 = arith.mulf %353, %348 : vector<32x1xf32>
    %355 = arith.addf %351, %354 : vector<32x1xf32>
    %c0_221 = arith.constant 0 : index
    %c4_222 = arith.constant 4 : index
    %356 = vector.load %arg8[%c0_221, %c4_222] : memref<32x16xf32, #tpu.memory_space<vmem>>, vector<32x1xf32>
    tpu.vector_store %arg8[%c0_221, %c4_222], %355 {strides = array<i32>} : memref<32x16xf32, #tpu.memory_space<vmem>>, vector<32x1xf32>,
    %357 = vector.extract_strided_slice %316 {offsets = [0, 5], sizes = [32, 1], strides = [1, 1]} : vector<32x16xf32> to vector<32x1xf32>
    %358 = arith.mulf %324, %357 : vector<32x1xf32>
    %cst_223 = arith.constant 1.000000e+00 : f32
    %359 = vector.broadcast %cst_223 : f32 to vector<32x1xf32>
    %360 = arith.subf %359, %324 : vector<32x1xf32>
    %361 = arith.mulf %360, %355 : vector<32x1xf32>
    %362 = arith.addf %358, %361 : vector<32x1xf32>
    %c0_224 = arith.constant 0 : index
    %c5_225 = arith.constant 5 : index
    %363 = vector.load %arg8[%c0_224, %c5_225] : memref<32x16xf32, #tpu.memory_space<vmem>>, vector<32x1xf32>
    tpu.vector_store %arg8[%c0_224, %c5_225], %362 {strides = array<i32>} : memref<32x16xf32, #tpu.memory_space<vmem>>, vector<32x1xf32>,
    %364 = vector.extract_strided_slice %316 {offsets = [0, 6], sizes = [32, 1], strides = [1, 1]} : vector<32x16xf32> to vector<32x1xf32>
    %365 = arith.mulf %324, %364 : vector<32x1xf32>
    %cst_226 = arith.constant 1.000000e+00 : f32
    %366 = vector.broadcast %cst_226 : f32 to vector<32x1xf32>
    %367 = arith.subf %366, %324 : vector<32x1xf32>
    %368 = arith.mulf %367, %362 : vector<32x1xf32>
    %369 = arith.addf %365, %368 : vector<32x1xf32>
    %c0_227 = arith.constant 0 : index
    %c6_228 = arith.constant 6 : index
    %370 = vector.load %arg8[%c0_227, %c6_228] : memref<32x16xf32, #tpu.memory_space<vmem>>, vector<32x1xf32>
    tpu.vector_store %arg8[%c0_227, %c6_228], %369 {strides = array<i32>} : memref<32x16xf32, #tpu.memory_space<vmem>>, vector<32x1xf32>,
    %371 = vector.extract_strided_slice %316 {offsets = [0, 7], sizes = [32, 1], strides = [1, 1]} : vector<32x16xf32> to vector<32x1xf32>
    %372 = arith.mulf %324, %371 : vector<32x1xf32>
    %cst_229 = arith.constant 1.000000e+00 : f32
    %373 = vector.broadcast %cst_229 : f32 to vector<32x1xf32>
    %374 = arith.subf %373, %324 : vector<32x1xf32>
    %375 = arith.mulf %374, %369 : vector<32x1xf32>
    %376 = arith.addf %372, %375 : vector<32x1xf32>
    %c0_230 = arith.constant 0 : index
    %c7_231 = arith.constant 7 : index
    %377 = vector.load %arg8[%c0_230, %c7_231] : memref<32x16xf32, #tpu.memory_space<vmem>>, vector<32x1xf32>
    tpu.vector_store %arg8[%c0_230, %c7_231], %376 {strides = array<i32>} : memref<32x16xf32, #tpu.memory_space<vmem>>, vector<32x1xf32>,
    %378 = vector.extract_strided_slice %316 {offsets = [0, 8], sizes = [32, 1], strides = [1, 1]} : vector<32x16xf32> to vector<32x1xf32>
    %379 = arith.mulf %324, %378 : vector<32x1xf32>
    %cst_232 = arith.constant 1.000000e+00 : f32
    %380 = vector.broadcast %cst_232 : f32 to vector<32x1xf32>
    %381 = arith.subf %380, %324 : vector<32x1xf32>
    %382 = arith.mulf %381, %376 : vector<32x1xf32>
    %383 = arith.addf %379, %382 : vector<32x1xf32>
    %c0_233 = arith.constant 0 : index
    %c8_234 = arith.constant 8 : index
    %384 = vector.load %arg8[%c0_233, %c8_234] : memref<32x16xf32, #tpu.memory_space<vmem>>, vector<32x1xf32>
    tpu.vector_store %arg8[%c0_233, %c8_234], %383 {strides = array<i32>} : memref<32x16xf32, #tpu.memory_space<vmem>>, vector<32x1xf32>,
    %385 = vector.extract_strided_slice %316 {offsets = [0, 9], sizes = [32, 1], strides = [1, 1]} : vector<32x16xf32> to vector<32x1xf32>
    %386 = arith.mulf %324, %385 : vector<32x1xf32>
    %cst_235 = arith.constant 1.000000e+00 : f32
    %387 = vector.broadcast %cst_235 : f32 to vector<32x1xf32>
    %388 = arith.subf %387, %324 : vector<32x1xf32>
    %389 = arith.mulf %388, %383 : vector<32x1xf32>
    %390 = arith.addf %386, %389 : vector<32x1xf32>
    %c0_236 = arith.constant 0 : index
    %c9_237 = arith.constant 9 : index
    %391 = vector.load %arg8[%c0_236, %c9_237] : memref<32x16xf32, #tpu.memory_space<vmem>>, vector<32x1xf32>
    tpu.vector_store %arg8[%c0_236, %c9_237], %390 {strides = array<i32>} : memref<32x16xf32, #tpu.memory_space<vmem>>, vector<32x1xf32>,
    %392 = vector.extract_strided_slice %316 {offsets = [0, 10], sizes = [32, 1], strides = [1, 1]} : vector<32x16xf32> to vector<32x1xf32>
    %393 = arith.mulf %324, %392 : vector<32x1xf32>
    %cst_238 = arith.constant 1.000000e+00 : f32
    %394 = vector.broadcast %cst_238 : f32 to vector<32x1xf32>
    %395 = arith.subf %394, %324 : vector<32x1xf32>
    %396 = arith.mulf %395, %390 : vector<32x1xf32>
    %397 = arith.addf %393, %396 : vector<32x1xf32>
    %c0_239 = arith.constant 0 : index
    %c10_240 = arith.constant 10 : index
    %398 = vector.load %arg8[%c0_239, %c10_240] : memref<32x16xf32, #tpu.memory_space<vmem>>, vector<32x1xf32>
    tpu.vector_store %arg8[%c0_239, %c10_240], %397 {strides = array<i32>} : memref<32x16xf32, #tpu.memory_space<vmem>>, vector<32x1xf32>,
    %399 = vector.extract_strided_slice %316 {offsets = [0, 11], sizes = [32, 1], strides = [1, 1]} : vector<32x16xf32> to vector<32x1xf32>
    %400 = arith.mulf %324, %399 : vector<32x1xf32>
    %cst_241 = arith.constant 1.000000e+00 : f32
    %401 = vector.broadcast %cst_241 : f32 to vector<32x1xf32>
    %402 = arith.subf %401, %324 : vector<32x1xf32>
    %403 = arith.mulf %402, %397 : vector<32x1xf32>
    %404 = arith.addf %400, %403 : vector<32x1xf32>
    %c0_242 = arith.constant 0 : index
    %c11_243 = arith.constant 11 : index
    %405 = vector.load %arg8[%c0_242, %c11_243] : memref<32x16xf32, #tpu.memory_space<vmem>>, vector<32x1xf32>
    tpu.vector_store %arg8[%c0_242, %c11_243], %404 {strides = array<i32>} : memref<32x16xf32, #tpu.memory_space<vmem>>, vector<32x1xf32>,
    %406 = vector.extract_strided_slice %316 {offsets = [0, 12], sizes = [32, 1], strides = [1, 1]} : vector<32x16xf32> to vector<32x1xf32>
    %407 = arith.mulf %324, %406 : vector<32x1xf32>
    %cst_244 = arith.constant 1.000000e+00 : f32
    %408 = vector.broadcast %cst_244 : f32 to vector<32x1xf32>
    %409 = arith.subf %408, %324 : vector<32x1xf32>
    %410 = arith.mulf %409, %404 : vector<32x1xf32>
    %411 = arith.addf %407, %410 : vector<32x1xf32>
    %c0_245 = arith.constant 0 : index
    %c12_246 = arith.constant 12 : index
    %412 = vector.load %arg8[%c0_245, %c12_246] : memref<32x16xf32, #tpu.memory_space<vmem>>, vector<32x1xf32>
    tpu.vector_store %arg8[%c0_245, %c12_246], %411 {strides = array<i32>} : memref<32x16xf32, #tpu.memory_space<vmem>>, vector<32x1xf32>,
    %413 = vector.extract_strided_slice %316 {offsets = [0, 13], sizes = [32, 1], strides = [1, 1]} : vector<32x16xf32> to vector<32x1xf32>
    %414 = arith.mulf %324, %413 : vector<32x1xf32>
    %cst_247 = arith.constant 1.000000e+00 : f32
    %415 = vector.broadcast %cst_247 : f32 to vector<32x1xf32>
    %416 = arith.subf %415, %324 : vector<32x1xf32>
    %417 = arith.mulf %416, %411 : vector<32x1xf32>
    %418 = arith.addf %414, %417 : vector<32x1xf32>
    %c0_248 = arith.constant 0 : index
    %c13_249 = arith.constant 13 : index
    %419 = vector.load %arg8[%c0_248, %c13_249] : memref<32x16xf32, #tpu.memory_space<vmem>>, vector<32x1xf32>
    tpu.vector_store %arg8[%c0_248, %c13_249], %418 {strides = array<i32>} : memref<32x16xf32, #tpu.memory_space<vmem>>, vector<32x1xf32>,
    %420 = vector.extract_strided_slice %316 {offsets = [0, 14], sizes = [32, 1], strides = [1, 1]} : vector<32x16xf32> to vector<32x1xf32>
    %421 = arith.mulf %324, %420 : vector<32x1xf32>
    %cst_250 = arith.constant 1.000000e+00 : f32
    %422 = vector.broadcast %cst_250 : f32 to vector<32x1xf32>
    %423 = arith.subf %422, %324 : vector<32x1xf32>
    %424 = arith.mulf %423, %418 : vector<32x1xf32>
    %425 = arith.addf %421, %424 : vector<32x1xf32>
    %c0_251 = arith.constant 0 : index
    %c14_252 = arith.constant 14 : index
    %426 = vector.load %arg8[%c0_251, %c14_252] : memref<32x16xf32, #tpu.memory_space<vmem>>, vector<32x1xf32>
    tpu.vector_store %arg8[%c0_251, %c14_252], %425 {strides = array<i32>} : memref<32x16xf32, #tpu.memory_space<vmem>>, vector<32x1xf32>,
    %427 = vector.extract_strided_slice %316 {offsets = [0, 15], sizes = [32, 1], strides = [1, 1]} : vector<32x16xf32> to vector<32x1xf32>
    %428 = arith.mulf %324, %427 : vector<32x1xf32>
    %cst_253 = arith.constant 1.000000e+00 : f32
    %429 = vector.broadcast %cst_253 : f32 to vector<32x1xf32>
    %430 = arith.subf %429, %324 : vector<32x1xf32>
    %431 = arith.mulf %430, %425 : vector<32x1xf32>
    %432 = arith.addf %428, %431 : vector<32x1xf32>
    %c0_254 = arith.constant 0 : index
    %c15_255 = arith.constant 15 : index
    %433 = vector.load %arg8[%c0_254, %c15_255] : memref<32x16xf32, #tpu.memory_space<vmem>>, vector<32x1xf32>
    tpu.vector_store %arg8[%c0_254, %c15_255], %432 {strides = array<i32>} : memref<32x16xf32, #tpu.memory_space<vmem>>, vector<32x1xf32>,
    %c0_256 = arith.constant 0 : index
    %c0_257 = arith.constant 0 : index
    %434 = vector.load %arg8[%c0_256, %c0_257] : memref<32x16xf32, #tpu.memory_space<vmem>>, vector<32x16xf32>
    %435 = math.log %320 : vector<32x1xf32>
    %436 = arith.mulf %326, %435 : vector<32x1xf32>
    %437 = math.exp %436 : vector<32x1xf32>
    %cst_258 = arith.constant 9.99999996E-13 : f32
    %438 = vector.broadcast %cst_258 : f32 to vector<32x16xf32>
    %439 = arith.addf %438, %434 : vector<32x16xf32>
    %440 = math.log %439 : vector<32x16xf32>
    %441 = vector.broadcast %318 : vector<32x1xf32> to vector<32x16xf32>
    %442 = arith.mulf %441, %440 : vector<32x16xf32>
    %443 = math.exp %442 : vector<32x16xf32>
    %444 = arith.divf %316, %443 : vector<32x16xf32>
    %445 = vector.broadcast %320 : vector<32x1xf32> to vector<32x16xf32>
    %446 = arith.addf %444, %445 : vector<32x16xf32>
    %447 = math.log %446 : vector<32x16xf32>
    %448 = vector.broadcast %326 : vector<32x1xf32> to vector<32x16xf32>
    %449 = arith.mulf %448, %447 : vector<32x16xf32>
    %450 = math.exp %449 : vector<32x16xf32>
    %451 = vector.broadcast %437 : vector<32x1xf32> to vector<32x16xf32>
    %452 = arith.subf %450, %451 : vector<32x16xf32>
    %453 = vector.extract_strided_slice %452 {offsets = [0, 0], sizes = [16, 16], strides = [1, 1]} : vector<32x16xf32> to vector<16x16xf32>
    %c0_259 = arith.constant 0 : index
    %c0_260 = arith.constant 0 : index
    %c0_261 = arith.constant 0 : index
    %454 = vector.load %arg3[%c0_259, %c0_260, %c0_261] : memref<2x16x16xf32, #tpu.memory_space<vmem>>, vector<1x16x16xf32>
    %455 = vector.shape_cast %454 : vector<1x16x16xf32> to vector<16x16xf32>
    %456 = vector.shape_cast %453 : vector<16x16xf32> to vector<1x16x16xf32>
    tpu.vector_store %arg3[%c0_259, %c0_260, %c0_261], %456 {strides = array<i32>} : memref<2x16x16xf32, #tpu.memory_space<vmem>>, vector<1x16x16xf32>,
    %457 = vector.extract_strided_slice %452 {offsets = [16, 0], sizes = [16, 16], strides = [1, 1]} : vector<32x16xf32> to vector<16x16xf32>
    %c1_262 = arith.constant 1 : index
    %c0_263 = arith.constant 0 : index
    %c0_264 = arith.constant 0 : index
    %458 = vector.load %arg3[%c1_262, %c0_263, %c0_264] : memref<2x16x16xf32, #tpu.memory_space<vmem>>, vector<1x16x16xf32>
    %459 = vector.shape_cast %458 : vector<1x16x16xf32> to vector<16x16xf32>
    %460 = vector.shape_cast %457 : vector<16x16xf32> to vector<1x16x16xf32>
    tpu.vector_store %arg3[%c1_262, %c0_263, %c0_264], %460 {strides = array<i32>} : memref<2x16x16xf32, #tpu.memory_space<vmem>>, vector<1x16x16xf32>,
    return
  }
}

</mosaic_0001>

<bundles_post_ra>
// kernel: leaf_forward.1
= control target key start
LH: loop header
LB: loop body
LE: loop exit
PB: predicated region body
PF: predicated region fallthrough
CT: control target
= control target key end

     0   :  { %8 = vsyncpa [#allocation8], 0  ;;  %s4111_s0 = inlined_call_operand.vmem [shape: f32[2,1,256], index: 0, kind: input, shape index: {}]   ;;  %s4112_s1 = inlined_call_operand.hbm [shape: f32[48,41], index: 1, kind: input, shape index: {}]   ;;  %s4113_s2 = inlined_call_operand.vmem [shape: f32[16,5], index: 2, kind: input, shape index: {}]   ;;  %s4114_s3 = inlined_call_operand.hbm [shape: f32[2,16,16], index: 3, kind: output, shape index: {}]  }
   0x1   :  { %9 = vsyncpa [#allocation9], 0  ;;  %s2794_s12 = smov [#allocation7]   ;;  %s2746_s16 = scalar_lea.hbm %s4112_s1, 768 }
   0x2   :  { %s17_s13 = sshll.u32 %s2794_s12, 4  ;;  %p2747_p0 = scmp.ne.s32.totalorder %s4112_s1, %s2746_s16  ;;  %s18_s13 = int_to_ptr.vmem [resolvable:$true] %s17_s13 }
   0x3   :  { %p2750_p1 = scmp.lt.u32.totalorder %s2746_s16, %s4112_s1 }
   0x5   :  { %p2752_p2 = pnand %p2750_p1, %p2747_p0 }
   0x7   :  { %2755 = shalt.err (!%p2752_p2)
}
   0x8   :  { %s2756_s21 = scalar_lea.vmem %s18_s13, 768  ;;  %p2761_p4 = scmp.lt.s32.totalorder %s18_s13, %s18_s13 }
   0x9   :  { %p2757_p3 = scmp.ne.s32.totalorder %s18_s13, %s2756_s21  ;;  %p2762_p5 = scmp.lt.s32.totalorder %s2756_s21, %s2756_s21 }
   0xb   :  { %p2763_p6 = por %p2762_p5, %p2761_p4 }
   0xd   :  { %p2764_p7 = pnand %p2763_p6, %p2757_p3 }
   0xf   :  { %2767 = shalt.err (!%p2764_p7)
}
  0x10   :  { %s2795_s22 = smov 128   ;;  %s2796_s23 = smov 8  }
  0x11   :  { %23 = dma.hbm_to_vmem [thread:$0]  %s4112_s1, 768, %s18_s13, [#allocation8], %s2795_s22, %s2795_s22, %s2796_s23  }
  0x12   :  { %2790 = dma.done.wait [#allocation8], 768  }
  0x13   :  { %2791 = vsyncadd [#allocation8], 4294966528  ;;  %v43_v0 = vlaneseq  ;;  %vm29_vm0 = vcmask 1041408   ;;  %v2797_v1 = vmov 1935823168   ;;  %vm30_vm1 = vcmask 1043458  }
  0x14   :  { %v41_v2 = vunpack.c.l.s4 %v2797_v1  ;;  %vm32_vm2 = vcmask 324612   ;;  %vm31_vm3 = vmor %vm30_vm1, %vm29_vm0  ;;  %v2798_v4 = vmov 0.0   ;;  %v35_v7 = vld [vmem:[%s4111_s0] sm:$0x3]  ;;  %v36_v8 = vld [vmem:[%s4111_s0 + $0x2] sm:$0x3] }
  0x15   :  { %v44_v3 = vshrl.u32 %v43_v0, 7  ;;  %1015 = vst [vmem:[#allocation4] sm:$0xff] %v2798_v4  ;;  %1019 = vst [vmem:[#allocation4 + $0x18] sm:$0xff] %v2798_v4  ;;  %877 = vmatprep.mubr.f32.mxu0 %v2798_v4  ;;  %966 = vmatprep.mubr.f32.mxu1 %v2798_v4  ;;  %v39_v9 = vcombine.low %v35_v7, %v36_v8  ;;  %s2799_s29 = smov 20   ;;  %vm53_vm5 = vcmask 1041568   ;;  %vm55_vm7 = vcmask 160772  }
  0x16   :  { %1022 = vst [vmem:[#allocation4 + $0x30] sm:$0xff] %v2798_v4  ;;  %1025 = vst [vmem:[#allocation4 + $0x48] sm:$0xff] %v2798_v4  ;;  %v42_v5 = vunpack.c.0.s8 %v41_v2  ;;  %vm50_vm8 = vcmask 162816   ;;  %vm2905_vm10 = vcmp.lt.s32.totalorder %v43_v0, 256  ;;  %s2800_s0 = smov 126   ;;  %s2801_s30 = smov 127  }
  0x17   :  { %vm33_vm4 = vmor %vm32_vm2, %vm31_vm3  ;;  %s2802_s4 = smov 125   ;;  %s2803_s5 = smov 124   ;;  %vm99_vm11 = vcmask 1031168   ;;  %vm82_vm12 = vcmask 1039360   ;;  %vm116_vm13 = vcmask 1022976   ;;  %vm133_vm14 = vcmask 1014784  }
  0x18   :  { %34 = vst.msk [vmem:[#allocation2] sm:$0x3f] %vm33_vm4, %v2798_v4  ;;  %v45_v6 = vsub.s32 %v42_v5, %v44_v3  ;;  %vm54_vm6 = vmor %vm30_vm1, %vm53_vm5  ;;  %s2804_s6 = smov 123   ;;  %s2805_s7 = smov 122   ;;  %vm150_vm15 = vcmask 1006592   ;;  %vm167_vm0 = vcmask 998400  }
  0x19   :  { %vm56_vm9 = vmor %vm55_vm7, %vm54_vm6  ;;  %s2806_s8 = smov 121   ;;  %s2807_s9 = smov 120   ;;  %vm184_vm1 = vcmask 990208   ;;  %vm201_vm2 = vcmask 982016   ;;  %vm218_vm3 = vcmask 973824   ;;  %vm235_vm4 = vcmask 965632  }
  0x1a   :  { %v46_v10 = vrot.slane %v39_v9, %v45_v6  ;;  %s2808_s10 = smov 119   ;;  %s2809_s11 = smov 118   ;;  %vm252_vm5 = vcmask 957440   ;;  %vm269_vm6 = vcmask 949248   ;;  %vm286_vm7 = vcmask 941056   ;;  %v759_v14 = vld [vmem:[#allocation7] sm:$0xff] }
  0x1b   :  { %s2810_s12 = smov 117   ;;  %s2811_s13 = smov 116  }
  0x1c   :  { %47 = vrot.lane.b32.xlu0 %v46_v10, %s2799_s29  ;;  %s2812_s14 = smov 115   ;;  %s2813_s15 = smov 114  }
  0x1d   :  { %s2814_s16 = smov 113   ;;  %s2815_s17 = smov 112  }
  0x1e   :  { %s2816_s18 = smov 111   ;;  %s2817_s19 = smov 110  }
  0x1f   :  { %s2818_s20 = smov 109   ;;  %s2819_s21 = smov 108  }
  0x20   :  { %s2820_s24 = smov 107   ;;  %s2821_s25 = smov 106  }
  0x21   :  { %s2822_s1 = smov 105   ;;  %s2823_s26 = smov 104  }
  0x22   :  { %s2824_s27 = smov 103   ;;  %s2825_s28 = smov 102  }
  0x23   :  { %s2826_s29 = smov 101  }
  0x8e   :  { %v48_v11 = vpop.permute.xlu0 %47 }
  0x8f   :  { %v49_v12 = vrot.slane %v48_v11, 6 }
  0x91   :  { %v51_v13 = vsel %vm50_vm8, %v49_v12, %v48_v11  ;;  %vm303_vm8 = vcmask 932864  }
  0x92   :  { %57 = vst.msk [vmem:[#allocation2] sm:$0x3f] %vm56_vm9, %v51_v13  ;;  %vm320_vm9 = vcmask 924672  }
  0x99   :  { %v2909_v15 = vld.sshfl [vmem:[#allocation2] sm:$0x77 pattern:$0x75316420] }
  0x9a   :  { %72 = vst.msk [vmem:[#allocation3] ss:$8 sm:$0x3] %vm2905_vm10, %v2909_v15  ;;  %96 = vrot.lane.b32.xlu1 %v2909_v15, %s2800_s0  ;;  %79 = vrot.lane.b32.xlu0 %v2909_v15, %s2801_s30  ;;  %v2920_v16 = vcombine.high %v2909_v15, %v2909_v15 }
  0x9c   :  { %77 = vst.msk [vmem:[#allocation3 + $0x10] ss:$8 sm:$0x3] %vm2905_vm10, %v2920_v16 }
  0x9e   :  { %113 = vrot.lane.b32.xlu1 %v2909_v15, %s2802_s4  ;;  %105 = vrot.lane.b32.xlu0 %v2920_v16, %s2800_s0 }
  0xa2   :  { %130 = vrot.lane.b32.xlu1 %v2909_v15, %s2803_s5  ;;  %122 = vrot.lane.b32.xlu0 %v2920_v16, %s2802_s4 }
  0xa6   :  { %147 = vrot.lane.b32.xlu1 %v2909_v15, %s2804_s6  ;;  %139 = vrot.lane.b32.xlu0 %v2920_v16, %s2803_s5 }
  0xaa   :  { %164 = vrot.lane.b32.xlu1 %v2909_v15, %s2805_s7  ;;  %156 = vrot.lane.b32.xlu0 %v2920_v16, %s2804_s6 }
  0xae   :  { %181 = vrot.lane.b32.xlu1 %v2909_v15, %s2806_s8  ;;  %173 = vrot.lane.b32.xlu0 %v2920_v16, %s2805_s7 }
  0xb2   :  { %198 = vrot.lane.b32.xlu1 %v2909_v15, %s2807_s9  ;;  %190 = vrot.lane.b32.xlu0 %v2920_v16, %s2806_s8 }
  0xb6   :  { %215 = vrot.lane.b32.xlu1 %v2909_v15, %s2808_s10  ;;  %207 = vrot.lane.b32.xlu0 %v2920_v16, %s2807_s9 }
  0xba   :  { %232 = vrot.lane.b32.xlu1 %v2909_v15, %s2809_s11  ;;  %224 = vrot.lane.b32.xlu0 %v2920_v16, %s2808_s10 }
  0xbe   :  { %249 = vrot.lane.b32.xlu1 %v2909_v15, %s2810_s12  ;;  %241 = vrot.lane.b32.xlu0 %v2920_v16, %s2809_s11 }
  0xc2   :  { %266 = vrot.lane.b32.xlu1 %v2909_v15, %s2811_s13  ;;  %258 = vrot.lane.b32.xlu0 %v2920_v16, %s2810_s12 }
  0xc6   :  { %283 = vrot.lane.b32.xlu1 %v2909_v15, %s2812_s14  ;;  %275 = vrot.lane.b32.xlu0 %v2920_v16, %s2811_s13  ;;  %s2827_s13 = smov 100  }
  0xca   :  { %300 = vrot.lane.b32.xlu1 %v2909_v15, %s2813_s15  ;;  %292 = vrot.lane.b32.xlu0 %v2920_v16, %s2812_s14  ;;  %s2828_s14 = smov 99  }
  0xce   :  { %317 = vrot.lane.b32.xlu1 %v2909_v15, %s2814_s16  ;;  %309 = vrot.lane.b32.xlu0 %v2920_v16, %s2813_s15  ;;  %s2829_s15 = smov 98  }
  0xd2   :  { %334 = vrot.lane.b32.xlu1 %v2909_v15, %s2815_s17  ;;  %326 = vrot.lane.b32.xlu0 %v2920_v16, %s2814_s16  ;;  %s2830_s16 = smov 97  }
  0xd6   :  { %351 = vrot.lane.b32.xlu1 %v2909_v15, %s2816_s18  ;;  %343 = vrot.lane.b32.xlu0 %v2920_v16, %s2815_s17 }
  0xda   :  { %368 = vrot.lane.b32.xlu1 %v2909_v15, %s2817_s19  ;;  %360 = vrot.lane.b32.xlu0 %v2920_v16, %s2816_s18  ;;  %s2831_s18 = smov 96  }
  0xde   :  { %385 = vrot.lane.b32.xlu1 %v2909_v15, %s2818_s20  ;;  %377 = vrot.lane.b32.xlu0 %v2920_v16, %s2817_s19  ;;  %s2832_s19 = smov 95  }
  0xe2   :  { %402 = vrot.lane.b32.xlu1 %v2909_v15, %s2819_s21  ;;  %394 = vrot.lane.b32.xlu0 %v2920_v16, %s2818_s20  ;;  %s2833_s20 = smov 94  }
  0xe6   :  { %419 = vrot.lane.b32.xlu1 %v2909_v15, %s2820_s24  ;;  %411 = vrot.lane.b32.xlu0 %v2920_v16, %s2819_s21  ;;  %s2834_s21 = smov 93  }
  0xea   :  { %436 = vrot.lane.b32.xlu1 %v2909_v15, %s2821_s25  ;;  %428 = vrot.lane.b32.xlu0 %v2920_v16, %s2820_s24  ;;  %s2835_s24 = smov 92  }
  0xee   :  { %453 = vrot.lane.b32.xlu1 %v2909_v15, %s2822_s1  ;;  %445 = vrot.lane.b32.xlu0 %v2920_v16, %s2821_s25  ;;  %s2836_s25 = smov 91  }
  0xf2   :  { %470 = vrot.lane.b32.xlu1 %v2909_v15, %s2823_s26  ;;  %462 = vrot.lane.b32.xlu0 %v2920_v16, %s2822_s1  ;;  %s2837_s1 = smov 90  }
  0xf6   :  { %487 = vrot.lane.b32.xlu1 %v2909_v15, %s2824_s27  ;;  %479 = vrot.lane.b32.xlu0 %v2920_v16, %s2823_s26  ;;  %s2838_s26 = smov 89  }
  0xfa   :  { %504 = vrot.lane.b32.xlu1 %v2909_v15, %s2825_s28  ;;  %496 = vrot.lane.b32.xlu0 %v2920_v16, %s2824_s27  ;;  %s2839_s27 = smov 88  }
  0xfe   :  { %521 = vrot.lane.b32.xlu1 %v2909_v15, %s2826_s29  ;;  %513 = vrot.lane.b32.xlu0 %v2920_v16, %s2825_s28  ;;  %s2840_s28 = smov 16  }
 0x102   :  { %538 = vrot.lane.b32.xlu1 %v2909_v15, %s2827_s13  ;;  %530 = vrot.lane.b32.xlu0 %v2920_v16, %s2826_s29  ;;  %s2841_s29 = smov 32  }
 0x106   :  { %555 = vrot.lane.b32.xlu1 %v2909_v15, %s2828_s14  ;;  %547 = vrot.lane.b32.xlu0 %v2920_v16, %s2827_s13  ;;  %s2842_s13 = smov 48  }
 0x10a   :  { %572 = vrot.lane.b32.xlu1 %v2909_v15, %s2829_s15  ;;  %564 = vrot.lane.b32.xlu0 %v2920_v16, %s2828_s14  ;;  %s2843_s14 = smov 64  }
 0x10c   :  { %v97_v17 = vpop.permute.xlu1 %96  ;;  %v80_v18 = vpop.permute.xlu0 %79 }
 0x10d   :  { %v98_v19 = vrot.slane %v97_v17, 1  ;;  %v81_v20 = vrot.slane %v80_v18, 1 }
 0x10e   :  { %589 = vrot.lane.b32.xlu1 %v2909_v15, %s2830_s16  ;;  %581 = vrot.lane.b32.xlu0 %v2920_v16, %s2829_s15  ;;  %s2845_s15 = smov 80  }
 0x10f   :  { %v100_v21 = vsel %vm99_vm11, %v97_v17, %v98_v19  ;;  %v83_v22 = vsel %vm82_vm12, %v80_v18, %v81_v20 }
 0x110   :  { %103 = vst.msk [vmem:[#allocation3 + $0x2] ss:$8 sm:$0x3] %vm2905_vm10, %v100_v21  ;;  %86 = vst.msk [vmem:[#allocation3 + $0x1] ss:$8 sm:$0x3] %vm2905_vm10, %v83_v22  ;;  %v114_v23 = vpop.permute.xlu1 %113  ;;  %v106_v24 = vpop.permute.xlu0 %105 }
 0x111   :  { %v115_v25 = vrot.slane %v114_v23, 1  ;;  %v107_v26 = vrot.slane %v106_v24, 1 }
 0x112   :  { %606 = vrot.lane.b32.xlu1 %v2909_v15, %s2831_s18  ;;  %598 = vrot.lane.b32.xlu0 %v2920_v16, %s2830_s16  ;;  %s2846_s16 = smov 12  }
 0x113   :  { %v117_v27 = vsel %vm116_vm13, %v114_v23, %v115_v25  ;;  %v108_v28 = vsel %vm99_vm11, %v106_v24, %v107_v26  ;;  %vm337_vm11 = vcmask 916480  }
 0x114   :  { %120 = vst.msk [vmem:[#allocation3 + $0x3] ss:$8 sm:$0x3] %vm2905_vm10, %v117_v27  ;;  %111 = vst.msk [vmem:[#allocation3 + $0x12] ss:$8 sm:$0x3] %vm2905_vm10, %v108_v28  ;;  %v131_v29 = vpop.permute.xlu1 %130  ;;  %v123_v30 = vpop.permute.xlu0 %122 }
 0x115   :  { %v132_v31 = vrot.slane %v131_v29, 1  ;;  %v124_v32 = vrot.slane %v123_v30, 1 }
 0x116   :  { %623 = vrot.lane.b32.xlu1 %v2909_v15, %s2832_s19  ;;  %615 = vrot.lane.b32.xlu0 %v2920_v16, %s2831_s18 }
 0x117   :  { %v134_v33 = vsel %vm133_vm14, %v131_v29, %v132_v31  ;;  %v125_v34 = vsel %vm116_vm13, %v123_v30, %v124_v32  ;;  %vm354_vm13 = vcmask 908288  }
 0x118   :  { %137 = vst.msk [vmem:[#allocation3 + $0x4] ss:$8 sm:$0x3] %vm2905_vm10, %v134_v33  ;;  %128 = vst.msk [vmem:[#allocation3 + $0x13] ss:$8 sm:$0x3] %vm2905_vm10, %v125_v34  ;;  %v148_v35 = vpop.permute.xlu1 %147  ;;  %v140_v36 = vpop.permute.xlu0 %139 }
 0x119   :  { %v149_v37 = vrot.slane %v148_v35, 1  ;;  %v141_v38 = vrot.slane %v140_v36, 1 }
 0x11a   :  { %640 = vrot.lane.b32.xlu1 %v2909_v15, %s2833_s20  ;;  %632 = vrot.lane.b32.xlu0 %v2920_v16, %s2832_s19 }
 0x11b   :  { %v151_v39 = vsel %vm150_vm15, %v148_v35, %v149_v37  ;;  %v142_v40 = vsel %vm133_vm14, %v140_v36, %v141_v38  ;;  %vm371_vm14 = vcmask 900096  }
 0x11c   :  { %154 = vst.msk [vmem:[#allocation3 + $0x5] ss:$8 sm:$0x3] %vm2905_vm10, %v151_v39  ;;  %145 = vst.msk [vmem:[#allocation3 + $0x14] ss:$8 sm:$0x3] %vm2905_vm10, %v142_v40  ;;  %v165_v41 = vpop.permute.xlu1 %164  ;;  %v157_v42 = vpop.permute.xlu0 %156 }
 0x11d   :  { %v166_v43 = vrot.slane %v165_v41, 1  ;;  %v158_v44 = vrot.slane %v157_v42, 1 }
 0x11e   :  { %657 = vrot.lane.b32.xlu1 %v2909_v15, %s2834_s21  ;;  %649 = vrot.lane.b32.xlu0 %v2920_v16, %s2833_s20 }
 0x11f   :  { %v168_v45 = vsel %vm167_vm0, %v165_v41, %v166_v43  ;;  %v159_v46 = vsel %vm150_vm15, %v157_v42, %v158_v44  ;;  %v3107_v42 = vld [vmem:[#allocation7 + $0x28] sm:$0xff]  ;;  %v3109_v43 = vld [vmem:[#allocation7 + $0x20] sm:$0xff]  ;;  %vm388_vm15 = vcmask 891904  }
 0x120   :  { %171 = vst.msk [vmem:[#allocation3 + $0x6] ss:$8 sm:$0x3] %vm2905_vm10, %v168_v45  ;;  %162 = vst.msk [vmem:[#allocation3 + $0x15] ss:$8 sm:$0x3] %vm2905_vm10, %v159_v46  ;;  %v182_v47 = vpop.permute.xlu1 %181  ;;  %v174_v48 = vpop.permute.xlu0 %173 }
 0x121   :  { %v183_v49 = vrot.slane %v182_v47, 1  ;;  %v175_v50 = vrot.slane %v174_v48, 1 }
 0x122   :  { %674 = vrot.lane.b32.xlu1 %v2909_v15, %s2835_s24  ;;  %666 = vrot.lane.b32.xlu0 %v2920_v16, %s2834_s21  ;;  %s2849_s21 = smov 4  }
 0x123   :  { %v185_v51 = vsel %vm184_vm1, %v182_v47, %v183_v49  ;;  %v176_v52 = vsel %vm167_vm0, %v174_v48, %v175_v50  ;;  %vm405_vm0 = vcmask 883712  }
 0x124   :  { %188 = vst.msk [vmem:[#allocation3 + $0x7] ss:$8 sm:$0x3] %vm2905_vm10, %v185_v51  ;;  %179 = vst.msk [vmem:[#allocation3 + $0x16] ss:$8 sm:$0x3] %vm2905_vm10, %v176_v52  ;;  %v199_v53 = vpop.permute.xlu1 %198  ;;  %v191_v54 = vpop.permute.xlu0 %190 }
 0x125   :  { %v200_v55 = vrot.slane %v199_v53, 1  ;;  %v192_v56 = vrot.slane %v191_v54, 1 }
 0x126   :  { %683 = vrot.lane.b32.xlu0 %v2920_v16, %s2835_s24  ;;  %88 = vrot.lane.b32.xlu1 %v2920_v16, %s2801_s30  ;;  %s2850_s24 = smov 2  }
 0x127   :  { %v202_v57 = vsel %vm201_vm2, %v199_v53, %v200_v55  ;;  %v193_v58 = vsel %vm184_vm1, %v191_v54, %v192_v56  ;;  %vm422_vm1 = vcmask 875520  }
 0x128   :  { %205 = vst.msk [vmem:[#allocation3 + $0x20] ss:$8 sm:$0x3] %vm2905_vm10, %v202_v57  ;;  %196 = vst.msk [vmem:[#allocation3 + $0x17] ss:$8 sm:$0x3] %vm2905_vm10, %v193_v58  ;;  %v216_v59 = vpop.permute.xlu1 %215  ;;  %v208_v60 = vpop.permute.xlu0 %207 }
 0x129   :  { %v217_v61 = vrot.slane %v216_v59, 1  ;;  %v209_v62 = vrot.slane %v208_v60, 1 }
 0x12a   :  { %700 = vrot.lane.b32.xlu0 %v2920_v16, %s2836_s25  ;;  %691 = vrot.lane.b32.xlu1 %v2909_v15, %s2836_s25  ;;  %s2851_s25 = smov 1  }
 0x12b   :  { %v219_v63 = vsel %vm218_vm3, %v216_v59, %v217_v61  ;;  %v210_v0 = vsel %vm201_vm2, %v208_v60, %v209_v62  ;;  %v764_v50 = vld [vmem:[#allocation3 + $0x8] sm:$0xff]  ;;  %v763_v54 = vld [vmem:[#allocation3] sm:$0xff]  ;;  %vm439_vm2 = vcmask 867328  }
 0x12c   :  { %222 = vst.msk [vmem:[#allocation3 + $0x21] ss:$8 sm:$0x3] %vm2905_vm10, %v219_v63  ;;  %213 = vst.msk [vmem:[#allocation3 + $0x30] ss:$8 sm:$0x3] %vm2905_vm10, %v210_v0  ;;  %v233_v1 = vpop.permute.xlu1 %232  ;;  %v225_v2 = vpop.permute.xlu0 %224 }
 0x12d   :  { %v234_v3 = vrot.slane %v233_v1, 1  ;;  %v226_v4 = vrot.slane %v225_v2, 1 }
 0x12e   :  { %717 = vrot.lane.b32.xlu0 %v2920_v16, %s2837_s1  ;;  %708 = vrot.lane.b32.xlu1 %v2909_v15, %s2837_s1 }
 0x12f   :  { %v236_v5 = vsel %vm235_vm4, %v233_v1, %v234_v3  ;;  %v227_v6 = vsel %vm218_vm3, %v225_v2, %v226_v4  ;;  %vm456_vm3 = vcmask 859136  }
 0x130   :  { %239 = vst.msk [vmem:[#allocation3 + $0x22] ss:$8 sm:$0x3] %vm2905_vm10, %v236_v5  ;;  %230 = vst.msk [vmem:[#allocation3 + $0x31] ss:$8 sm:$0x3] %vm2905_vm10, %v227_v6  ;;  %v250_v7 = vpop.permute.xlu1 %249  ;;  %v242_v8 = vpop.permute.xlu0 %241 }
 0x131   :  { %v251_v9 = vrot.slane %v250_v7, 1  ;;  %v243_v10 = vrot.slane %v242_v8, 1 }
 0x132   :  { %734 = vrot.lane.b32.xlu0 %v2920_v16, %s2838_s26  ;;  %725 = vrot.lane.b32.xlu1 %v2909_v15, %s2838_s26 }
 0x133   :  { %v253_v11 = vsel %vm252_vm5, %v250_v7, %v251_v9  ;;  %v244_v12 = vsel %vm235_vm4, %v242_v8, %v243_v10  ;;  %vm473_vm4 = vcmask 850944  }
 0x134   :  { %256 = vst.msk [vmem:[#allocation3 + $0x23] ss:$8 sm:$0x3] %vm2905_vm10, %v253_v11  ;;  %247 = vst.msk [vmem:[#allocation3 + $0x32] ss:$8 sm:$0x3] %vm2905_vm10, %v244_v12  ;;  %v267_v13 = vpop.permute.xlu1 %266  ;;  %v259_v17 = vpop.permute.xlu0 %258 }
 0x135   :  { %v268_v18 = vrot.slane %v267_v13, 1  ;;  %v260_v19 = vrot.slane %v259_v17, 1 }
 0x136   :  { %751 = vrot.lane.b32.xlu0 %v2920_v16, %s2839_s27  ;;  %742 = vrot.lane.b32.xlu1 %v2909_v15, %s2839_s27 }
 0x137   :  { %v270_v20 = vsel %vm269_vm6, %v267_v13, %v268_v18  ;;  %v261_v21 = vsel %vm252_vm5, %v259_v17, %v260_v19  ;;  %vm490_vm5 = vcmask 842752  }
 0x138   :  { %273 = vst.msk [vmem:[#allocation3 + $0x24] ss:$8 sm:$0x3] %vm2905_vm10, %v270_v20  ;;  %264 = vst.msk [vmem:[#allocation3 + $0x33] ss:$8 sm:$0x3] %vm2905_vm10, %v261_v21  ;;  %v284_v22 = vpop.permute.xlu1 %283  ;;  %v276_v23 = vpop.permute.xlu0 %275 }
 0x139   :  { %v285_v24 = vrot.slane %v284_v22, 1  ;;  %v277_v25 = vrot.slane %v276_v23, 1 }
 0x13a   :  { %1123 = vrot.lane.b32.xlu1 %v3107_v42, %s2840_s28  ;;  %1121 = vrot.lane.b32.xlu0 %v3109_v43, %s2840_s28 }
 0x13b   :  { %v287_v26 = vsel %vm286_vm7, %v284_v22, %v285_v24  ;;  %v278_v16 = vsel %vm269_vm6, %v276_v23, %v277_v25  ;;  %vm507_vm6 = vcmask 834560  }
 0x13c   :  { %290 = vst.msk [vmem:[#allocation3 + $0x25] ss:$8 sm:$0x3] %vm2905_vm10, %v287_v26  ;;  %281 = vst.msk [vmem:[#allocation3 + $0x34] ss:$8 sm:$0x3] %vm2905_vm10, %v278_v16  ;;  %v301_v15 = vpop.permute.xlu1 %300  ;;  %v293_v27 = vpop.permute.xlu0 %292 }
 0x13d   :  { %v302_v28 = vrot.slane %v301_v15, 1  ;;  %v294_v29 = vrot.slane %v293_v27, 1 }
 0x13e   :  { %1166 = vrot.lane.b32.xlu1 %v3107_v42, %s2841_s29  ;;  %1164 = vrot.lane.b32.xlu0 %v3109_v43, %s2841_s29 }
 0x13f   :  { %v304_v30 = vsel %vm303_vm8, %v301_v15, %v302_v28  ;;  %v295_v31 = vsel %vm286_vm7, %v293_v27, %v294_v29  ;;  %vm524_vm7 = vcmask 826368  }
 0x140   :  { %307 = vst.msk [vmem:[#allocation3 + $0x26] ss:$8 sm:$0x3] %vm2905_vm10, %v304_v30  ;;  %298 = vst.msk [vmem:[#allocation3 + $0x35] ss:$8 sm:$0x3] %vm2905_vm10, %v295_v31  ;;  %v318_v32 = vpop.permute.xlu1 %317  ;;  %v310_v33 = vpop.permute.xlu0 %309 }
 0x141   :  { %v319_v34 = vrot.slane %v318_v32, 1  ;;  %v311_v35 = vrot.slane %v310_v33, 1 }
 0x142   :  { %1209 = vrot.lane.b32.xlu1 %v3107_v42, %s2842_s13  ;;  %1207 = vrot.lane.b32.xlu0 %v3109_v43, %s2842_s13 }
 0x143   :  { %v321_v36 = vsel %vm320_vm9, %v318_v32, %v319_v34  ;;  %v312_v37 = vsel %vm303_vm8, %v310_v33, %v311_v35  ;;  %vm541_vm8 = vcmask 818176  }
 0x144   :  { %324 = vst.msk [vmem:[#allocation3 + $0x27] ss:$8 sm:$0x3] %vm2905_vm10, %v321_v36  ;;  %315 = vst.msk [vmem:[#allocation3 + $0x36] ss:$8 sm:$0x3] %vm2905_vm10, %v312_v37  ;;  %v335_v38 = vpop.permute.xlu1 %334  ;;  %v327_v39 = vpop.permute.xlu0 %326 }
 0x145   :  { %v336_v40 = vrot.slane %v335_v38, 1  ;;  %v328_v41 = vrot.slane %v327_v39, 1 }
 0x146   :  { %1252 = vrot.lane.b32.xlu1 %v3107_v42, %s2843_s14  ;;  %1250 = vrot.lane.b32.xlu0 %v3109_v43, %s2843_s14 }
 0x147   :  { %v338_v44 = vsel %vm337_vm11, %v335_v38, %v336_v40  ;;  %v329_v45 = vsel %vm320_vm9, %v327_v39, %v328_v41  ;;  %vm558_vm9 = vcmask 809984  }
 0x148   :  { %341 = vst.msk [vmem:[#allocation3 + $0x40] ss:$8 sm:$0x3] %vm2905_vm10, %v338_v44  ;;  %332 = vst.msk [vmem:[#allocation3 + $0x37] ss:$8 sm:$0x3] %vm2905_vm10, %v329_v45  ;;  %v352_v46 = vpop.permute.xlu1 %351  ;;  %v344_v47 = vpop.permute.xlu0 %343 }
 0x149   :  { %v353_v48 = vrot.slane %v352_v46, 1  ;;  %v345_v49 = vrot.slane %v344_v47, 1 }
 0x14a   :  { %1295 = vrot.lane.b32.xlu1 %v3107_v42, %s2845_s15  ;;  %1293 = vrot.lane.b32.xlu0 %v3109_v43, %s2845_s15 }
 0x14b   :  { %v355_v51 = vsel %vm354_vm13, %v352_v46, %v353_v48  ;;  %v346_v52 = vsel %vm337_vm11, %v344_v47, %v345_v49  ;;  %v768_v53 = vld [vmem:[#allocation3 + $0x28] sm:$0xff]  ;;  %v767_v55 = vld [vmem:[#allocation3 + $0x20] sm:$0xff]  ;;  %vm575_vm11 = vcmask 801792  }
 0x14c   :  { %358 = vst.msk [vmem:[#allocation3 + $0x41] ss:$8 sm:$0x3] %vm2905_vm10, %v355_v51  ;;  %349 = vst.msk [vmem:[#allocation3 + $0x50] ss:$8 sm:$0x3] %vm2905_vm10, %v346_v52  ;;  %v369_v56 = vpop.permute.xlu1 %368  ;;  %v361_v57 = vpop.permute.xlu0 %360  ;;  %v2589_v58 = vpack.c.bf16 %v768_v53, %v764_v50  ;;  %v2591_v59 = vpack.c.bf16 %v767_v55, %v763_v54 }
 0x14d   :  { %v370_v60 = vrot.slane %v369_v56, 1  ;;  %v362_v61 = vrot.slane %v361_v57, 1 }
 0x14e   :  { %2590 = vmatprep.subr.bf16.mxu0 %v2589_v58  ;;  %1338 = vrot.lane.b32.xlu1 %v3107_v42, %s2831_s18 }
 0x14f   :  { %v372_v62 = vsel %vm371_vm14, %v369_v56, %v370_v60  ;;  %v363_v63 = vsel %vm354_vm13, %v361_v57, %v362_v61  ;;  %2592 = vmatpush1.bf16.msra.mxu0 %v2591_v59  ;;  %vm592_vm13 = vcmask 793600   ;;  %1336 = vrot.lane.b32.xlu0 %v3109_v43, %s2831_s18 }
 0x150   :  { %375 = vst.msk [vmem:[#allocation3 + $0x42] ss:$8 sm:$0x3] %vm2905_vm10, %v372_v62  ;;  %366 = vst.msk [vmem:[#allocation3 + $0x51] ss:$8 sm:$0x3] %vm2905_vm10, %v363_v63  ;;  %v386_v0 = vpop.permute.xlu1 %385  ;;  %v378_v1 = vpop.permute.xlu0 %377 }
 0x151   :  { %v387_v2 = vrot.slane %v386_v0, 1  ;;  %v379_v3 = vrot.slane %v378_v1, 1 }
 0x152   :  { %1402 = vrot.lane.b32.xlu1 %v3107_v42, %s2815_s17 }
 0x153   :  { %v389_v4 = vsel %vm388_vm15, %v386_v0, %v387_v2  ;;  %v380_v5 = vsel %vm371_vm14, %v378_v1, %v379_v3  ;;  %vm609_vm14 = vcmask 785408   ;;  %1400 = vrot.lane.b32.xlu0 %v3109_v43, %s2815_s17 }
 0x154   :  { %392 = vst.msk [vmem:[#allocation3 + $0x43] ss:$8 sm:$0x3] %vm2905_vm10, %v389_v4  ;;  %383 = vst.msk [vmem:[#allocation3 + $0x52] ss:$8 sm:$0x3] %vm2905_vm10, %v380_v5  ;;  %v403_v6 = vpop.permute.xlu1 %402  ;;  %v395_v7 = vpop.permute.xlu0 %394 }
 0x155   :  { %v404_v8 = vrot.slane %v403_v6, 1  ;;  %v396_v9 = vrot.slane %v395_v7, 1 }
 0x157   :  { %v406_v10 = vsel %vm405_vm0, %v403_v6, %v404_v8  ;;  %v397_v11 = vsel %vm388_vm15, %v395_v7, %v396_v9  ;;  %vm626_vm15 = vcmask 777216  }
 0x158   :  { %409 = vst.msk [vmem:[#allocation3 + $0x44] ss:$8 sm:$0x3] %vm2905_vm10, %v406_v10  ;;  %400 = vst.msk [vmem:[#allocation3 + $0x53] ss:$8 sm:$0x3] %vm2905_vm10, %v397_v11  ;;  %v420_v12 = vpop.permute.xlu1 %419  ;;  %v412_v13 = vpop.permute.xlu0 %411 }
 0x159   :  { %v421_v17 = vrot.slane %v420_v12, 1  ;;  %v413_v18 = vrot.slane %v412_v13, 1 }
 0x15b   :  { %v423_v19 = vsel %vm422_vm1, %v420_v12, %v421_v17  ;;  %v414_v20 = vsel %vm405_vm0, %v412_v13, %v413_v18  ;;  %vm643_vm0 = vcmask 769024  }
 0x15c   :  { %426 = vst.msk [vmem:[#allocation3 + $0x45] ss:$8 sm:$0x3] %vm2905_vm10, %v423_v19  ;;  %417 = vst.msk [vmem:[#allocation3 + $0x54] ss:$8 sm:$0x3] %vm2905_vm10, %v414_v20  ;;  %v437_v21 = vpop.permute.xlu1 %436  ;;  %v429_v22 = vpop.permute.xlu0 %428 }
 0x15d   :  { %v438_v23 = vrot.slane %v437_v21, 1  ;;  %v430_v24 = vrot.slane %v429_v22, 1 }
 0x15f   :  { %v440_v25 = vsel %vm439_vm2, %v437_v21, %v438_v23  ;;  %v431_v26 = vsel %vm422_vm1, %v429_v22, %v430_v24  ;;  %vm660_vm1 = vcmask 760832  }
 0x160   :  { %443 = vst.msk [vmem:[#allocation3 + $0x46] ss:$8 sm:$0x3] %vm2905_vm10, %v440_v25  ;;  %434 = vst.msk [vmem:[#allocation3 + $0x55] ss:$8 sm:$0x3] %vm2905_vm10, %v431_v26  ;;  %v454_v16 = vpop.permute.xlu1 %453  ;;  %v446_v15 = vpop.permute.xlu0 %445 }
 0x161   :  { %v455_v27 = vrot.slane %v454_v16, 1  ;;  %v447_v28 = vrot.slane %v446_v15, 1 }
 0x163   :  { %v457_v29 = vsel %vm456_vm3, %v454_v16, %v455_v27  ;;  %v448_v30 = vsel %vm439_vm2, %v446_v15, %v447_v28  ;;  %vm677_vm2 = vcmask 752640  }
 0x164   :  { %460 = vst.msk [vmem:[#allocation3 + $0x47] ss:$8 sm:$0x3] %vm2905_vm10, %v457_v29  ;;  %451 = vst.msk [vmem:[#allocation3 + $0x56] ss:$8 sm:$0x3] %vm2905_vm10, %v448_v30  ;;  %v471_v31 = vpop.permute.xlu1 %470  ;;  %v463_v32 = vpop.permute.xlu0 %462 }
 0x165   :  { %v472_v33 = vrot.slane %v471_v31, 1  ;;  %v464_v34 = vrot.slane %v463_v32, 1 }
 0x167   :  { %v474_v35 = vsel %vm473_vm4, %v471_v31, %v472_v33  ;;  %v465_v36 = vsel %vm456_vm3, %v463_v32, %v464_v34  ;;  %vm694_vm3 = vcmask 744448  }
 0x168   :  { %477 = vst.msk [vmem:[#allocation3 + $0x60] ss:$8 sm:$0x3] %vm2905_vm10, %v474_v35  ;;  %468 = vst.msk [vmem:[#allocation3 + $0x57] ss:$8 sm:$0x3] %vm2905_vm10, %v465_v36  ;;  %v488_v37 = vpop.permute.xlu1 %487  ;;  %v480_v38 = vpop.permute.xlu0 %479 }
 0x169   :  { %v489_v39 = vrot.slane %v488_v37, 1  ;;  %v481_v40 = vrot.slane %v480_v38, 1 }
 0x16b   :  { %v491_v41 = vsel %vm490_vm5, %v488_v37, %v489_v39  ;;  %v482_v44 = vsel %vm473_vm4, %v480_v38, %v481_v40  ;;  %v772_v28 = vld [vmem:[#allocation3 + $0x48] sm:$0xff]  ;;  %v771_v32 = vld [vmem:[#allocation3 + $0x40] sm:$0xff]  ;;  %vm728_vm4 = vcmask 728064  }
 0x16c   :  { %494 = vst.msk [vmem:[#allocation3 + $0x61] ss:$8 sm:$0x3] %vm2905_vm10, %v491_v41  ;;  %485 = vst.msk [vmem:[#allocation3 + $0x70] ss:$8 sm:$0x3] %vm2905_vm10, %v482_v44  ;;  %v505_v45 = vpop.permute.xlu1 %504  ;;  %v497_v46 = vpop.permute.xlu0 %496 }
 0x16d   :  { %v506_v47 = vrot.slane %v505_v45, 1  ;;  %v498_v48 = vrot.slane %v497_v46, 1 }
 0x16f   :  { %v508_v49 = vsel %vm507_vm6, %v505_v45, %v506_v47  ;;  %v499_v50 = vsel %vm490_vm5, %v497_v46, %v498_v48  ;;  %vm745_vm5 = vcmask 719872  }
 0x170   :  { %511 = vst.msk [vmem:[#allocation3 + $0x62] ss:$8 sm:$0x3] %vm2905_vm10, %v508_v49  ;;  %502 = vst.msk [vmem:[#allocation3 + $0x71] ss:$8 sm:$0x3] %vm2905_vm10, %v499_v50  ;;  %v522_v51 = vpop.permute.xlu1 %521  ;;  %v514_v52 = vpop.permute.xlu0 %513 }
 0x171   :  { %v523_v53 = vrot.slane %v522_v51, 1  ;;  %v515_v54 = vrot.slane %v514_v52, 1 }
 0x173   :  { %v525_v55 = vsel %vm524_vm7, %v522_v51, %v523_v53  ;;  %v516_v56 = vsel %vm507_vm6, %v514_v52, %v515_v54  ;;  %vm800_vm6 = vcmask 1040384  }
 0x174   :  { %528 = vst.msk [vmem:[#allocation3 + $0x63] ss:$8 sm:$0x3] %vm2905_vm10, %v525_v55  ;;  %519 = vst.msk [vmem:[#allocation3 + $0x72] ss:$8 sm:$0x3] %vm2905_vm10, %v516_v56  ;;  %v539_v57 = vpop.permute.xlu1 %538  ;;  %v531_v58 = vpop.permute.xlu0 %530 }
 0x175   :  { %v540_v59 = vrot.slane %v539_v57, 1  ;;  %v532_v60 = vrot.slane %v531_v58, 1 }
 0x177   :  { %v542_v61 = vsel %vm541_vm8, %v539_v57, %v540_v59  ;;  %v533_v62 = vsel %vm524_vm7, %v531_v58, %v532_v60  ;;  %vm2844_vm7 = vmmov 1  }
 0x178   :  { %545 = vst.msk [vmem:[#allocation3 + $0x64] ss:$8 sm:$0x3] %vm2905_vm10, %v542_v61  ;;  %536 = vst.msk [vmem:[#allocation3 + $0x73] ss:$8 sm:$0x3] %vm2905_vm10, %v533_v62  ;;  %v556_v63 = vpop.permute.xlu1 %555  ;;  %v548_v0 = vpop.permute.xlu0 %547 }
 0x179   :  { %v557_v1 = vrot.slane %v556_v63, 1  ;;  %v549_v2 = vrot.slane %v548_v0, 1 }
 0x17b   :  { %v559_v3 = vsel %vm558_vm9, %v556_v63, %v557_v1  ;;  %v550_v4 = vsel %vm541_vm8, %v548_v0, %v549_v2  ;;  %vm3249_vm8 = vmpackc.low %vm800_vm6, %vm2844_vm7  ;;  %vm1459_vm6 = vcmask 64568   ;;  %vm1480_vm7 = vcmask 72768  }
 0x17c   :  { %562 = vst.msk [vmem:[#allocation3 + $0x65] ss:$8 sm:$0x3] %vm2905_vm10, %v559_v3  ;;  %553 = vst.msk [vmem:[#allocation3 + $0x74] ss:$8 sm:$0x3] %vm2905_vm10, %v550_v4  ;;  %v573_v5 = vpop.permute.xlu1 %572  ;;  %v565_v6 = vpop.permute.xlu0 %564 }
 0x17d   :  { %v574_v7 = vrot.slane %v573_v5, 1  ;;  %v566_v8 = vrot.slane %v565_v6, 1 }
 0x17f   :  { %v576_v9 = vsel %vm575_vm11, %v573_v5, %v574_v7  ;;  %v567_v10 = vsel %vm558_vm9, %v565_v6, %v566_v8  ;;  %v770_v8 = vld [vmem:[#allocation3 + $0x38] sm:$0xff]  ;;  %vm1017_vm9 = vcmask 203776  }
 0x180   :  { %579 = vst.msk [vmem:[#allocation3 + $0x66] ss:$8 sm:$0x3] %vm2905_vm10, %v576_v9  ;;  %570 = vst.msk [vmem:[#allocation3 + $0x75] ss:$8 sm:$0x3] %vm2905_vm10, %v567_v10  ;;  %v590_v11 = vpop.permute.xlu1 %589  ;;  %v582_v12 = vpop.permute.xlu0 %581 }
 0x181   :  { %v591_v13 = vrot.slane %v590_v11, 1  ;;  %v583_v17 = vrot.slane %v582_v12, 1  ;;  %v769_v9 = vld [vmem:[#allocation3 + $0x30] sm:$0xff] }
 0x183   :  { %v593_v18 = vsel %vm592_vm13, %v590_v11, %v591_v13  ;;  %v584_v19 = vsel %vm575_vm11, %v582_v12, %v583_v17  ;;  %vm1049_vm11 = vcmask 1047648  }
 0x184   :  { %596 = vst.msk [vmem:[#allocation3 + $0x67] ss:$8 sm:$0x3] %vm2905_vm10, %v593_v18  ;;  %587 = vst.msk [vmem:[#allocation3 + $0x76] ss:$8 sm:$0x3] %vm2905_vm10, %v584_v19  ;;  %v607_v20 = vpop.permute.xlu1 %606  ;;  %v599_v21 = vpop.permute.xlu0 %598 }
 0x185   :  { %v608_v22 = vrot.slane %v607_v20, 1  ;;  %v600_v23 = vrot.slane %v599_v21, 1 }
 0x187   :  { %v610_v24 = vsel %vm609_vm14, %v607_v20, %v608_v22  ;;  %v601_v25 = vsel %vm592_vm13, %v599_v21, %v600_v23  ;;  %vm1040_vm13 = vcmask 97280  }
 0x188   :  { %613 = vst.msk [vmem:[#allocation3 + $0x80] ss:$8 sm:$0x3] %vm2905_vm10, %v610_v24  ;;  %604 = vst.msk [vmem:[#allocation3 + $0x77] ss:$8 sm:$0x3] %vm2905_vm10, %v601_v25  ;;  %v624_v26 = vpop.permute.xlu1 %623  ;;  %v616_v16 = vpop.permute.xlu0 %615 }
 0x189   :  { %v625_v15 = vrot.slane %v624_v26, 1  ;;  %v617_v27 = vrot.slane %v616_v16, 1  ;;  %v774_v24 = vld [vmem:[#allocation3 + $0x58] sm:$0xff] }
 0x18b   :  { %v627_v29 = vsel %vm626_vm15, %v624_v26, %v625_v15  ;;  %v618_v30 = vsel %vm609_vm14, %v616_v16, %v617_v27  ;;  %v776_v31 = vld [vmem:[#allocation3 + $0x68] sm:$0xff]  ;;  %v775_v33 = vld [vmem:[#allocation3 + $0x60] sm:$0xff]  ;;  %vm1114_vm14 = vcmask 7168  }
 0x18c   :  { %630 = vst.msk [vmem:[#allocation3 + $0x81] ss:$8 sm:$0x3] %vm2905_vm10, %v627_v29  ;;  %621 = vst.msk [vmem:[#allocation3 + $0x90] ss:$8 sm:$0x3] %vm2905_vm10, %v618_v30  ;;  %v641_v34 = vpop.permute.xlu1 %640  ;;  %v633_v35 = vpop.permute.xlu0 %632  ;;  %v2593_v36 = vpack.c.bf16 %v776_v31, %v772_v28  ;;  %v2595_v37 = vpack.c.bf16 %v775_v33, %v771_v32 }
 0x18d   :  { %v642_v38 = vrot.slane %v641_v34, 1  ;;  %v634_v39 = vrot.slane %v633_v35, 1  ;;  %v773_v29 = vld [vmem:[#allocation3 + $0x50] sm:$0xff] }
 0x18e   :  { %2594 = vmatprep.subr.bf16.mxu0 %v2593_v36 }
 0x18f   :  { %v644_v40 = vsel %vm643_vm0, %v641_v34, %v642_v38  ;;  %v635_v41 = vsel %vm626_vm15, %v633_v35, %v634_v39  ;;  %2596 = vmatpush1.bf16.msra.mxu0 %v2595_v37  ;;  %v778_v17 = vld [vmem:[#allocation3 + $0x78] sm:$0xff]  ;;  %v777_v26 = vld [vmem:[#allocation3 + $0x70] sm:$0xff]  ;;  %vm1374_vm15 = vcmask 261120  }
 0x190   :  { %647 = vst.msk [vmem:[#allocation3 + $0x82] ss:$8 sm:$0x3] %vm2905_vm10, %v644_v40  ;;  %638 = vst.msk [vmem:[#allocation3 + $0x91] ss:$8 sm:$0x3] %vm2905_vm10, %v635_v41  ;;  %v658_v44 = vpop.permute.xlu1 %657  ;;  %v650_v45 = vpop.permute.xlu0 %649  ;;  %v2607_v25 = vpack.c.bf16 %v778_v17, %v774_v24  ;;  %v2609_v32 = vpack.c.bf16 %v777_v26, %v773_v29 }
 0x191   :  { %v659_v46 = vrot.slane %v658_v44, 1  ;;  %v651_v47 = vrot.slane %v650_v45, 1 }
 0x193   :  { %v661_v48 = vsel %vm660_vm1, %v658_v44, %v659_v46  ;;  %v652_v49 = vsel %vm643_vm0, %v650_v45, %v651_v47  ;;  %vm4115_vm0 = vcmask 130048  }
 0x194   :  { %664 = vst.msk [vmem:[#allocation3 + $0x83] ss:$8 sm:$0x3] %vm2905_vm10, %v661_v48  ;;  %655 = vst.msk [vmem:[#allocation3 + $0x92] ss:$8 sm:$0x3] %vm2905_vm10, %v652_v49  ;;  %v675_v50 = vpop.permute.xlu1 %674  ;;  %v667_v51 = vpop.permute.xlu0 %666 }
 0x195   :  { %v676_v52 = vrot.slane %v675_v50, 1  ;;  %v668_v53 = vrot.slane %v667_v51, 1 }
 0x197   :  { %v678_v54 = vsel %vm677_vm2, %v675_v50, %v676_v52  ;;  %v669_v55 = vsel %vm660_vm1, %v667_v51, %v668_v53  ;;  %v2744_v50 = vld [vmem:[#allocation4] sm:$0xff]  ;;  %v760_v51 = vld [vmem:[#allocation7 + $0x8] sm:$0xff]  ;;  %v761_v52 = vld [vmem:[#allocation7 + $0x10] sm:$0xff]  ;;  %vm1159_vm1 = vcmask 15368  }
 0x198   :  { %681 = vst.msk [vmem:[#allocation3 + $0x84] ss:$8 sm:$0x3] %vm2905_vm10, %v678_v54  ;;  %672 = vst.msk [vmem:[#allocation3 + $0x93] ss:$8 sm:$0x3] %vm2905_vm10, %v669_v55  ;;  %v684_v56 = vpop.permute.xlu0 %683  ;;  %v89_v57 = vpop.permute.xlu1 %88 }
 0x199   :  { %v685_v58 = vrot.slane %v684_v56, 1  ;;  %v90_v59 = vrot.slane %v89_v57, 1  ;;  %v762_v53 = vld [vmem:[#allocation7 + $0x18] sm:$0xff]  ;;  %1018 = vst.msk [vmem:[#allocation4 + $0x10] sm:$0xff] %vm1017_vm9, %v2744_v50  ;;  %1021 = vst.msk [vmem:[#allocation4 + $0x28] sm:$0xff] %vm1017_vm9, %v2744_v50 }
 0x19a   :  { %1024 = vst.msk [vmem:[#allocation4 + $0x40] sm:$0xff] %vm1017_vm9, %v2744_v50  ;;  %1027 = vst.msk [vmem:[#allocation4 + $0x58] sm:$0xff] %vm1017_vm9, %v2744_v50  ;;  %vm1554_vm9 = vcmask 89168  }
 0x19b   :  { %v686_v60 = vsel %vm677_vm2, %v684_v56, %v685_v58  ;;  %v91_v61 = vsel %vm82_vm12, %v89_v57, %v90_v59  ;;  %vm711_vm12 = vcmask 736256   ;;  %vm1202_vm2 = vcmask 23568  }
 0x19c   :  { %689 = vst.msk [vmem:[#allocation3 + $0x94] ss:$8 sm:$0x3] %vm2905_vm10, %v686_v60  ;;  %94 = vst.msk [vmem:[#allocation3 + $0x11] ss:$8 sm:$0x3] %vm2905_vm10, %v91_v61  ;;  %v701_v62 = vpop.permute.xlu0 %700  ;;  %v692_v63 = vpop.permute.xlu1 %691 }
 0x19d   :  { %v702_v0 = vrot.slane %v701_v62, 1  ;;  %v693_v1 = vrot.slane %v692_v63, 1 }
 0x19f   :  { %v703_v2 = vsel %vm694_vm3, %v701_v62, %v702_v0  ;;  %v695_v3 = vsel %vm694_vm3, %v692_v63, %v693_v1  ;;  %vm1245_vm3 = vcmask 31768  }
 0x1a0   :  { %706 = vst.msk [vmem:[#allocation3 + $0x95] ss:$8 sm:$0x3] %vm2905_vm10, %v703_v2  ;;  %698 = vst.msk [vmem:[#allocation3 + $0x85] ss:$8 sm:$0x3] %vm2905_vm10, %v695_v3  ;;  %v718_v4 = vpop.permute.xlu0 %717  ;;  %v709_v5 = vpop.permute.xlu1 %708 }
 0x1a1   :  { %v719_v6 = vrot.slane %v718_v4, 1  ;;  %v710_v7 = vrot.slane %v709_v5, 1 }
 0x1a3   :  { %v720_v10 = vsel %vm711_vm12, %v718_v4, %v719_v6  ;;  %v712_v11 = vsel %vm711_vm12, %v709_v5, %v710_v7  ;;  %v766_v12 = vld [vmem:[#allocation3 + $0x18] sm:$0xff]  ;;  %v765_v13 = vld [vmem:[#allocation3 + $0x10] sm:$0xff]  ;;  %vm1288_vm12 = vcmask 39968  }
 0x1a4   :  { %723 = vst.msk [vmem:[#allocation3 + $0x96] ss:$8 sm:$0x3] %vm2905_vm10, %v720_v10  ;;  %715 = vst.msk [vmem:[#allocation3 + $0x86] ss:$8 sm:$0x3] %vm2905_vm10, %v712_v11  ;;  %v735_v18 = vpop.permute.xlu0 %734  ;;  %v726_v19 = vpop.permute.xlu1 %725  ;;  %v2603_v20 = vpack.c.bf16 %v770_v8, %v766_v12  ;;  %v2605_v21 = vpack.c.bf16 %v769_v9, %v765_v13 }
 0x1a5   :  { %v736_v22 = vrot.slane %v735_v18, 1  ;;  %v727_v23 = vrot.slane %v726_v19, 1 }
 0x1a6   :  { %2604 = vmatprep.subr.bf16.mxu1 %v2603_v20 }
 0x1a7   :  { %v737_v16 = vsel %vm728_vm4, %v735_v18, %v736_v22  ;;  %v729_v15 = vsel %vm728_vm4, %v726_v19, %v727_v23  ;;  %2606 = vmatpush1.bf16.msra.mxu1 %v2605_v21  ;;  %vm1331_vm4 = vcmask 48168  }
 0x1a8   :  { %740 = vst.msk [vmem:[#allocation3 + $0x97] ss:$8 sm:$0x3] %vm2905_vm10, %v737_v16  ;;  %732 = vst.msk [vmem:[#allocation3 + $0x87] ss:$8 sm:$0x3] %vm2905_vm10, %v729_v15  ;;  %v752_v27 = vpop.permute.xlu0 %751  ;;  %v743_v28 = vpop.permute.xlu1 %742  ;;  %2608 = vmatprep.subr.bf16.mxu1 %v2607_v25 }
 0x1a9   :  { %v753_v30 = vrot.slane %v752_v27, 1  ;;  %v744_v31 = vrot.slane %v743_v28, 1 }
 0x1ab   :  { %v754_v33 = vsel %vm745_vm5, %v752_v27, %v753_v30  ;;  %v746_v34 = vsel %vm745_vm5, %v743_v28, %v744_v31  ;;  %2610 = vmatpush1.bf16.msra.mxu1 %v2609_v32  ;;  %vm1395_vm5 = vcmask 56368  }
 0x1ac   :  { %757 = vst.msk [vmem:[#allocation3 + $0xb0] ss:$8 sm:$0x3] %vm2905_vm10, %v754_v33  ;;  %749 = vst.msk [vmem:[#allocation3 + $0xa0] ss:$8 sm:$0x3] %vm2905_vm10, %v746_v34  ;;  %v3281_v31 = vpop.permute.xlu1 %1123  ;;  %v3283_v32 = vpop.permute.xlu0 %1121 }
 0x1ad   :  { %vm787_vm10 = vcmask 334848  }
 0x1af   :  { %v780_v36 = vld [vmem:[#allocation3 + $0x88] sm:$0xff]  ;;  %v782_v37 = vld [vmem:[#allocation3 + $0x98] sm:$0xff]  ;;  %v779_v38 = vld [vmem:[#allocation3 + $0x80] sm:$0xff] }
 0x1b0   :  { %v781_v47 = vld [vmem:[#allocation3 + $0x90] sm:$0xff]  ;;  %v3285_v33 = vpop.permute.xlu1 %1166  ;;  %v3287_v34 = vpop.permute.xlu0 %1164 }
 0x1b3   :  { %v784_v39 = vld [vmem:[#allocation3 + $0xa8] sm:$0x1]  ;;  %v786_v40 = vld [vmem:[#allocation3 + $0xb8] sm:$0x1]  ;;  %v783_v41 = vld [vmem:[#allocation3 + $0xa0] sm:$0x1] }
 0x1b4   :  { %v2597_v44 = vpack.c.bf16 %v784_v39, %v780_v36  ;;  %v2611_v45 = vpack.c.bf16 %v786_v40, %v782_v37  ;;  %v2600_v46 = vpack.c.bf16 %v783_v41, %v779_v38  ;;  %v785_v48 = vld [vmem:[#allocation3 + $0xb0] sm:$0x1]  ;;  %v3289_v35 = vpop.permute.xlu1 %1209  ;;  %v3291_v36 = vpop.permute.xlu0 %1207 }
 0x1b5   :  { %v2614_v49 = vpack.c.bf16 %v785_v48, %v781_v47 }
 0x1b6   :  { %2599 = vmatprep.subr.msk.bf16.mxu0 %vm3249_vm8, %v2597_v44  ;;  %2613 = vmatprep.subr.msk.bf16.mxu1 %vm3249_vm8, %v2611_v45 }
 0x1b7   :  { %2602 = vmatpush1.bf16.msk.msra.mxu0 %vm3249_vm8, %v2600_v46  ;;  %2616 = vmatpush1.bf16.msk.msra.mxu1 %vm3249_vm8, %v2614_v49  ;;  %vm1517_vm8 = vcmask 80968  }
 0x1b8   :  { %v3293_v37 = vpop.permute.xlu1 %1252  ;;  %v3295_v38 = vpop.permute.xlu0 %1250 }
 0x1ba   :  { %2579 = vmatmul.mubr.msk.f32.vlgmr.msra.gmra.mrb[0].mxu0 %vm787_vm10, %v759_v14  ;;  %2585 = vmatmul.mubr.msk.f32.vlgmr.msra.gmra.mrb[0].mxu1 %vm787_vm10, %v759_v14 }
 0x1bb   :  { %883 = vmatprep.mubr.f32.mxu0 %v2744_v50  ;;  %972 = vmatprep.mubr.f32.mxu1 %v2744_v50 }
 0x1bc   :  { %v3297_v39 = vpop.permute.xlu1 %1295  ;;  %v3299_v40 = vpop.permute.xlu0 %1293 }
 0x1be   :  { %2580 = vmatmul.mubr.msk.f32.gmra.mrb[2].mxu0 %vm787_vm10, %v760_v51  ;;  %2586 = vmatmul.mubr.msk.f32.gmra.mrb[2].mxu1 %vm787_vm10, %v760_v51 }
 0x1bf   :  { %889 = vmatprep.mubr.f32.mxu0 %v2744_v50  ;;  %978 = vmatprep.mubr.f32.mxu1 %v2744_v50 }
 0x1c0   :  { %v3301_v41 = vpop.permute.xlu1 %1338 }
 0x1c1   :  { %v3303_v44 = vpop.permute.xlu0 %1336 }
 0x1c2   :  { %2581 = vmatmul.mubr.msk.f32.gmra.mrb[4].mxu0 %vm787_vm10, %v761_v52  ;;  %2587 = vmatmul.mubr.msk.f32.gmra.mrb[4].mxu1 %vm787_vm10, %v761_v52 }
 0x1c3   :  { %895 = vmatprep.mubr.f32.mxu0 %v2744_v50  ;;  %984 = vmatprep.mubr.f32.mxu1 %v2744_v50 }
 0x1c4   :  { %v3305_v45 = vpop.permute.xlu1 %1402 }
 0x1c5   :  { %v3307_v46 = vpop.permute.xlu0 %1400 }
 0x1c6   :  { %2582 = vmatmul.mubr.msk.f32.gmra.mrb[6].mxu0 %vm787_vm10, %v762_v53  ;;  %2588 = vmatmul.mubr.msk.f32.gmra.mrb[6].mxu1 %vm787_vm10, %v762_v53 }
 0x28d   :  { %v879_v54 = vpop.f32.mrb[0].mxu0  ;;  %v968_v55 = vpop.f32.mrb[0].mxu1 }
 0x28e   :  { %v881_v56 = vpop.f32.mrb[1].mxu0  ;;  %v970_v57 = vpop.f32.mrb[1].mxu1  ;;  %v993_v62 = vmul.f32 %v968_v55, %v968_v55  ;;  %v991_v2 = vmul.f32 %v879_v54, %v879_v54 }
 0x28f   :  { %v994_v0 = vmul.f32 %v970_v57, %v970_v57  ;;  %v992_v7 = vmul.f32 %v881_v56, %v881_v56 }
 0x291   :  { %v885_v58 = vpop.f32.mrb[2].mxu0  ;;  %v974_v59 = vpop.f32.mrb[2].mxu1 }
 0x292   :  { %v887_v60 = vpop.f32.mrb[3].mxu0  ;;  %v976_v61 = vpop.f32.mrb[3].mxu1  ;;  %v997_v11 = vmul.f32 %v974_v59, %v974_v59  ;;  %v995_v21 = vmul.f32 %v885_v58, %v885_v58 }
 0x293   :  { %v998_v17 = vmul.f32 %v976_v61, %v976_v61  ;;  %v996_v26 = vmul.f32 %v887_v60, %v887_v60 }
 0x295   :  { %v891_v63 = vpop.f32.mrb[4].mxu0  ;;  %v980_v1 = vpop.f32.mrb[4].mxu1 }
 0x296   :  { %v999_v3 = vmul.f32 %v891_v63, %v891_v63  ;;  %v893_v4 = vpop.f32.mrb[5].mxu0  ;;  %v1001_v5 = vmul.f32 %v980_v1, %v980_v1  ;;  %v982_v6 = vpop.f32.mrb[5].mxu1 }
 0x297   :  { %v1000_v8 = vmul.f32 %v893_v4, %v893_v4  ;;  %v1002_v9 = vmul.f32 %v982_v6, %v982_v6 }
 0x298   :  { %v1007_v10 = vadd.f32 %v999_v3, %v991_v2  ;;  %v1009_v12 = vadd.f32 %v1001_v5, %v993_v62 }
 0x299   :  { %v1008_v13 = vadd.f32 %v1000_v8, %v992_v7  ;;  %v897_v18 = vpop.f32.mrb[6].mxu0  ;;  %v1010_v19 = vadd.f32 %v1002_v9, %v994_v0  ;;  %v986_v20 = vpop.f32.mrb[6].mxu1 }
 0x29a   :  { %v1003_v22 = vmul.f32 %v897_v18, %v897_v18  ;;  %1032 = vrot.lane.b32.xlu1 %v1007_v10, %s2846_s16  ;;  %v899_v23 = vpop.f32.mrb[7].mxu0  ;;  %v1005_v24 = vmul.f32 %v986_v20, %v986_v20  ;;  %v988_v25 = vpop.f32.mrb[7].mxu1 }
 0x29b   :  { %v1004_v16 = vmul.f32 %v899_v23, %v899_v23  ;;  %1034 = vrot.lane.b32.xlu0 %v1008_v13, %s2846_s16  ;;  %v1006_v15 = vmul.f32 %v988_v25, %v988_v25 }
 0x29c   :  { %v1011_v27 = vadd.f32 %v1003_v22, %v995_v21  ;;  %v1013_v28 = vadd.f32 %v1005_v24, %v997_v11 }
 0x29d   :  { %v1012_v29 = vadd.f32 %v1004_v16, %v996_v26  ;;  %v1014_v30 = vadd.f32 %v1006_v15, %v998_v17 }
 0x29e   :  { %1060 = vrot.lane.b32.xlu1 %v1009_v12, %s2846_s16 }
 0x29f   :  { %1062 = vrot.lane.b32.xlu0 %v1010_v19, %s2846_s16 }
 0x2a2   :  { %1036 = vrot.lane.b32.xlu1 %v1011_v27, %s2846_s16 }
 0x2a3   :  { %1038 = vrot.lane.b32.xlu0 %v1012_v29, %s2846_s16 }
 0x2a6   :  { %1064 = vrot.lane.b32.xlu1 %v1013_v28, %s2846_s16 }
 0x2a7   :  { %1066 = vrot.lane.b32.xlu0 %v1014_v30, %s2846_s16 }
 0x30c   :  { %v1033_v47 = vpop.permute.xlu1 %1032 }
 0x30d   :  { %1050 = vst.msk [vmem:[#allocation4] sm:$0xff] %vm1049_vm11, %v1033_v47  ;;  %v1035_v48 = vpop.permute.xlu0 %1034 }
 0x30e   :  { %v3311_v49 = vsel %vm1040_vm13, %v1033_v47, %v1035_v48  ;;  %1052 = vst.msk [vmem:[#allocation4 + $0x10] sm:$0xff] %vm1040_vm13, %v1035_v48 }
 0x30f   :  { %v1343_v14 = vmul.f32 %v3303_v44, %v3311_v49  ;;  %v1407_v53 = vmul.f32 %v3307_v46, %v3311_v49  ;;  %v1485_v59 = vmul.f32 %v3283_v32, %v3311_v49  ;;  %v1464_v8 = vmul.f32 %v3109_v43, %v3311_v49 }
 0x310   :  { %v1061_v50 = vpop.permute.xlu1 %1060 }
 0x311   :  { %1076 = vst.msk [vmem:[#allocation4 + $0x30] sm:$0xff] %vm1049_vm11, %v1061_v50  ;;  %v1063_v51 = vpop.permute.xlu0 %1062  ;;  %1360 = vrot.lane.b32.xlu0 %v1343_v14, %s2841_s29  ;;  %v1468_v9 = vsel %vm787_vm10, %v1464_v8, 0.0 }
 0x312   :  { %v3319_v52 = vsel %vm1040_vm13, %v1061_v50, %v1063_v51  ;;  %1078 = vst.msk [vmem:[#allocation4 + $0x40] sm:$0xff] %vm1040_vm13, %v1063_v51 }
 0x313   :  { %v1347_v22 = vmul.f32 %v3303_v44, %v3319_v52  ;;  %v1411_v24 = vmul.f32 %v3307_v46, %v3319_v52  ;;  %v1487_v47 = vmul.f32 %v3283_v32, %v3319_v52  ;;  %v1466_v50 = vmul.f32 %v3109_v43, %v3319_v52 }
 0x314   :  { %v1037_v54 = vpop.permute.xlu1 %1036  ;;  %v1082_v55 = vld [vmem:[#allocation4] sm:$0xff] }
 0x315   :  { %1053 = vst.msk [vmem:[#allocation4 + $0x18] sm:$0xff] %vm1049_vm11, %v1037_v54  ;;  %v1039_v56 = vpop.permute.xlu0 %1038  ;;  %v1127_v57 = vmul.f32 %v3283_v32, %v1082_v55  ;;  %1424 = vrot.lane.b32.xlu0 %v1407_v53, %s2840_s28  ;;  %v1170_v62 = vmul.f32 %v3287_v34, %v1082_v55  ;;  %v1213_v0 = vmul.f32 %v3291_v36, %v1082_v55  ;;  %v1474_v53 = vsel %vm787_vm10, %v1466_v50, 0.0 }
 0x316   :  { %v3328_v58 = vsel %vm1040_vm13, %v1037_v54, %v1039_v56  ;;  %1055 = vst.msk [vmem:[#allocation4 + $0x28] sm:$0xff] %vm1040_vm13, %v1039_v56  ;;  %v1256_v1 = vmul.f32 %v3295_v38, %v1082_v55  ;;  %v1299_v2 = vmul.f32 %v3299_v40, %v1082_v55  ;;  %v1342_v3 = vmul.f32 %v3303_v44, %v1082_v55 }
 0x317   :  { %1135 = vrot.lane.b32.xlu1 %v1127_v57, %s2815_s17  ;;  %v1406_v4 = vmul.f32 %v3307_v46, %v1082_v55  ;;  %v1098_v11 = vmul.f32 %v3109_v43, %v1082_v55 }
 0x318   :  { %v1065_v60 = vpop.permute.xlu1 %1064  ;;  %v1088_v5 = vld [vmem:[#allocation4 + $0x30] sm:$0xff] }
 0x319   :  { %1079 = vst.msk [vmem:[#allocation4 + $0x48] sm:$0xff] %vm1049_vm11, %v1065_v60  ;;  %v1067_v61 = vpop.permute.xlu0 %1066  ;;  %1493 = vrot.lane.b32.xlu0 %v1485_v59, %s2815_s17  ;;  %v1100_v6 = vmul.f32 %v3109_v43, %v1088_v5  ;;  %v1102_v13 = vsel %vm787_vm10, %v1098_v11, 0.0  ;;  %v1129_v21 = vmul.f32 %v3283_v32, %v1088_v5  ;;  %v1172_v23 = vmul.f32 %v3287_v34, %v1088_v5 }
 0x31a   :  { %v3338_v63 = vsel %vm1040_vm13, %v1065_v60, %v1067_v61  ;;  %1081 = vst.msk [vmem:[#allocation4 + $0x58] sm:$0xff] %vm1040_vm13, %v1067_v61  ;;  %v1215_v25 = vmul.f32 %v3291_v36, %v1088_v5  ;;  %v1258_v26 = vmul.f32 %v3295_v38, %v1088_v5  ;;  %v1301_v16 = vmul.f32 %v3299_v40, %v1088_v5 }
 0x31b   :  { %1178 = vrot.lane.b32.xlu1 %v1170_v62, %s2831_s18  ;;  %v1108_v7 = vsel %vm787_vm10, %v1100_v6, 0.0  ;;  %v1346_v15 = vmul.f32 %v3303_v44, %v1088_v5  ;;  %v1410_v27 = vmul.f32 %v3307_v46, %v1088_v5  ;;  %v1486_v32 = vmul.f32 %v3281_v31, %v3328_v58 }
 0x31c   :  { %v1085_v10 = vld [vmem:[#allocation4 + $0x18] sm:$0xff]  ;;  %vm1591_vm11 = vcmask 97368   ;;  %vm1628_vm13 = vcmask 105568  }
 0x31d   :  { %v1128_v12 = vmul.f32 %v3281_v31, %v1085_v10  ;;  %v1171_v17 = vmul.f32 %v3285_v33, %v1085_v10  ;;  %v1214_v18 = vmul.f32 %v3289_v35, %v1085_v10  ;;  %v1257_v19 = vmul.f32 %v3293_v37, %v1085_v10 }
 0x31e   :  { %v1300_v20 = vmul.f32 %v3297_v39, %v1085_v10  ;;  %v1344_v28 = vmul.f32 %v3301_v41, %v1085_v10  ;;  %v1408_v29 = vmul.f32 %v3305_v45, %v1085_v10  ;;  %v1099_v30 = vmul.f32 %v3107_v42, %v1085_v10 }
 0x31f   :  { %1221 = vrot.lane.b32.xlu1 %v1213_v0, %s2845_s15  ;;  %v1345_v0 = vmul.f32 %v3301_v41, %v3328_v58 }
 0x320   :  { %v1091_v48 = vld [vmem:[#allocation4 + $0x48] sm:$0xff]  ;;  %v1105_v14 = vsel %vm787_vm10, %v1099_v30, 0.0 }
 0x321   :  { %v1348_v51 = vmul.f32 %v3301_v41, %v1091_v48  ;;  %v1412_v54 = vmul.f32 %v3305_v45, %v1091_v48  ;;  %v1130_v55 = vmul.f32 %v3281_v31, %v1091_v48  ;;  %v1173_v43 = vmul.f32 %v3285_v33, %v1091_v48 }
 0x322   :  { %v1216_v56 = vmul.f32 %v3289_v35, %v1091_v48  ;;  %v1259_v57 = vmul.f32 %v3293_v37, %v1091_v48  ;;  %v1302_v59 = vmul.f32 %v3297_v39, %v1091_v48  ;;  %v1101_v60 = vmul.f32 %v3107_v42, %v1091_v48 }
 0x323   :  { %1264 = vrot.lane.b32.xlu1 %v1256_v1, %s2843_s14 }
 0x324   :  { %v1111_v1 = vsel %vm787_vm10, %v1101_v60, 0.0 }
 0x327   :  { %1307 = vrot.lane.b32.xlu1 %v1299_v2, %s2842_s13  ;;  %v1465_v2 = vmul.f32 %v3107_v42, %v3328_v58  ;;  %v1349_v42 = vmul.f32 %v3301_v41, %v3338_v63 }
 0x329   :  { %v1471_v6 = vsel %vm787_vm10, %v1465_v2, 0.0 }
 0x32b   :  { %1358 = vrot.lane.b32.xlu1 %v1342_v3, %s2841_s29  ;;  %v1409_v3 = vmul.f32 %v3305_v45, %v3328_v58 }
 0x32f   :  { %1422 = vrot.lane.b32.xlu1 %v1406_v4, %s2840_s28 }
 0x338   :  { %1109 = vadd.xlane.f32.xlu0 %v1108_v7  ;;  %v2745_v7 = vld [vmem:[#allocation7 + $0x28] sm:$0xff] }
 0x339   :  { %v1467_v8 = vmul.f32 %v2745_v7, %v3338_v63 }
 0x33c   :  { %1469 = vadd.xlane.f32.xlu0 %v1468_v9  ;;  %v1477_v9 = vsel %vm787_vm10, %v1467_v8, 0.0 }
 0x352   :  { %1137 = vrot.lane.b32.xlu0 %v1128_v12, %s2815_s17  ;;  %v1413_v12 = vmul.f32 %v3305_v45, %v3338_v63 }
 0x353   :  { %1103 = vadd.xlane.f32.xlu1 %v1102_v13 }
 0x356   :  { %1180 = vrot.lane.b32.xlu0 %v1171_v17, %s2831_s18 }
 0x35a   :  { %1223 = vrot.lane.b32.xlu0 %v1214_v18, %s2845_s15  ;;  %v1488_v18 = vmul.f32 %v3281_v31, %v3338_v63 }
 0x35e   :  { %1266 = vrot.lane.b32.xlu0 %v1257_v19, %s2843_s14 }
 0x362   :  { %1309 = vrot.lane.b32.xlu0 %v1300_v20, %s2842_s13 }
 0x364   :  { %1139 = vrot.lane.b32.xlu1 %v1129_v21, %s2815_s17 }
 0x366   :  { %1368 = vrot.lane.b32.xlu0 %v1347_v22, %s2841_s29 }
 0x368   :  { %1182 = vrot.lane.b32.xlu1 %v1172_v23, %s2831_s18 }
 0x36a   :  { %1432 = vrot.lane.b32.xlu0 %v1411_v24, %s2840_s28 }
 0x36c   :  { %1225 = vrot.lane.b32.xlu1 %v1215_v25, %s2845_s15 }
 0x370   :  { %1268 = vrot.lane.b32.xlu1 %v1258_v26, %s2843_s14 }
 0x374   :  { %1311 = vrot.lane.b32.xlu1 %v1301_v16, %s2842_s13 }
 0x378   :  { %1366 = vrot.lane.b32.xlu1 %v1346_v15, %s2841_s29 }
 0x37c   :  { %1430 = vrot.lane.b32.xlu1 %v1410_v27, %s2840_s28 }
 0x380   :  { %1362 = vrot.lane.b32.xlu1 %v1344_v28, %s2841_s29 }
 0x383   :  { %v3419_v62 = vpop.permute.xlu0 %1360 }
 0x384   :  { %1426 = vrot.lane.b32.xlu1 %v1408_v29, %s2840_s28 }
 0x387   :  { %v3429_v5 = vpop.permute.xlu0 %1424 }
 0x388   :  { %1497 = vrot.lane.b32.xlu1 %v1487_v47, %s2815_s17 }
 0x389   :  { %1106 = vadd.xlane.f32.xlu0 %v1105_v14  ;;  %v1136_v61 = vpop.permute.xlu1 %1135 }
 0x38a   :  { %v1147_v13 = vsel %vm787_vm10, %v1136_v61, 0.0 }
 0x38b   :  { %v1494_v11 = vpop.permute.xlu0 %1493 }
 0x38c   :  { %1370 = vrot.lane.b32.xlu1 %v1348_v51, %s2841_s29  ;;  %v1505_v31 = vsel %vm787_vm10, %v1494_v11, 0.0 }
 0x38d   :  { %1475 = vadd.xlane.f32.xlu0 %v1474_v53  ;;  %v1179_v4 = vpop.permute.xlu1 %1178 }
 0x38e   :  { %v1190_v20 = vsel %vm787_vm10, %v1179_v4, 0.0 }
 0x390   :  { %1434 = vrot.lane.b32.xlu1 %v1412_v54, %s2840_s28 }
 0x391   :  { %v1222_v10 = vpop.permute.xlu1 %1221 }
 0x392   :  { %v1233_v21 = vsel %vm787_vm10, %v1222_v10, 0.0 }
 0x394   :  { %1495 = vrot.lane.b32.xlu1 %v1486_v32, %s2815_s17 }
 0x395   :  { %v1265_v19 = vpop.permute.xlu1 %1264 }
 0x396   :  { %v1276_v23 = vsel %vm787_vm10, %v1265_v19, 0.0 }
 0x399   :  { %v1308_v22 = vpop.permute.xlu1 %1307 }
 0x39a   :  { %v1319_v25 = vsel %vm787_vm10, %v1308_v22, 0.0 }
 0x39d   :  { %v1359_v24 = vpop.permute.xlu1 %1358 }
 0x39e   :  { %v1375_v26 = vsel %vm1374_vm15, %v1359_v24, %v3419_v62 }
 0x39f   :  { %v1383_v15 = vsel %vm787_vm10, %v1375_v26, 0.0 }
 0x3a1   :  { %v1423_v16 = vpop.permute.xlu1 %1422 }
 0x3a2   :  { %v1439_v27 = vsel %vm4115_vm0, %v1423_v16, %v3429_v5 }
 0x3a3   :  { %1141 = vrot.lane.b32.xlu0 %v1130_v55, %s2815_s17  ;;  %v1447_v28 = vsel %vm787_vm10, %v1439_v27, 0.0 }
 0x3a7   :  { %1184 = vrot.lane.b32.xlu0 %v1173_v43, %s2831_s18 }
 0x3ab   :  { %1227 = vrot.lane.b32.xlu0 %v1216_v56, %s2845_s15 }
 0x3af   :  { %1270 = vrot.lane.b32.xlu0 %v1259_v57, %s2843_s14 }
 0x3b3   :  { %1313 = vrot.lane.b32.xlu0 %v1302_v59, %s2842_s13 }
 0x3b7   :  { %1364 = vrot.lane.b32.xlu0 %v1345_v0, %s2841_s29 }
 0x3b8   :  { %1112 = vadd.xlane.f32.xlu1 %v1111_v1 }
 0x3bb   :  { %1428 = vrot.lane.b32.xlu0 %v1409_v3, %s2840_s28 }
 0x3bc   :  { %1472 = vadd.xlane.f32.xlu1 %v1471_v6 }
 0x3bf   :  { %1372 = vrot.lane.b32.xlu0 %v1349_v42, %s2841_s29 }
 0x3c0   :  { %1478 = vadd.xlane.f32.xlu1 %v1477_v9 }
 0x3c3   :  { %1436 = vrot.lane.b32.xlu0 %v1413_v12, %s2840_s28 }
 0x3c4   :  { %1148 = vadd.xlane.f32.xlu1 %v1147_v13 }
 0x3c5   :  { %v1110_v17 = vpop.xlane.xlu0 %1109 }
 0x3c6   :  { %1117 = vst.msk [vmem:[#allocation5 + $0x10] sm:$0xff] %vm1114_vm14, %v1110_v17 }
 0x3c7   :  { %1499 = vrot.lane.b32.xlu0 %v1488_v18, %s2815_s17 }
 0x3c8   :  { %1191 = vadd.xlane.f32.xlu1 %v1190_v20 }
 0x3c9   :  { %v3458_v30 = vpop.xlane.xlu0 %1469 }
 0x3cc   :  { %1234 = vadd.xlane.f32.xlu1 %v1233_v21 }
 0x3cd   :  { %v1138_v50 = vpop.permute.xlu0 %1137 }
 0x3ce   :  { %v1150_v61 = vsel %vm787_vm10, %v1138_v50, 0.0 }
 0x3d0   :  { %1277 = vadd.xlane.f32.xlu1 %v1276_v23 }
 0x3d1   :  { %v1181_v32 = vpop.permute.xlu0 %1180 }
 0x3d2   :  { %v1193_v2 = vsel %vm787_vm10, %v1181_v32, 0.0 }
 0x3d4   :  { %1320 = vadd.xlane.f32.xlu1 %v1319_v25 }
 0x3d5   :  { %v1224_v57 = vpop.permute.xlu0 %1223 }
 0x3d6   :  { %v1236_v6 = vsel %vm787_vm10, %v1224_v57, 0.0 }
 0x3d8   :  { %1506 = vadd.xlane.f32.xlu1 %v1505_v31 }
 0x3d9   :  { %v1267_v0 = vpop.permute.xlu0 %1266 }
 0x3da   :  { %v1279_v8 = vsel %vm787_vm10, %v1267_v0, 0.0 }
 0x3dc   :  { %1384 = vadd.xlane.f32.xlu1 %v1383_v15 }
 0x3dd   :  { %v1310_v4 = vpop.permute.xlu0 %1309 }
 0x3de   :  { %v1322_v10 = vsel %vm787_vm10, %v1310_v4, 0.0 }
 0x3e0   :  { %v1104_v29 = vpop.xlane.xlu1 %1103  ;;  %1448 = vadd.xlane.f32.xlu1 %v1447_v28 }
 0x3e1   :  { %1115 = vst.msk [vmem:[#allocation5] sm:$0xff] %vm1114_vm14, %v1104_v29  ;;  %v3469_v42 = vpop.permute.xlu0 %1368 }
 0x3e4   :  { %v1140_v47 = vpop.permute.xlu1 %1139 }
 0x3e5   :  { %v1153_v48 = vsel %vm787_vm10, %v1140_v47, 0.0  ;;  %v3474_v13 = vpop.permute.xlu0 %1432 }
 0x3e6   :  { %1154 = vadd.xlane.f32.xlu0 %v1153_v48 }
 0x3e8   :  { %v1183_v14 = vpop.permute.xlu1 %1182 }
 0x3e9   :  { %v1196_v51 = vsel %vm787_vm10, %v1183_v14, 0.0 }
 0x3ea   :  { %1197 = vadd.xlane.f32.xlu0 %v1196_v51 }
 0x3ec   :  { %v1226_v53 = vpop.permute.xlu1 %1225 }
 0x3ed   :  { %v1239_v54 = vsel %vm787_vm10, %v1226_v53, 0.0 }
 0x3ee   :  { %1240 = vadd.xlane.f32.xlu0 %v1239_v54 }
 0x3f0   :  { %v1269_v55 = vpop.permute.xlu1 %1268 }
 0x3f1   :  { %v1282_v43 = vsel %vm787_vm10, %v1269_v55, 0.0 }
 0x3f2   :  { %1283 = vadd.xlane.f32.xlu0 %v1282_v43 }
 0x3f4   :  { %v1312_v56 = vpop.permute.xlu1 %1311 }
 0x3f5   :  { %v1325_v59 = vsel %vm787_vm10, %v1312_v56, 0.0 }
 0x3f6   :  { %1326 = vadd.xlane.f32.xlu0 %v1325_v59 }
 0x3f8   :  { %v1367_v60 = vpop.permute.xlu1 %1366 }
 0x3f9   :  { %v1377_v11 = vsel %vm1374_vm15, %v1367_v60, %v3469_v42 }
 0x3fa   :  { %1151 = vadd.xlane.f32.xlu0 %v1150_v61  ;;  %v1389_v17 = vsel %vm787_vm10, %v1377_v11, 0.0  ;;  %v1523_v11 = vmul.f32 %v3285_v33, %v3328_v58 }
 0x3fc   :  { %v1431_v1 = vpop.permute.xlu1 %1430 }
 0x3fd   :  { %v1441_v18 = vsel %vm4115_vm0, %v1431_v1, %v3474_v13 }
 0x3fe   :  { %1194 = vadd.xlane.f32.xlu0 %v1193_v2  ;;  %v1453_v20 = vsel %vm787_vm10, %v1441_v18, 0.0 }
 0x400   :  { %v1363_v3 = vpop.permute.xlu1 %1362 }
 0x402   :  { %1237 = vadd.xlane.f32.xlu0 %v1236_v6 }
 0x404   :  { %v1427_v7 = vpop.permute.xlu1 %1426 }
 0x406   :  { %1280 = vadd.xlane.f32.xlu0 %v1279_v8 }
 0x408   :  { %v1498_v9 = vpop.permute.xlu1 %1497 }
 0x409   :  { %v1511_v43 = vsel %vm787_vm10, %v1498_v9, 0.0  ;;  %v1525_v9 = vmul.f32 %v3285_v33, %v3338_v63 }
 0x40a   :  { %1323 = vadd.xlane.f32.xlu0 %v1322_v10 }
 0x40c   :  { %v1371_v12 = vpop.permute.xlu1 %1370 }
 0x40e   :  { %1390 = vadd.xlane.f32.xlu0 %v1389_v17  ;;  %v1524_v17 = vmul.f32 %v3287_v34, %v3319_v52 }
 0x410   :  { %v1435_v19 = vpop.permute.xlu1 %1434 }
 0x412   :  { %1454 = vadd.xlane.f32.xlu0 %v1453_v20 }
 0x414   :  { %v1496_v21 = vpop.permute.xlu1 %1495 }
 0x415   :  { %v1508_v22 = vsel %vm787_vm10, %v1496_v21, 0.0 }
 0x416   :  { %1509 = vadd.xlane.f32.xlu0 %v1508_v22  ;;  %v1107_v23 = vpop.xlane.xlu0 %1106 }
 0x417   :  { %1116 = vst.msk [vmem:[#allocation5 + $0x8] sm:$0xff] %vm1114_vm14, %v1107_v23 }
 0x41a   :  { %v3482_v24 = vpop.xlane.xlu0 %1475 }
 0x41e   :  { %v1142_v25 = vpop.permute.xlu0 %1141 }
 0x41f   :  { %v1156_v31 = vsel %vm787_vm10, %v1142_v25, 0.0 }
 0x420   :  { %1157 = vadd.xlane.f32.xlu1 %v1156_v31 }
 0x422   :  { %v1185_v26 = vpop.permute.xlu0 %1184 }
 0x423   :  { %v1199_v16 = vsel %vm787_vm10, %v1185_v26, 0.0 }
 0x424   :  { %1200 = vadd.xlane.f32.xlu1 %v1199_v16 }
 0x426   :  { %v1228_v15 = vpop.permute.xlu0 %1227 }
 0x427   :  { %v1242_v27 = vsel %vm787_vm10, %v1228_v15, 0.0 }
 0x428   :  { %1243 = vadd.xlane.f32.xlu1 %v1242_v27 }
 0x42a   :  { %v1271_v28 = vpop.permute.xlu0 %1270 }
 0x42b   :  { %v1285_v29 = vsel %vm787_vm10, %v1271_v28, 0.0 }
 0x42c   :  { %1286 = vadd.xlane.f32.xlu1 %v1285_v29 }
 0x42e   :  { %v1314_v47 = vpop.permute.xlu0 %1313 }
 0x42f   :  { %v1328_v48 = vsel %vm787_vm10, %v1314_v47, 0.0 }
 0x430   :  { %1329 = vadd.xlane.f32.xlu1 %v1328_v48 }
 0x432   :  { %v3489_v14 = vpop.permute.xlu0 %1364 }
 0x433   :  { %v1376_v50 = vsel %vm1374_vm15, %v1363_v3, %v3489_v14 }
 0x434   :  { %v1386_v51 = vsel %vm787_vm10, %v1376_v50, 0.0 }
 0x435   :  { %1387 = vadd.xlane.f32.xlu0 %v1386_v51 }
 0x436   :  { %v3494_v53 = vpop.permute.xlu0 %1428 }
 0x437   :  { %v1440_v54 = vsel %vm4115_vm0, %v1427_v7, %v3494_v53  ;;  %v1522_v7 = vmul.f32 %v3287_v34, %v3311_v49 }
 0x438   :  { %v1450_v32 = vsel %vm787_vm10, %v1440_v54, 0.0 }
 0x439   :  { %1451 = vadd.xlane.f32.xlu0 %v1450_v32 }
 0x43a   :  { %v3499_v55 = vpop.permute.xlu0 %1372 }
 0x43b   :  { %v1378_v60 = vsel %vm1374_vm15, %v1371_v12, %v3499_v55 }
 0x43c   :  { %v1392_v0 = vsel %vm787_vm10, %v1378_v60, 0.0 }
 0x43d   :  { %1512 = vadd.xlane.f32.xlu0 %v1511_v43 }
 0x43e   :  { %v3502_v56 = vpop.permute.xlu0 %1436 }
 0x43f   :  { %v1442_v1 = vsel %vm4115_vm0, %v1435_v19, %v3502_v56 }
 0x440   :  { %v1456_v3 = vsel %vm787_vm10, %v1442_v1, 0.0 }
 0x442   :  { %v1500_v57 = vpop.permute.xlu0 %1499 }
 0x443   :  { %v1514_v59 = vsel %vm787_vm10, %v1500_v57, 0.0 }
 0x444   :  { %1515 = vadd.xlane.f32.xlu1 %v1514_v59 }
 0x445   :  { %v1113_v61 = vpop.xlane.xlu1 %1112 }
 0x446   :  { %1118 = vst.msk [vmem:[#allocation5 + $0x18] sm:$0xff] %vm1114_vm14, %v1113_v61 }
 0x448   :  { %1393 = vadd.xlane.f32.xlu1 %v1392_v0 }
 0x449   :  { %v3511_v2 = vpop.xlane.xlu1 %1472 }
 0x44c   :  { %1457 = vadd.xlane.f32.xlu1 %v1456_v3 }
 0x44d   :  { %v3514_v4 = vpop.xlane.xlu1 %1478 }
 0x451   :  { %v1149_v6 = vpop.xlane.xlu1 %1148 }
 0x452   :  { %1160 = vst.msk [vmem:[#allocation5] sm:$0xff] %vm1159_vm1, %v1149_v6 }
 0x453   :  { %1530 = vrot.lane.b32.xlu0 %v1522_v7, %s2831_s18 }
 0x455   :  { %v1192_v8 = vpop.xlane.xlu1 %1191 }
 0x456   :  { %1203 = vst.msk [vmem:[#allocation5] sm:$0xff] %vm1202_vm2, %v1192_v8 }
 0x457   :  { %1536 = vrot.lane.b32.xlu0 %v1525_v9, %s2831_s18  ;;  %v1560_v9 = vmul.f32 %v3289_v35, %v3328_v58 }
 0x459   :  { %v1235_v10 = vpop.xlane.xlu1 %1234 }
 0x45a   :  { %1246 = vst.msk [vmem:[#allocation5] sm:$0xff] %vm1245_vm3, %v1235_v10  ;;  %v1561_v10 = vmul.f32 %v3291_v36, %v3319_v52 }
 0x45d   :  { %v1278_v12 = vpop.xlane.xlu1 %1277  ;;  %1532 = vrot.lane.b32.xlu1 %v1523_v11, %s2831_s18  ;;  %v1562_v11 = vmul.f32 %v3289_v35, %v3338_v63 }
 0x45e   :  { %1289 = vst.msk [vmem:[#allocation5] sm:$0xff] %vm1288_vm12, %v1278_v12 }
 0x461   :  { %v1321_v18 = vpop.xlane.xlu1 %1320  ;;  %1534 = vrot.lane.b32.xlu1 %v1524_v17, %s2831_s18 }
 0x462   :  { %1332 = vst.msk [vmem:[#allocation5] sm:$0xff] %vm1331_vm4, %v1321_v18 }
 0x465   :  { %v1507_v19 = vpop.xlane.xlu1 %1506 }
 0x469   :  { %v1385_v20 = vpop.xlane.xlu1 %1384 }
 0x46a   :  { %1396 = vst.msk [vmem:[#allocation5] sm:$0xff] %vm1395_vm5, %v1385_v20 }
 0x46d   :  { %v1449_v33 = vpop.xlane.xlu1 %1448 }
 0x46e   :  { %1460 = vst.msk [vmem:[#allocation5] sm:$0xff] %vm1459_vm6, %v1449_v33 }
 0x46f   :  { %1481 = vst.msk [vmem:[#allocation5] sm:$0xff] %vm1480_vm7, %v3458_v30 }
 0x470   :  { %1518 = vst.msk [vmem:[#allocation5] sm:$0xff] %vm1517_vm8, %v1507_v19 }
 0x473   :  { %v1155_v34 = vpop.xlane.xlu0 %1154 }
 0x474   :  { %1162 = vst.msk [vmem:[#allocation5 + $0x10] sm:$0xff] %vm1159_vm1, %v1155_v34 }
 0x477   :  { %v1198_v21 = vpop.xlane.xlu0 %1197 }
 0x478   :  { %1205 = vst.msk [vmem:[#allocation5 + $0x10] sm:$0xff] %vm1202_vm2, %v1198_v21 }
 0x47b   :  { %v1241_v22 = vpop.xlane.xlu0 %1240 }
 0x47c   :  { %1248 = vst.msk [vmem:[#allocation5 + $0x10] sm:$0xff] %vm1245_vm3, %v1241_v22 }
 0x47f   :  { %v1284_v23 = vpop.xlane.xlu0 %1283 }
 0x480   :  { %1291 = vst.msk [vmem:[#allocation5 + $0x10] sm:$0xff] %vm1288_vm12, %v1284_v23 }
 0x483   :  { %v1327_v25 = vpop.xlane.xlu0 %1326 }
 0x484   :  { %1334 = vst.msk [vmem:[#allocation5 + $0x10] sm:$0xff] %vm1331_vm4, %v1327_v25  ;;  %v1596_v25 = vmul.f32 %v3295_v38, %v3311_v49 }
 0x487   :  { %v1152_v31 = vpop.xlane.xlu0 %1151 }
 0x488   :  { %1161 = vst.msk [vmem:[#allocation5 + $0x8] sm:$0xff] %vm1159_vm1, %v1152_v31  ;;  %v1599_v31 = vmul.f32 %v3293_v37, %v3338_v63 }
 0x48b   :  { %v1195_v30 = vpop.xlane.xlu0 %1194 }
 0x48c   :  { %1204 = vst.msk [vmem:[#allocation5 + $0x8] sm:$0xff] %vm1202_vm2, %v1195_v30  ;;  %v1597_v30 = vmul.f32 %v3293_v37, %v3328_v58 }
 0x48f   :  { %v1238_v26 = vpop.xlane.xlu0 %1237 }
 0x490   :  { %1247 = vst.msk [vmem:[#allocation5 + $0x8] sm:$0xff] %vm1245_vm3, %v1238_v26  ;;  %v1598_v26 = vmul.f32 %v3295_v38, %v3319_v52 }
 0x493   :  { %v1281_v16 = vpop.xlane.xlu0 %1280 }
 0x494   :  { %1290 = vst.msk [vmem:[#allocation5 + $0x8] sm:$0xff] %vm1288_vm12, %v1281_v16 }
 0x497   :  { %v1324_v15 = vpop.xlane.xlu0 %1323 }
 0x498   :  { %1333 = vst.msk [vmem:[#allocation5 + $0x8] sm:$0xff] %vm1331_vm4, %v1324_v15 }
 0x49b   :  { %v1391_v27 = vpop.xlane.xlu0 %1390 }
 0x49c   :  { %1398 = vst.msk [vmem:[#allocation5 + $0x10] sm:$0xff] %vm1395_vm5, %v1391_v27 }
 0x49f   :  { %v1455_v28 = vpop.xlane.xlu0 %1454 }
 0x4a0   :  { %1462 = vst.msk [vmem:[#allocation5 + $0x10] sm:$0xff] %vm1459_vm6, %v1455_v28 }
 0x4a1   :  { %1483 = vst.msk [vmem:[#allocation5 + $0x10] sm:$0xff] %vm1480_vm7, %v3482_v24 }
 0x4a3   :  { %v1510_v54 = vpop.xlane.xlu0 %1509 }
 0x4ad   :  { %v1158_v29 = vpop.xlane.xlu1 %1157 }
 0x4ae   :  { %1163 = vst.msk [vmem:[#allocation5 + $0x18] sm:$0xff] %vm1159_vm1, %v1158_v29 }
 0x4b1   :  { %v1201_v47 = vpop.xlane.xlu1 %1200 }
 0x4b2   :  { %1206 = vst.msk [vmem:[#allocation5 + $0x18] sm:$0xff] %vm1202_vm2, %v1201_v47 }
 0x4b5   :  { %v1244_v48 = vpop.xlane.xlu1 %1243 }
 0x4b6   :  { %1249 = vst.msk [vmem:[#allocation5 + $0x18] sm:$0xff] %vm1245_vm3, %v1244_v48 }
 0x4b9   :  { %v1287_v50 = vpop.xlane.xlu1 %1286 }
 0x4ba   :  { %1292 = vst.msk [vmem:[#allocation5 + $0x18] sm:$0xff] %vm1288_vm12, %v1287_v50 }
 0x4bd   :  { %v1330_v51 = vpop.xlane.xlu1 %1329 }
 0x4be   :  { %1335 = vst.msk [vmem:[#allocation5 + $0x18] sm:$0xff] %vm1331_vm4, %v1330_v51 }
 0x4c2   :  { %v1388_v32 = vpop.xlane.xlu0 %1387 }
 0x4c3   :  { %1397 = vst.msk [vmem:[#allocation5 + $0x8] sm:$0xff] %vm1395_vm5, %v1388_v32  ;;  %v1634_v32 = vmul.f32 %v3297_v39, %v3328_v58  ;;  %v1633_v58 = vmul.f32 %v3299_v40, %v3311_v49 }
 0x4c6   :  { %v1452_v24 = vpop.xlane.xlu0 %1451 }
 0x4c7   :  { %1461 = vst.msk [vmem:[#allocation5 + $0x8] sm:$0xff] %vm1459_vm6, %v1452_v24  ;;  %v1635_v24 = vmul.f32 %v3299_v40, %v3319_v52 }
 0x4c8   :  { %1482 = vst.msk [vmem:[#allocation5 + $0x8] sm:$0xff] %vm1480_vm7, %v3511_v2 }
 0x4c9   :  { %1519 = vst.msk [vmem:[#allocation5 + $0x8] sm:$0xff] %vm1517_vm8, %v1510_v54 }
 0x4ca   :  { %v1513_v43 = vpop.xlane.xlu0 %1512 }
 0x4cb   :  { %1520 = vst.msk [vmem:[#allocation5 + $0x10] sm:$0xff] %vm1517_vm8, %v1513_v43  ;;  %v1084_v43 = vld [vmem:[#allocation4 + $0x10] sm:$0xff] }
 0x4ce   :  { %v1531_v57 = vpop.permute.xlu0 %1530 }
 0x4cf   :  { %v1542_v59 = vsel %vm787_vm10, %v1531_v57, 0.0  ;;  %v1670_v57 = vmul.f32 %v3303_v44, %v1084_v43 }
 0x4d0   :  { %1543 = vadd.xlane.f32.xlu1 %v1542_v59  ;;  %v1090_v59 = vld [vmem:[#allocation4 + $0x40] sm:$0xff] }
 0x4d1   :  { %v1516_v60 = vpop.xlane.xlu1 %1515  ;;  %v1713_v52 = vmul.f32 %v3307_v46, %v1090_v59 }
 0x4d2   :  { %v1537_v61 = vpop.permute.xlu0 %1536 }
 0x4d3   :  { %v1551_v0 = vsel %vm787_vm10, %v1537_v61, 0.0  ;;  %v1711_v61 = vmul.f32 %v3307_v46, %v1084_v43 }
 0x4d4   :  { %1552 = vadd.xlane.f32.xlu1 %v1551_v0  ;;  %v1636_v0 = vmul.f32 %v3297_v39, %v3338_v63 }
 0x4d5   :  { %v1394_v1 = vpop.xlane.xlu1 %1393 }
 0x4d6   :  { %1399 = vst.msk [vmem:[#allocation5 + $0x18] sm:$0xff] %vm1395_vm5, %v1394_v1  ;;  %v1087_v1 = vld [vmem:[#allocation4 + $0x28] sm:$0xff] }
 0x4d7   :  { %v1712_v40 = vmul.f32 %v3305_v45, %v1087_v1 }
 0x4d9   :  { %v1458_v3 = vpop.xlane.xlu1 %1457 }
 0x4da   :  { %1463 = vst.msk [vmem:[#allocation5 + $0x18] sm:$0xff] %vm1459_vm6, %v1458_v3  ;;  %v1093_v3 = vld [vmem:[#allocation4 + $0x58] sm:$0xff] }
 0x4db   :  { %1484 = vst.msk [vmem:[#allocation5 + $0x18] sm:$0xff] %vm1480_vm7, %v3514_v4  ;;  %v1559_v4 = vmul.f32 %v3291_v36, %v3311_v49  ;;  %v1714_v46 = vmul.f32 %v3305_v45, %v1093_v3  ;;  %v2847_v49 = vmov 0  }
 0x4dc   :  { %1521 = vst.msk [vmem:[#allocation5 + $0x18] sm:$0xff] %vm1517_vm8, %v1516_v60  ;;  %v1672_v60 = vmul.f32 %v3303_v44, %v1090_v59  ;;  %v1671_v44 = vmul.f32 %v3301_v41, %v1087_v1  ;;  %2685 = vset.pattern.permute.xlu0 %v2847_v49  ;;  %2686 = vset.pattern.permute.xlu1 %v2847_v49 }
 0x4dd   :  { %v1533_v2 = vpop.permute.xlu1 %1532 }
 0x4de   :  { %v1545_v6 = vsel %vm787_vm10, %v1533_v2, 0.0  ;;  %v1673_v2 = vmul.f32 %v3301_v41, %v1093_v3 }
 0x4df   :  { %1546 = vadd.xlane.f32.xlu0 %v1545_v6 }
 0x4e1   :  { %v1535_v7 = vpop.permute.xlu1 %1534 }
 0x4e2   :  { %v1548_v8 = vsel %vm787_vm10, %v1535_v7, 0.0 }
 0x4e3   :  { %1549 = vadd.xlane.f32.xlu0 %v1548_v8 }
 0x4e5   :  { %1569 = vrot.lane.b32.xlu1 %v1560_v9, %s2845_s15 }
 0x4e9   :  { %1571 = vrot.lane.b32.xlu1 %v1561_v10, %s2845_s15 }
 0x4f9   :  { %1567 = vrot.lane.b32.xlu0 %v1559_v4, %s2845_s15 }
 0x4fd   :  { %1573 = vrot.lane.b32.xlu0 %v1562_v11, %s2845_s15 }
 0x55d   :  { %v1544_v12 = vpop.xlane.xlu1 %1543 }
 0x55e   :  { %1555 = vst.msk [vmem:[#allocation5] sm:$0xff] %vm1554_vm9, %v1544_v12 }
 0x561   :  { %v1553_v17 = vpop.xlane.xlu1 %1552 }
 0x562   :  { %1558 = vst.msk [vmem:[#allocation5 + $0x18] sm:$0xff] %vm1554_vm9, %v1553_v17 }
 0x565   :  { %v1570_v18 = vpop.permute.xlu1 %1569 }
 0x566   :  { %v1582_v19 = vsel %vm787_vm10, %v1570_v18, 0.0 }
 0x567   :  { %1583 = vadd.xlane.f32.xlu0 %v1582_v19 }
 0x569   :  { %v1572_v20 = vpop.permute.xlu1 %1571 }
 0x56a   :  { %v1585_v36 = vsel %vm787_vm10, %v1572_v20, 0.0 }
 0x56b   :  { %1586 = vadd.xlane.f32.xlu0 %v1585_v36 }
 0x56c   :  { %v1547_v33 = vpop.xlane.xlu0 %1546 }
 0x56d   :  { %1556 = vst.msk [vmem:[#allocation5 + $0x8] sm:$0xff] %vm1554_vm9, %v1547_v33 }
 0x570   :  { %v1550_v35 = vpop.xlane.xlu0 %1549 }
 0x571   :  { %1557 = vst.msk [vmem:[#allocation5 + $0x10] sm:$0xff] %vm1554_vm9, %v1550_v35 }
 0x574   :  { %v1568_v34 = vpop.permute.xlu0 %1567 }
 0x575   :  { %v1579_v21 = vsel %vm787_vm10, %v1568_v34, 0.0 }
 0x576   :  { %1580 = vadd.xlane.f32.xlu1 %v1579_v21 }
 0x578   :  { %v1574_v22 = vpop.permute.xlu0 %1573 }
 0x579   :  { %v1588_v23 = vsel %vm787_vm10, %v1574_v22, 0.0 }
 0x57a   :  { %1589 = vadd.xlane.f32.xlu1 %v1588_v23 }
 0x581   :  { %1604 = vrot.lane.b32.xlu0 %v1596_v25, %s2843_s14 }
 0x585   :  { %1610 = vrot.lane.b32.xlu0 %v1599_v31, %s2843_s14 }
 0x58b   :  { %1606 = vrot.lane.b32.xlu1 %v1597_v30, %s2843_s14 }
 0x58f   :  { %1608 = vrot.lane.b32.xlu1 %v1598_v26, %s2843_s14 }
 0x5f4   :  { %v1584_v16 = vpop.xlane.xlu0 %1583 }
 0x5f5   :  { %1593 = vst.msk [vmem:[#allocation5 + $0x8] sm:$0xff] %vm1591_vm11, %v1584_v16 }
 0x5f8   :  { %v1587_v15 = vpop.xlane.xlu0 %1586 }
 0x5f9   :  { %1594 = vst.msk [vmem:[#allocation5 + $0x10] sm:$0xff] %vm1591_vm11, %v1587_v15 }
 0x5fc   :  { %v1605_v27 = vpop.permute.xlu0 %1604 }
 0x5fd   :  { %v1616_v28 = vsel %vm787_vm10, %v1605_v27, 0.0 }
 0x5fe   :  { %1617 = vadd.xlane.f32.xlu1 %v1616_v28 }
 0x600   :  { %v1611_v29 = vpop.permute.xlu0 %1610 }
 0x601   :  { %v1625_v37 = vsel %vm787_vm10, %v1611_v29, 0.0 }
 0x602   :  { %1626 = vadd.xlane.f32.xlu1 %v1625_v37 }
 0x603   :  { %v1581_v47 = vpop.xlane.xlu1 %1580 }
 0x604   :  { %1592 = vst.msk [vmem:[#allocation5] sm:$0xff] %vm1591_vm11, %v1581_v47 }
 0x607   :  { %v1590_v38 = vpop.xlane.xlu1 %1589 }
 0x608   :  { %1595 = vst.msk [vmem:[#allocation5 + $0x18] sm:$0xff] %vm1591_vm11, %v1590_v38 }
 0x60b   :  { %v1607_v48 = vpop.permute.xlu1 %1606 }
 0x60c   :  { %v1619_v50 = vsel %vm787_vm10, %v1607_v48, 0.0 }
 0x60d   :  { %1620 = vadd.xlane.f32.xlu0 %v1619_v50 }
 0x60f   :  { %v1609_v51 = vpop.permute.xlu1 %1608 }
 0x610   :  { %v1622_v54 = vsel %vm787_vm10, %v1609_v51, 0.0 }
 0x611   :  { %1623 = vadd.xlane.f32.xlu0 %v1622_v54 }
 0x613   :  { %1643 = vrot.lane.b32.xlu1 %v1634_v32, %s2842_s13 }
 0x617   :  { %1645 = vrot.lane.b32.xlu1 %v1635_v24, %s2842_s13 }
 0x61b   :  { %1678 = vrot.lane.b32.xlu1 %v1670_v57, %s2841_s29 }
 0x61f   :  { %1682 = vrot.lane.b32.xlu1 %v1672_v60, %s2841_s29 }
 0x623   :  { %1719 = vrot.lane.b32.xlu1 %v1711_v61, %s2840_s28 }
 0x627   :  { %1641 = vrot.lane.b32.xlu0 %v1633_v58, %s2842_s13  ;;  %1723 = vrot.lane.b32.xlu1 %v1713_v52, %s2840_s28 }
 0x62b   :  { %1647 = vrot.lane.b32.xlu0 %v1636_v0, %s2842_s13 }
 0x62f   :  { %1680 = vrot.lane.b32.xlu0 %v1671_v44, %s2841_s29 }
 0x633   :  { %1684 = vrot.lane.b32.xlu0 %v1673_v2, %s2841_s29 }
 0x637   :  { %1721 = vrot.lane.b32.xlu0 %v1712_v40, %s2840_s28 }
 0x63b   :  { %1725 = vrot.lane.b32.xlu0 %v1714_v46, %s2840_s28 }
 0x68b   :  { %v1618_v39 = vpop.xlane.xlu1 %1617 }
 0x68c   :  { %1629 = vst.msk [vmem:[#allocation5] sm:$0xff] %vm1628_vm13, %v1618_v39 }
 0x68f   :  { %v1627_v63 = vpop.xlane.xlu1 %1626 }
 0x690   :  { %1632 = vst.msk [vmem:[#allocation5 + $0x18] sm:$0xff] %vm1628_vm13, %v1627_v63 }
 0x693   :  { %v1644_v41 = vpop.permute.xlu1 %1643 }
 0x694   :  { %v1656_v6 = vsel %vm787_vm10, %v1644_v41, 0.0 }
 0x695   :  { %1657 = vadd.xlane.f32.xlu0 %v1656_v6 }
 0x697   :  { %v1646_v7 = vpop.permute.xlu1 %1645 }
 0x698   :  { %v1659_v8 = vsel %vm787_vm10, %v1646_v7, 0.0 }
 0x699   :  { %1660 = vadd.xlane.f32.xlu0 %v1659_v8 }
 0x69a   :  { %v1621_v45 = vpop.xlane.xlu0 %1620 }
 0x69b   :  { %1630 = vst.msk [vmem:[#allocation5 + $0x8] sm:$0xff] %vm1628_vm13, %v1621_v45  ;;  %v1679_v9 = vpop.permute.xlu1 %1678 }
 0x69c   :  { %v1686_v10 = vsel %vm1374_vm15, %v3419_v62, %v1679_v9 }
 0x69d   :  { %v1694_v4 = vsel %vm787_vm10, %v1686_v10, 0.0 }
 0x69e   :  { %1695 = vadd.xlane.f32.xlu0 %v1694_v4  ;;  %v1624_v11 = vpop.xlane.xlu0 %1623 }
 0x69f   :  { %1631 = vst.msk [vmem:[#allocation5 + $0x10] sm:$0xff] %vm1628_vm13, %v1624_v11  ;;  %v1683_v12 = vpop.permute.xlu1 %1682 }
 0x6a0   :  { %v1688_v17 = vsel %vm1374_vm15, %v3469_v42, %v1683_v12 }
 0x6a1   :  { %v1700_v18 = vsel %vm787_vm10, %v1688_v17, 0.0 }
 0x6a2   :  { %1701 = vadd.xlane.f32.xlu0 %v1700_v18  ;;  %v1642_v19 = vpop.permute.xlu0 %1641 }
 0x6a3   :  { %v1720_v20 = vpop.permute.xlu1 %1719  ;;  %v1653_v36 = vsel %vm787_vm10, %v1642_v19, 0.0 }
 0x6a4   :  { %v1727_v62 = vsel %vm4115_vm0, %v3429_v5, %v1720_v20  ;;  %1654 = vadd.xlane.f32.xlu1 %v1653_v36 }
 0x6a5   :  { %v1735_v33 = vsel %vm787_vm10, %v1727_v62, 0.0 }
 0x6a6   :  { %1736 = vadd.xlane.f32.xlu0 %v1735_v33  ;;  %v1648_v35 = vpop.permute.xlu0 %1647 }
 0x6a7   :  { %v1724_v34 = vpop.permute.xlu1 %1723  ;;  %v1662_v21 = vsel %vm787_vm10, %v1648_v35, 0.0 }
 0x6a8   :  { %v1729_v42 = vsel %vm4115_vm0, %v3474_v13, %v1724_v34  ;;  %1663 = vadd.xlane.f32.xlu1 %v1662_v21 }
 0x6a9   :  { %v1741_v22 = vsel %vm787_vm10, %v1729_v42, 0.0 }
 0x6aa   :  { %1742 = vadd.xlane.f32.xlu0 %v1741_v22  ;;  %v1681_v23 = vpop.permute.xlu0 %1680 }
 0x6ab   :  { %v1687_v25 = vsel %vm1374_vm15, %v3489_v14, %v1681_v23 }
 0x6ac   :  { %v1697_v5 = vsel %vm787_vm10, %v1687_v25, 0.0 }
 0x6ad   :  { %1698 = vadd.xlane.f32.xlu1 %v1697_v5 }
 0x6ae   :  { %v1685_v31 = vpop.permute.xlu0 %1684 }
 0x6af   :  { %v1689_v30 = vsel %vm1374_vm15, %v3499_v55, %v1685_v31  ;;  %v3675_v55 = vld [vmem:[%s4113_s2] sm:$0xff]  ;;  %vm1665_vm15 = vcmask 113768  }
 0x6b0   :  { %v1703_v26 = vsel %vm787_vm10, %v1689_v30, 0.0  ;;  %v3729_v7 = vsub.f32 1.0, %v3675_v55  ;;  %2692 = vlog2.f32 %v3675_v55 }
 0x6b1   :  { %1704 = vadd.xlane.f32.xlu1 %v1703_v26 }
 0x6b2   :  { %v1722_v16 = vpop.permute.xlu0 %1721 }
 0x6b3   :  { %v1728_v13 = vsel %vm4115_vm0, %v3494_v53, %v1722_v16  ;;  %v3681_v53 = vld [vmem:[%s4113_s2 + $0x8] sm:$0xff]  ;;  %s2848_s2 = smov 3  }
 0x6b4   :  { %v1738_v15 = vsel %vm787_vm10, %v1728_v13, 0.0  ;;  %v3734_v10 = vsub.f32 1.0, %v3681_v53  ;;  %2694 = vlog2.f32 %v3681_v53 }
 0x6b5   :  { %1739 = vadd.xlane.f32.xlu1 %v1738_v15  ;;  %2696 = vrcp.f32 %v3675_v55 }
 0x6b6   :  { %v1726_v27 = vpop.permute.xlu0 %1725  ;;  %2698 = vrcp.f32 %v3681_v53 }
 0x6b7   :  { %v1730_v14 = vsel %vm4115_vm0, %v3502_v56, %v1726_v27  ;;  %vm1747_vm0 = vcmask 130168  }
 0x6b8   :  { %v1744_v28 = vsel %vm787_vm10, %v1730_v14, 0.0  ;;  %vm1706_vm10 = vcmask 121968  }
 0x6b9   :  { %1745 = vadd.xlane.f32.xlu1 %v1744_v28 }
 0x6c0   :  { %1758 = vperm.xlu0 %2685, %v3675_v55  }
 0x6ca   :  { %1763 = vperm.xlu1 %2686, %v3681_v53  }
 0x722   :  { %v1658_v29 = vpop.xlane.xlu0 %1657 }
 0x723   :  { %1667 = vst.msk [vmem:[#allocation5 + $0x8] sm:$0xff] %vm1665_vm15, %v1658_v29 }
 0x726   :  { %v1661_v56 = vpop.xlane.xlu0 %1660 }
 0x727   :  { %1668 = vst.msk [vmem:[#allocation5 + $0x10] sm:$0xff] %vm1665_vm15, %v1661_v56 }
 0x72b   :  { %v1696_v37 = vpop.xlane.xlu0 %1695 }
 0x72f   :  { %v1702_v47 = vpop.xlane.xlu0 %1701 }
 0x730   :  { %1709 = vst.msk [vmem:[#allocation5 + $0x10] sm:$0xff] %vm1706_vm10, %v1702_v47 }
 0x731   :  { %v1655_v38 = vpop.xlane.xlu1 %1654 }
 0x732   :  { %1666 = vst.msk [vmem:[#allocation5] sm:$0xff] %vm1665_vm15, %v1655_v38 }
 0x733   :  { %1707 = vst.msk [vmem:[#allocation5] sm:$0xff] %vm1706_vm10, %v1696_v37  ;;  %v1737_v48 = vpop.xlane.xlu0 %1736 }
 0x734   :  { %1748 = vst.msk [vmem:[#allocation5] sm:$0xff] %vm1747_vm0, %v1737_v48 }
 0x735   :  { %v1664_v50 = vpop.xlane.xlu1 %1663 }
 0x736   :  { %1669 = vst.msk [vmem:[#allocation5 + $0x18] sm:$0xff] %vm1665_vm15, %v1664_v50 }
 0x737   :  { %v1743_v51 = vpop.xlane.xlu0 %1742 }
 0x738   :  { %1750 = vst.msk [vmem:[#allocation5 + $0x10] sm:$0xff] %vm1747_vm0, %v1743_v51 }
 0x73a   :  { %v1699_v54 = vpop.xlane.xlu1 %1698 }
 0x73b   :  { %1708 = vst.msk [vmem:[#allocation5 + $0x8] sm:$0xff] %vm1706_vm10, %v1699_v54  ;;  %v1752_v24 = vld [vmem:[#allocation5] sm:$0xff] }
 0x73e   :  { %v1705_v32 = vpop.xlane.xlu1 %1704 }
 0x73f   :  { %1710 = vst.msk [vmem:[#allocation5 + $0x18] sm:$0xff] %vm1706_vm10, %v1705_v32  ;;  %v1754_v43 = vld [vmem:[#allocation5 + $0x10] sm:$0xff]  ;;  %v1759_v57 = vpop.permute.xlu0 %1758 }
 0x740   :  { %v1766_v59 = vadd.f32 %v1759_v57, %v1752_v24  ;;  %v1768_v60 = vadd.f32 %v1759_v57, %v1754_v43 }
 0x742   :  { %v3694_v61 = vmax.f32 %v1766_v59, 1e-05  ;;  %v3696_v58 = vmax.f32 %v1768_v60, 1e-05  ;;  %v1740_v52 = vpop.xlane.xlu1 %1739 }
 0x743   :  { %1749 = vst.msk [vmem:[#allocation5 + $0x8] sm:$0xff] %vm1747_vm0, %v1740_v52 }
 0x744   :  { %1780 = vst.msk [vmem:[#allocation6] sm:$0xff] %vm1114_vm14, %v3694_v61  ;;  %1782 = vst.msk [vmem:[#allocation6 + $0x10] sm:$0xff] %vm1114_vm14, %v3696_v58  ;;  %1788 = vrot.lane.b32.xlu1 %v3694_v61, %s2848_s2 }
 0x746   :  { %v1746_v0 = vpop.xlane.xlu1 %1745 }
 0x747   :  { %1751 = vst.msk [vmem:[#allocation5 + $0x18] sm:$0xff] %vm1747_vm0, %v1746_v0 }
 0x74a   :  { %v1764_v1 = vpop.permute.xlu1 %1763  ;;  %v1753_v44 = vld [vmem:[#allocation5 + $0x8] sm:$0xff] }
 0x74b   :  { %v1767_v3 = vadd.f32 %v1764_v1, %v1753_v44 }
 0x74d   :  { %v3706_v2 = vmax.f32 %v1767_v3, 1e-05 }
 0x74e   :  { %v1755_v40 = vld [vmem:[#allocation5 + $0x18] sm:$0xff] }
 0x74f   :  { %v1769_v46 = vadd.f32 %v1764_v1, %v1755_v40  ;;  %1781 = vst.msk [vmem:[#allocation6 + $0x8] sm:$0xff] %vm1114_vm14, %v3706_v2  ;;  %1790 = vrot.lane.b32.xlu1 %v3706_v2, %s2848_s2 }
 0x751   :  { %v3712_v49 = vmax.f32 %v1769_v46, 1e-05 }
 0x753   :  { %1783 = vst.msk [vmem:[#allocation6 + $0x18] sm:$0xff] %vm1114_vm14, %v3712_v49  ;;  %1812 = vrot.lane.b32.xlu0 %v3712_v49, %s2849_s21  ;;  %1792 = vrot.lane.b32.xlu1 %v3696_v58, %s2848_s2  ;;  %vm4120_vm14 = vcmask 130048  }
 0x757   :  { %1794 = vrot.lane.b32.xlu1 %v3712_v49, %s2848_s2 }
 0x75b   :  { %1806 = vrot.lane.b32.xlu1 %v3694_v61, %s2849_s21 }
 0x75f   :  { %1808 = vrot.lane.b32.xlu1 %v3706_v2, %s2849_s21 }
 0x763   :  { %1810 = vrot.lane.b32.xlu1 %v3696_v58, %s2849_s21 }
 0x7b6   :  { %v1789_v39 = vpop.permute.xlu1 %1788 }
 0x7b7   :  { %v1800_v45 = vmul.f32 %v1789_v39, %v3675_v55 }
 0x7c1   :  { %v1791_v63 = vpop.permute.xlu1 %1790 }
 0x7c2   :  { %v1801_v12 = vmul.f32 %v1791_v63, %v3681_v53 }
 0x7c5   :  { %v1793_v41 = vpop.permute.xlu1 %1792  ;;  %v1813_v18 = vpop.permute.xlu0 %1812 }
 0x7c6   :  { %v1802_v62 = vmul.f32 %v1793_v41, %v3675_v55  ;;  %v1821_v33 = vmul.f32 %v1813_v18, %v3734_v10 }
 0x7c9   :  { %v1795_v6 = vpop.permute.xlu1 %1794 }
 0x7ca   :  { %v1803_v19 = vmul.f32 %v1795_v6, %v3681_v53 }
 0x7cc   :  { %v1825_v34 = vadd.f32 %v1821_v33, %v1803_v19 }
 0x7cd   :  { %v1807_v8 = vpop.permute.xlu1 %1806 }
 0x7ce   :  { %v1818_v9 = vmul.f32 %v1807_v8, %v3729_v7  ;;  %v1865_v28 = vmul.f32 %v1825_v34, %v3734_v10 }
 0x7d0   :  { %v1822_v4 = vadd.f32 %v1818_v9, %v1800_v45  ;;  %v1934_v9 = vmul.f32 %v3694_v61, %v3675_v55 }
 0x7d1   :  { %v1809_v11 = vpop.permute.xlu1 %1808 }
 0x7d2   :  { %v1819_v17 = vmul.f32 %v1809_v11, %v3734_v10  ;;  %1830 = vrot.lane.b32.xlu1 %v1822_v4, %s2802_s4  ;;  %v1862_v30 = vmul.f32 %v1822_v4, %v3729_v7  ;;  %v1935_v4 = vmul.f32 %v3706_v2, %v3681_v53 }
 0x7d4   :  { %v1823_v20 = vadd.f32 %v1819_v17, %v1801_v12 }
 0x7d5   :  { %v1811_v36 = vpop.permute.xlu1 %1810 }
 0x7d6   :  { %v1820_v35 = vmul.f32 %v1811_v36, %v3729_v7  ;;  %1832 = vrot.lane.b32.xlu0 %v1823_v20, %s2802_s4  ;;  %v1863_v16 = vmul.f32 %v1823_v20, %v3734_v10  ;;  %v1936_v36 = vmul.f32 %v3696_v58, %v3675_v55 }
 0x7d8   :  { %v1824_v21 = vadd.f32 %v1820_v35, %v1802_v62  ;;  %v1937_v62 = vmul.f32 %v3712_v49, %v3681_v53 }
 0x7da   :  { %1834 = vrot.lane.b32.xlu1 %v1824_v21, %s2802_s4  ;;  %1836 = vrot.lane.b32.xlu0 %v1825_v34, %s2802_s4  ;;  %v1864_v56 = vmul.f32 %v1824_v21, %v3729_v7 }
 0x7de   :  { %1846 = vrot.lane.b32.xlu1 %v3694_v61, %s2850_s24  ;;  %1848 = vrot.lane.b32.xlu0 %v3706_v2, %s2850_s24 }
 0x7e2   :  { %1850 = vrot.lane.b32.xlu1 %v3696_v58, %s2850_s24  ;;  %1852 = vrot.lane.b32.xlu0 %v3712_v49, %s2850_s24 }
 0x844   :  { %v1831_v42 = vpop.permute.xlu1 %1830 }
 0x845   :  { %1842 = vst.msk [vmem:[#allocation6] sm:$0xff] %vm1159_vm1, %v1831_v42 }
 0x848   :  { %v1833_v22 = vpop.permute.xlu0 %1832 }
 0x849   :  { %1843 = vst.msk [vmem:[#allocation6 + $0x8] sm:$0xff] %vm1159_vm1, %v1833_v22 }
 0x84c   :  { %v1835_v23 = vpop.permute.xlu1 %1834  ;;  %v1837_v25 = vpop.permute.xlu0 %1836 }
 0x84d   :  { %1844 = vst.msk [vmem:[#allocation6 + $0x10] sm:$0xff] %vm1159_vm1, %v1835_v23  ;;  %1845 = vst.msk [vmem:[#allocation6 + $0x18] sm:$0xff] %vm1159_vm1, %v1837_v25 }
 0x850   :  { %v1847_v5 = vpop.permute.xlu1 %1846  ;;  %v1849_v31 = vpop.permute.xlu0 %1848 }
 0x851   :  { %v1858_v26 = vmul.f32 %v1847_v5, %v3675_v55  ;;  %v1859_v13 = vmul.f32 %v1849_v31, %v3681_v53 }
 0x853   :  { %v1866_v15 = vadd.f32 %v1862_v30, %v1858_v26  ;;  %v1867_v27 = vadd.f32 %v1863_v16, %v1859_v13 }
 0x854   :  { %v1851_v14 = vpop.permute.xlu1 %1850  ;;  %v1853_v29 = vpop.permute.xlu0 %1852 }
 0x855   :  { %v1860_v37 = vmul.f32 %v1851_v14, %v3675_v55  ;;  %v1861_v47 = vmul.f32 %v1853_v29, %v3681_v53  ;;  %1874 = vrot.lane.b32.xlu1 %v1866_v15, %s2800_s0  ;;  %1876 = vrot.lane.b32.xlu0 %v1867_v27, %s2800_s0  ;;  %v1906_v57 = vmul.f32 %v1866_v15, %v3729_v7 }
 0x856   :  { %v1907_v60 = vmul.f32 %v1867_v27, %v3734_v10 }
 0x857   :  { %v1868_v38 = vadd.f32 %v1864_v56, %v1860_v37  ;;  %v1869_v48 = vadd.f32 %v1865_v28, %v1861_v47  ;;  %v2852_v37 = vmov 1  }
 0x858   :  { %2687 = vset.pattern.permute.xlu1 %v2852_v37  ;;  %2688 = vset.pattern.permute.xlu0 %v2852_v37 }
 0x859   :  { %1878 = vrot.lane.b32.xlu1 %v1868_v38, %s2800_s0  ;;  %1880 = vrot.lane.b32.xlu0 %v1869_v48, %s2800_s0  ;;  %v1908_v40 = vmul.f32 %v1868_v38, %v3729_v7  ;;  %v1909_v39 = vmul.f32 %v1869_v48, %v3734_v10 }
 0x85d   :  { %1890 = vrot.lane.b32.xlu1 %v3694_v61, %s2851_s25  ;;  %1892 = vrot.lane.b32.xlu0 %v3706_v2, %s2851_s25 }
 0x861   :  { %1894 = vrot.lane.b32.xlu1 %v3696_v58, %s2851_s25  ;;  %1896 = vrot.lane.b32.xlu0 %v3712_v49, %s2851_s25 }
 0x8c7   :  { %v1875_v50 = vpop.permute.xlu1 %1874  ;;  %v1877_v51 = vpop.permute.xlu0 %1876 }
 0x8c8   :  { %1886 = vst.msk [vmem:[#allocation6] sm:$0xff] %vm1202_vm2, %v1875_v50  ;;  %1887 = vst.msk [vmem:[#allocation6 + $0x8] sm:$0xff] %vm1202_vm2, %v1877_v51 }
 0x8cb   :  { %v1879_v54 = vpop.permute.xlu1 %1878  ;;  %v1881_v32 = vpop.permute.xlu0 %1880 }
 0x8cc   :  { %1888 = vst.msk [vmem:[#allocation6 + $0x10] sm:$0xff] %vm1202_vm2, %v1879_v54  ;;  %1889 = vst.msk [vmem:[#allocation6 + $0x18] sm:$0xff] %vm1202_vm2, %v1881_v32 }
 0x8cf   :  { %v1891_v24 = vpop.permute.xlu1 %1890  ;;  %v1893_v43 = vpop.permute.xlu0 %1892 }
 0x8d0   :  { %v1902_v59 = vmul.f32 %v1891_v24, %v3675_v55  ;;  %v1903_v52 = vmul.f32 %v1893_v43, %v3681_v53 }
 0x8d2   :  { %v1910_v0 = vadd.f32 %v1906_v57, %v1902_v59  ;;  %v1911_v1 = vadd.f32 %v1907_v60, %v1903_v52 }
 0x8d3   :  { %v1895_v44 = vpop.permute.xlu1 %1894  ;;  %v1897_v3 = vpop.permute.xlu0 %1896 }
 0x8d4   :  { %v1904_v46 = vmul.f32 %v1895_v44, %v3675_v55  ;;  %v1905_v63 = vmul.f32 %v1897_v3, %v3681_v53  ;;  %1918 = vrot.lane.b32.xlu1 %v1910_v0, %s2801_s30  ;;  %1920 = vrot.lane.b32.xlu0 %v1911_v1, %s2801_s30  ;;  %v1938_v8 = vmul.f32 %v1910_v0, %v3729_v7 }
 0x8d5   :  { %v1939_v45 = vmul.f32 %v1911_v1, %v3734_v10 }
 0x8d6   :  { %v1912_v41 = vadd.f32 %v1908_v40, %v1904_v46  ;;  %v1913_v6 = vadd.f32 %v1909_v39, %v1905_v63  ;;  %v1942_v17 = vadd.f32 %v1938_v8, %v1934_v9 }
 0x8d7   :  { %v1943_v20 = vadd.f32 %v1939_v45, %v1935_v4 }
 0x8d8   :  { %1922 = vrot.lane.b32.xlu1 %v1912_v41, %s2801_s30  ;;  %1924 = vrot.lane.b32.xlu0 %v1913_v6, %s2801_s30  ;;  %v1940_v11 = vmul.f32 %v1912_v41, %v3729_v7  ;;  %v1941_v18 = vmul.f32 %v1913_v6, %v3734_v10  ;;  %v1966_v23 = vmul.f32 %v1942_v17, %v3729_v7 }
 0x8d9   :  { %v1967_v5 = vmul.f32 %v1943_v20, %v3734_v10 }
 0x8da   :  { %v1944_v35 = vadd.f32 %v1940_v11, %v1936_v36  ;;  %v1945_v21 = vadd.f32 %v1941_v18, %v1937_v62 }
 0x8dc   :  { %1950 = vrot.lane.b32.xlu1 %v3694_v61, %s2801_s30  ;;  %1952 = vrot.lane.b32.xlu0 %v3706_v2, %s2801_s30  ;;  %v1968_v13 = vmul.f32 %v1944_v35, %v3729_v7  ;;  %v1969_v14 = vmul.f32 %v1945_v21, %v3734_v10 }
 0x8e0   :  { %1954 = vrot.lane.b32.xlu1 %v3696_v58, %s2801_s30  ;;  %1956 = vrot.lane.b32.xlu0 %v3712_v49, %s2801_s30  ;;  %s2854_s30 = smov 6  }
 0x946   :  { %v1919_v12 = vpop.permute.xlu1 %1918  ;;  %v1921_v19 = vpop.permute.xlu0 %1920 }
 0x947   :  { %1930 = vst.msk [vmem:[#allocation6] sm:$0xff] %vm1245_vm3, %v1919_v12  ;;  %1931 = vst.msk [vmem:[#allocation6 + $0x8] sm:$0xff] %vm1245_vm3, %v1921_v19 }
 0x948   :  { %1946 = vst.msk [vmem:[#allocation6] sm:$0xff] %vm1288_vm12, %v1942_v17  ;;  %1947 = vst.msk [vmem:[#allocation6 + $0x8] sm:$0xff] %vm1288_vm12, %v1943_v20 }
 0x94a   :  { %v1923_v33 = vpop.permute.xlu1 %1922  ;;  %v1925_v34 = vpop.permute.xlu0 %1924 }
 0x94b   :  { %1932 = vst.msk [vmem:[#allocation6 + $0x10] sm:$0xff] %vm1245_vm3, %v1923_v33  ;;  %1933 = vst.msk [vmem:[#allocation6 + $0x18] sm:$0xff] %vm1245_vm3, %v1925_v34 }
 0x94c   :  { %1948 = vst.msk [vmem:[#allocation6 + $0x10] sm:$0xff] %vm1288_vm12, %v1944_v35  ;;  %1949 = vst.msk [vmem:[#allocation6 + $0x18] sm:$0xff] %vm1288_vm12, %v1945_v21 }
 0x94e   :  { %v1951_v42 = vpop.permute.xlu1 %1950  ;;  %v1953_v25 = vpop.permute.xlu0 %1952 }
 0x94f   :  { %v1962_v22 = vmul.f32 %v1951_v42, %v3675_v55  ;;  %v1963_v31 = vmul.f32 %v1953_v25, %v3681_v53 }
 0x951   :  { %v3826_v30 = vadd.f32 %v1966_v23, %v1962_v22  ;;  %v3828_v26 = vadd.f32 %v1967_v5, %v1963_v31 }
 0x952   :  { %v1955_v16 = vpop.permute.xlu1 %1954  ;;  %v1957_v27 = vpop.permute.xlu0 %1956 }
 0x953   :  { %v1964_v15 = vmul.f32 %v1955_v16, %v3675_v55  ;;  %1978 = vrot.lane.b32.xlu1 %v3826_v30, %s2851_s25  ;;  %v1965_v28 = vmul.f32 %v1957_v27, %v3681_v53  ;;  %1980 = vrot.lane.b32.xlu0 %v3828_v26, %s2851_s25  ;;  %v2010_v32 = vmul.f32 %v3826_v30, %v3729_v7 }
 0x954   :  { %v2011_v43 = vmul.f32 %v3828_v26, %v3734_v10 }
 0x955   :  { %v3838_v29 = vadd.f32 %v1968_v13, %v1964_v15  ;;  %v3840_v56 = vadd.f32 %v1969_v14, %v1965_v28 }
 0x957   :  { %1982 = vrot.lane.b32.xlu1 %v3838_v29, %s2851_s25  ;;  %1984 = vrot.lane.b32.xlu0 %v3840_v56, %s2851_s25  ;;  %v2012_v0 = vmul.f32 %v3838_v29, %v3729_v7  ;;  %v2013_v3 = vmul.f32 %v3840_v56, %v3734_v10 }
 0x95b   :  { %1994 = vrot.lane.b32.xlu1 %v3694_v61, %s2800_s0  ;;  %1996 = vrot.lane.b32.xlu0 %v3706_v2, %s2800_s0 }
 0x95f   :  { %1998 = vrot.lane.b32.xlu1 %v3696_v58, %s2800_s0  ;;  %2000 = vrot.lane.b32.xlu0 %v3712_v49, %s2800_s0  ;;  %s2853_s0 = smov 5  }
 0x963   :  { %2038 = vrot.lane.b32.xlu1 %v3694_v61, %s2802_s4  ;;  %2040 = vrot.lane.b32.xlu0 %v3706_v2, %s2802_s4 }
 0x967   :  { %2042 = vrot.lane.b32.xlu1 %v3696_v58, %s2802_s4  ;;  %2044 = vrot.lane.b32.xlu0 %v3712_v49, %s2802_s4  ;;  %s2855_s4 = smov 7  }
 0x96b   :  { %2082 = vrot.lane.b32.xlu1 %v3694_v61, %s2803_s5  ;;  %2084 = vrot.lane.b32.xlu0 %v3706_v2, %s2803_s5 }
 0x96f   :  { %2086 = vrot.lane.b32.xlu1 %v3696_v58, %s2803_s5  ;;  %2088 = vrot.lane.b32.xlu0 %v3712_v49, %s2803_s5  ;;  %s2856_s5 = smov 9  }
 0x973   :  { %2126 = vrot.lane.b32.xlu1 %v3694_v61, %s2804_s6  ;;  %2128 = vrot.lane.b32.xlu0 %v3706_v2, %s2804_s6 }
 0x977   :  { %2130 = vrot.lane.b32.xlu1 %v3696_v58, %s2804_s6  ;;  %2132 = vrot.lane.b32.xlu0 %v3712_v49, %s2804_s6  ;;  %s2857_s6 = smov 10  }
 0x97b   :  { %2170 = vrot.lane.b32.xlu1 %v3694_v61, %s2805_s7  ;;  %2172 = vrot.lane.b32.xlu0 %v3706_v2, %s2805_s7 }
 0x97f   :  { %2174 = vrot.lane.b32.xlu1 %v3696_v58, %s2805_s7  ;;  %2176 = vrot.lane.b32.xlu0 %v3712_v49, %s2805_s7  ;;  %s2858_s7 = smov 11  }
 0x983   :  { %2214 = vrot.lane.b32.xlu1 %v3694_v61, %s2806_s8  ;;  %2216 = vrot.lane.b32.xlu0 %v3706_v2, %s2806_s8 }
 0x987   :  { %2218 = vrot.lane.b32.xlu1 %v3696_v58, %s2806_s8  ;;  %2220 = vrot.lane.b32.xlu0 %v3712_v49, %s2806_s8  ;;  %s2861_s8 = smov [#allocation10]  }
 0x98b   :  { %2258 = vrot.lane.b32.xlu1 %v3694_v61, %s2807_s9  ;;  %2260 = vrot.lane.b32.xlu0 %v3706_v2, %s2807_s9 }
 0x98f   :  { %2262 = vrot.lane.b32.xlu1 %v3696_v58, %s2807_s9  ;;  %2264 = vrot.lane.b32.xlu0 %v3712_v49, %s2807_s9  ;;  %s2564_s9 = sshll.u32 %s2861_s8, 4  ;;  %s2565_s9 = int_to_ptr.vmem [resolvable:$true] %s2564_s9 }
 0x990   :  { %p2773_p9 = scmp.lt.s32.totalorder %s2565_s9, %s2565_s9 }
 0x993   :  { %2302 = vrot.lane.b32.xlu1 %v3694_v61, %s2808_s10  ;;  %2304 = vrot.lane.b32.xlu0 %v3706_v2, %s2808_s10 }
 0x997   :  { %2306 = vrot.lane.b32.xlu1 %v3696_v58, %s2808_s10  ;;  %2308 = vrot.lane.b32.xlu0 %v3712_v49, %s2808_s10  ;;  %s2768_s10 = scalar_lea.vmem %s2565_s9, 512 }
 0x998   :  { %p2769_p8 = scmp.ne.s32.totalorder %s2565_s9, %s2768_s10  ;;  %p2774_p10 = scmp.lt.s32.totalorder %s2768_s10, %s2768_s10 }
 0x99a   :  { %p2775_p11 = por %p2774_p10, %p2773_p9 }
 0x99b   :  { %2346 = vrot.lane.b32.xlu1 %v3694_v61, %s2809_s11  ;;  %2348 = vrot.lane.b32.xlu0 %v3706_v2, %s2809_s11 }
 0x99c   :  { %p2776_p12 = pnand %p2775_p11, %p2769_p8 }
 0x99f   :  { %2350 = vrot.lane.b32.xlu1 %v3696_v58, %s2809_s11  ;;  %2352 = vrot.lane.b32.xlu0 %v3712_v49, %s2809_s11 }
 0x9a3   :  { %2390 = vrot.lane.b32.xlu1 %v3694_v61, %s2810_s12  ;;  %2392 = vrot.lane.b32.xlu0 %v3706_v2, %s2810_s12 }
 0x9a7   :  { %2394 = vrot.lane.b32.xlu1 %v3696_v58, %s2810_s12  ;;  %2396 = vrot.lane.b32.xlu0 %v3712_v49, %s2810_s12 }
 0x9c5   :  { %v1979_v47 = vpop.permute.xlu1 %1978  ;;  %v1981_v38 = vpop.permute.xlu0 %1980 }
 0x9c6   :  { %1990 = vst.msk [vmem:[#allocation6] sm:$0xff] %vm1331_vm4, %v1979_v47  ;;  %1991 = vst.msk [vmem:[#allocation6 + $0x8] sm:$0xff] %vm1331_vm4, %v1981_v38 }
 0x9c9   :  { %v1983_v48 = vpop.permute.xlu1 %1982  ;;  %v1985_v50 = vpop.permute.xlu0 %1984 }
 0x9ca   :  { %1992 = vst.msk [vmem:[#allocation6 + $0x10] sm:$0xff] %vm1331_vm4, %v1983_v48  ;;  %1993 = vst.msk [vmem:[#allocation6 + $0x18] sm:$0xff] %vm1331_vm4, %v1985_v50 }
 0x9cd   :  { %v1995_v51 = vpop.permute.xlu1 %1994  ;;  %v1997_v24 = vpop.permute.xlu0 %1996 }
 0x9ce   :  { %v2006_v54 = vmul.f32 %v1995_v51, %v3675_v55  ;;  %v2007_v57 = vmul.f32 %v1997_v24, %v3681_v53 }
 0x9d0   :  { %v2014_v59 = vadd.f32 %v2010_v32, %v2006_v54  ;;  %v2015_v60 = vadd.f32 %v2011_v43, %v2007_v57 }
 0x9d1   :  { %v1999_v52 = vpop.permute.xlu1 %1998  ;;  %v2001_v44 = vpop.permute.xlu0 %2000 }
 0x9d2   :  { %v2008_v1 = vmul.f32 %v1999_v52, %v3675_v55  ;;  %2022 = vrot.lane.b32.xlu1 %v2014_v59, %s2850_s24  ;;  %v2009_v40 = vmul.f32 %v2001_v44, %v3681_v53  ;;  %2024 = vrot.lane.b32.xlu0 %v2015_v60, %s2850_s24  ;;  %v2054_v6 = vmul.f32 %v2014_v59, %v3729_v7 }
 0x9d3   :  { %v2055_v45 = vmul.f32 %v2015_v60, %v3734_v10 }
 0x9d4   :  { %v2016_v46 = vadd.f32 %v2012_v0, %v2008_v1  ;;  %v2017_v39 = vadd.f32 %v2013_v3, %v2009_v40 }
 0x9d5   :  { %v2039_v63 = vpop.permute.xlu1 %2038  ;;  %v2041_v8 = vpop.permute.xlu0 %2040 }
 0x9d6   :  { %v2050_v41 = vmul.f32 %v2039_v63, %v3675_v55  ;;  %2026 = vrot.lane.b32.xlu1 %v2016_v46, %s2850_s24  ;;  %v2051_v9 = vmul.f32 %v2041_v8, %v3681_v53  ;;  %2028 = vrot.lane.b32.xlu0 %v2017_v39, %s2850_s24  ;;  %v2056_v17 = vmul.f32 %v2016_v46, %v3729_v7 }
 0x9d7   :  { %v2057_v20 = vmul.f32 %v2017_v39, %v3734_v10 }
 0x9d8   :  { %v2058_v4 = vadd.f32 %v2054_v6, %v2050_v41  ;;  %v2059_v11 = vadd.f32 %v2055_v45, %v2051_v9 }
 0x9d9   :  { %v2043_v12 = vpop.permute.xlu1 %2042  ;;  %v2045_v19 = vpop.permute.xlu0 %2044 }
 0x9da   :  { %v2052_v18 = vmul.f32 %v2043_v12, %v3675_v55  ;;  %2066 = vrot.lane.b32.xlu1 %v2058_v4, %s2848_s2  ;;  %v2053_v36 = vmul.f32 %v2045_v19, %v3681_v53  ;;  %2068 = vrot.lane.b32.xlu0 %v2059_v11, %s2848_s2  ;;  %v2098_v21 = vmul.f32 %v2058_v4, %v3729_v7 }
 0x9db   :  { %v2099_v22 = vmul.f32 %v2059_v11, %v3734_v10 }
 0x9dc   :  { %v2060_v62 = vadd.f32 %v2056_v17, %v2052_v18  ;;  %v2061_v33 = vadd.f32 %v2057_v20, %v2053_v36 }
 0x9dd   :  { %v2083_v35 = vpop.permute.xlu1 %2082  ;;  %v2085_v42 = vpop.permute.xlu0 %2084 }
 0x9de   :  { %v2094_v34 = vmul.f32 %v2083_v35, %v3675_v55  ;;  %2070 = vrot.lane.b32.xlu1 %v2060_v62, %s2848_s2  ;;  %v2095_v23 = vmul.f32 %v2085_v42, %v3681_v53  ;;  %2072 = vrot.lane.b32.xlu0 %v2061_v33, %s2848_s2  ;;  %v2100_v30 = vmul.f32 %v2060_v62, %v3729_v7 }
 0x9df   :  { %v2101_v13 = vmul.f32 %v2061_v33, %v3734_v10 }
 0x9e0   :  { %v2102_v25 = vadd.f32 %v2098_v21, %v2094_v34  ;;  %v2103_v5 = vadd.f32 %v2099_v22, %v2095_v23 }
 0x9e1   :  { %v2087_v31 = vpop.permute.xlu1 %2086  ;;  %v2089_v16 = vpop.permute.xlu0 %2088 }
 0x9e2   :  { %v2096_v26 = vmul.f32 %v2087_v31, %v3675_v55  ;;  %2110 = vrot.lane.b32.xlu1 %v2102_v25, %s2849_s21  ;;  %v2097_v15 = vmul.f32 %v2089_v16, %v3681_v53  ;;  %2112 = vrot.lane.b32.xlu0 %v2103_v5, %s2849_s21  ;;  %v2142_v56 = vmul.f32 %v2102_v25, %v3729_v7 }
 0x9e3   :  { %v2143_v47 = vmul.f32 %v2103_v5, %v3734_v10 }
 0x9e4   :  { %v2104_v27 = vadd.f32 %v2100_v30, %v2096_v26  ;;  %v2105_v14 = vadd.f32 %v2101_v13, %v2097_v15 }
 0x9e5   :  { %v2127_v28 = vpop.permute.xlu1 %2126  ;;  %v2129_v37 = vpop.permute.xlu0 %2128 }
 0x9e6   :  { %v2138_v29 = vmul.f32 %v2127_v28, %v3675_v55  ;;  %2114 = vrot.lane.b32.xlu1 %v2104_v27, %s2849_s21  ;;  %v2139_v38 = vmul.f32 %v2129_v37, %v3681_v53  ;;  %2116 = vrot.lane.b32.xlu0 %v2105_v14, %s2849_s21  ;;  %v2144_v54 = vmul.f32 %v2104_v27, %v3729_v7 }
 0x9e7   :  { %v2145_v43 = vmul.f32 %v2105_v14, %v3734_v10 }
 0x9e8   :  { %v2146_v48 = vadd.f32 %v2142_v56, %v2138_v29  ;;  %v2147_v50 = vadd.f32 %v2143_v47, %v2139_v38 }
 0x9e9   :  { %v2131_v51 = vpop.permute.xlu1 %2130  ;;  %v2133_v24 = vpop.permute.xlu0 %2132 }
 0x9ea   :  { %v2140_v32 = vmul.f32 %v2131_v51, %v3675_v55  ;;  %2154 = vrot.lane.b32.xlu1 %v2146_v48, %s2853_s0  ;;  %v2141_v57 = vmul.f32 %v2133_v24, %v3681_v53  ;;  %2156 = vrot.lane.b32.xlu0 %v2147_v50, %s2853_s0  ;;  %v2186_v1 = vmul.f32 %v2146_v48, %v3729_v7 }
 0x9eb   :  { %v2187_v3 = vmul.f32 %v2147_v50, %v3734_v10 }
 0x9ec   :  { %v2148_v59 = vadd.f32 %v2144_v54, %v2140_v32  ;;  %v2149_v60 = vadd.f32 %v2145_v43, %v2141_v57 }
 0x9ed   :  { %v2171_v52 = vpop.permute.xlu1 %2170  ;;  %v2173_v44 = vpop.permute.xlu0 %2172 }
 0x9ee   :  { %v2182_v0 = vmul.f32 %v2171_v52, %v3675_v55  ;;  %2158 = vrot.lane.b32.xlu1 %v2148_v59, %s2853_s0  ;;  %v2183_v40 = vmul.f32 %v2173_v44, %v3681_v53  ;;  %2160 = vrot.lane.b32.xlu0 %v2149_v60, %s2853_s0  ;;  %v2188_v41 = vmul.f32 %v2148_v59, %v3729_v7 }
 0x9ef   :  { %v2189_v45 = vmul.f32 %v2149_v60, %v3734_v10 }
 0x9f0   :  { %v2190_v46 = vadd.f32 %v2186_v1, %v2182_v0  ;;  %v2191_v39 = vadd.f32 %v2187_v3, %v2183_v40 }
 0x9f1   :  { %v2175_v63 = vpop.permute.xlu1 %2174  ;;  %v2177_v8 = vpop.permute.xlu0 %2176 }
 0x9f2   :  { %v2184_v6 = vmul.f32 %v2175_v63, %v3675_v55  ;;  %2198 = vrot.lane.b32.xlu1 %v2190_v46, %s2854_s30  ;;  %v2185_v9 = vmul.f32 %v2177_v8, %v3681_v53  ;;  %2200 = vrot.lane.b32.xlu0 %v2191_v39, %s2854_s30  ;;  %v2230_v18 = vmul.f32 %v2190_v46, %v3729_v7 }
 0x9f3   :  { %v2231_v20 = vmul.f32 %v2191_v39, %v3734_v10 }
 0x9f4   :  { %v2192_v4 = vadd.f32 %v2188_v41, %v2184_v6  ;;  %v2193_v11 = vadd.f32 %v2189_v45, %v2185_v9 }
 0x9f5   :  { %v2215_v12 = vpop.permute.xlu1 %2214  ;;  %v2217_v19 = vpop.permute.xlu0 %2216 }
 0x9f6   :  { %v2226_v17 = vmul.f32 %v2215_v12, %v3675_v55  ;;  %2202 = vrot.lane.b32.xlu1 %v2192_v4, %s2854_s30  ;;  %v2227_v36 = vmul.f32 %v2217_v19, %v3681_v53  ;;  %2204 = vrot.lane.b32.xlu0 %v2193_v11, %s2854_s30  ;;  %v2232_v34 = vmul.f32 %v2192_v4, %v3729_v7 }
 0x9f7   :  { %v2233_v22 = vmul.f32 %v2193_v11, %v3734_v10 }
 0x9f8   :  { %v2234_v62 = vadd.f32 %v2230_v18, %v2226_v17  ;;  %v2235_v33 = vadd.f32 %v2231_v20, %v2227_v36 }
 0x9f9   :  { %v2219_v35 = vpop.permute.xlu1 %2218  ;;  %v2221_v42 = vpop.permute.xlu0 %2220 }
 0x9fa   :  { %v2228_v21 = vmul.f32 %v2219_v35, %v3675_v55  ;;  %2242 = vrot.lane.b32.xlu1 %v2234_v62, %s2855_s4  ;;  %v2229_v23 = vmul.f32 %v2221_v42, %v3681_v53  ;;  %2244 = vrot.lane.b32.xlu0 %v2235_v33, %s2855_s4  ;;  %v2274_v26 = vmul.f32 %v2234_v62, %v3729_v7 }
 0x9fb   :  { %v2275_v13 = vmul.f32 %v2235_v33, %v3734_v10 }
 0x9fc   :  { %v2236_v25 = vadd.f32 %v2232_v34, %v2228_v21  ;;  %v2237_v5 = vadd.f32 %v2233_v22, %v2229_v23 }
 0x9fd   :  { %v2259_v31 = vpop.permute.xlu1 %2258  ;;  %v2261_v16 = vpop.permute.xlu0 %2260 }
 0x9fe   :  { %v2270_v30 = vmul.f32 %v2259_v31, %v3675_v55  ;;  %2246 = vrot.lane.b32.xlu1 %v2236_v25, %s2855_s4  ;;  %v2271_v15 = vmul.f32 %v2261_v16, %v3681_v53  ;;  %2248 = vrot.lane.b32.xlu0 %v2237_v5, %s2855_s4  ;;  %v2276_v29 = vmul.f32 %v2236_v25, %v3729_v7 }
 0x9ff   :  { %v2277_v47 = vmul.f32 %v2237_v5, %v3734_v10 }
 0xa00   :  { %v2278_v27 = vadd.f32 %v2274_v26, %v2270_v30  ;;  %v2279_v14 = vadd.f32 %v2275_v13, %v2271_v15  ;;  %v2693_v13 = vpop.eup %2692 }
 0xa01   :  { %v2263_v28 = vpop.permute.xlu1 %2262  ;;  %v2265_v37 = vpop.permute.xlu0 %2264 }
 0xa02   :  { %v2272_v56 = vmul.f32 %v2263_v28, %v3675_v55  ;;  %2286 = vrot.lane.b32.xlu1 %v2278_v27, %s2796_s23  ;;  %v2273_v38 = vmul.f32 %v2265_v37, %v3681_v53  ;;  %2288 = vrot.lane.b32.xlu0 %v2279_v14, %s2796_s23  ;;  %v2318_v32 = vmul.f32 %v2278_v27, %v3729_v7 }
 0xa03   :  { %v2319_v43 = vmul.f32 %v2279_v14, %v3734_v10  ;;  %v2695_v14 = vpop.eup %2694 }
 0xa04   :  { %v2280_v48 = vadd.f32 %v2276_v29, %v2272_v56  ;;  %v2281_v50 = vadd.f32 %v2277_v47, %v2273_v38  ;;  %v2439_v56 = vmul.f32 0.6931472, %v2693_v13  ;;  %v2441_v37 = vmul.f32 0.6931472, %v2695_v14 }
 0xa05   :  { %v2303_v51 = vpop.permute.xlu1 %2302  ;;  %v2305_v24 = vpop.permute.xlu0 %2304  ;;  %v2860_v47 = vmov 3  }
 0xa06   :  { %v2314_v54 = vmul.f32 %v2303_v51, %v3675_v55  ;;  %2290 = vrot.lane.b32.xlu1 %v2280_v48, %s2796_s23  ;;  %v2315_v57 = vmul.f32 %v2305_v24, %v3681_v53  ;;  %2292 = vrot.lane.b32.xlu0 %v2281_v50, %s2796_s23  ;;  %v2320_v0 = vmul.f32 %v2280_v48, %v3729_v7 }
 0xa07   :  { %v2321_v3 = vmul.f32 %v2281_v50, %v3734_v10 }
 0xa08   :  { %v2322_v59 = vadd.f32 %v2318_v32, %v2314_v54  ;;  %v2323_v60 = vadd.f32 %v2319_v43, %v2315_v57 }
 0xa09   :  { %v2307_v52 = vpop.permute.xlu1 %2306  ;;  %v2309_v44 = vpop.permute.xlu0 %2308 }
 0xa0a   :  { %v2316_v1 = vmul.f32 %v2307_v52, %v3675_v55  ;;  %2330 = vrot.lane.b32.xlu1 %v2322_v59, %s2856_s5  ;;  %v2317_v40 = vmul.f32 %v2309_v44, %v3681_v53  ;;  %2332 = vrot.lane.b32.xlu0 %v2323_v60, %s2856_s5  ;;  %v2362_v6 = vmul.f32 %v2322_v59, %v3729_v7 }
 0xa0b   :  { %v2363_v45 = vmul.f32 %v2323_v60, %v3734_v10 }
 0xa0c   :  { %v2324_v46 = vadd.f32 %v2320_v0, %v2316_v1  ;;  %v2325_v39 = vadd.f32 %v2321_v3, %v2317_v40 }
 0xa0d   :  { %v2347_v63 = vpop.permute.xlu1 %2346  ;;  %v2349_v8 = vpop.permute.xlu0 %2348 }
 0xa0e   :  { %v2358_v41 = vmul.f32 %v2347_v63, %v3675_v55  ;;  %2334 = vrot.lane.b32.xlu1 %v2324_v46, %s2856_s5  ;;  %v2359_v9 = vmul.f32 %v2349_v8, %v3681_v53  ;;  %2336 = vrot.lane.b32.xlu0 %v2325_v39, %s2856_s5  ;;  %v2364_v17 = vmul.f32 %v2324_v46, %v3729_v7 }
 0xa0f   :  { %v2365_v20 = vmul.f32 %v2325_v39, %v3734_v10 }
 0xa10   :  { %v2366_v4 = vadd.f32 %v2362_v6, %v2358_v41  ;;  %v2367_v11 = vadd.f32 %v2363_v45, %v2359_v9 }
 0xa11   :  { %v2351_v12 = vpop.permute.xlu1 %2350  ;;  %v2353_v19 = vpop.permute.xlu0 %2352 }
 0xa12   :  { %v2360_v18 = vmul.f32 %v2351_v12, %v3675_v55  ;;  %2374 = vrot.lane.b32.xlu1 %v2366_v4, %s2857_s6  ;;  %v2361_v36 = vmul.f32 %v2353_v19, %v3681_v53  ;;  %2376 = vrot.lane.b32.xlu0 %v2367_v11, %s2857_s6  ;;  %v2406_v21 = vmul.f32 %v2366_v4, %v3729_v7 }
 0xa13   :  { %v2407_v22 = vmul.f32 %v2367_v11, %v3734_v10 }
 0xa14   :  { %v2368_v62 = vadd.f32 %v2364_v17, %v2360_v18  ;;  %v2369_v33 = vadd.f32 %v2365_v20, %v2361_v36 }
 0xa15   :  { %v2391_v35 = vpop.permute.xlu1 %2390  ;;  %v2393_v42 = vpop.permute.xlu0 %2392 }
 0xa16   :  { %v2402_v34 = vmul.f32 %v2391_v35, %v3675_v55  ;;  %2378 = vrot.lane.b32.xlu1 %v2368_v62, %s2857_s6  ;;  %v2403_v23 = vmul.f32 %v2393_v42, %v3681_v53  ;;  %2380 = vrot.lane.b32.xlu0 %v2369_v33, %s2857_s6  ;;  %v2408_v30 = vmul.f32 %v2368_v62, %v3729_v7  ;;  %v4038_v7 = vpop.eup %2696 }
 0xa17   :  { %v2409_v15 = vmul.f32 %v2369_v33, %v3734_v10  ;;  %v2859_v10 = vmov 2   ;;  %v4043_v38 = vpop.eup %2698 }
 0xa18   :  { %v2410_v25 = vadd.f32 %v2406_v21, %v2402_v34  ;;  %v2411_v5 = vadd.f32 %v2407_v22, %v2403_v23 }
 0xa19   :  { %v2395_v31 = vpop.permute.xlu1 %2394  ;;  %v2397_v16 = vpop.permute.xlu0 %2396 }
 0xa1a   :  { %v2404_v26 = vmul.f32 %v2395_v31, %v3675_v55  ;;  %2418 = vrot.lane.b32.xlu1 %v2410_v25, %s2858_s7  ;;  %v2405_v27 = vmul.f32 %v2397_v16, %v3681_v53  ;;  %2420 = vrot.lane.b32.xlu0 %v2411_v5, %s2858_s7 }
 0xa1c   :  { %v2412_v28 = vadd.f32 %v2408_v30, %v2404_v26  ;;  %v2413_v29 = vadd.f32 %v2409_v15, %v2405_v27 }
 0xa1e   :  { %2422 = vrot.lane.b32.xlu1 %v2412_v28, %s2858_s7  ;;  %2424 = vrot.lane.b32.xlu0 %v2413_v29, %s2858_s7 }
 0xa22   :  { %2444 = vrot.lane.b32.xlu1 %v2439_v56, %s2851_s25  ;;  %2446 = vrot.lane.b32.xlu0 %v2441_v37, %s2851_s25 }
 0xa26   :  { %2470 = vperm.xlu1 %2687, %v3675_v55   ;;  %2475 = vperm.xlu0 %2688, %v3681_v53  }
 0xa2a   :  { %2689 = vset.pattern.permute.xlu1 %v2859_v10  ;;  %2690 = vset.pattern.permute.xlu0 %v2860_v47 }
 0xa2b   :  { %2499 = vperm.xlu1 %2689, %v3675_v55   ;;  %2520 = vperm.xlu0 %2690, %v4038_v7  }
 0xa2f   :  { %2503 = vperm.xlu1 %2689, %v3681_v53  }
 0xa33   :  { %2691 = vset.pattern.permute.xlu1 %v2860_v47 }
 0xa34   :  { %2525 = vperm.xlu1 %2691, %v4043_v38  }
 0xa44   :  { %v2023_v48 = vpop.permute.xlu1 %2022  ;;  %v2025_v50 = vpop.permute.xlu0 %2024 }
 0xa45   :  { %2034 = vst.msk [vmem:[#allocation6] sm:$0xff] %vm1395_vm5, %v2023_v48  ;;  %2035 = vst.msk [vmem:[#allocation6 + $0x8] sm:$0xff] %vm1395_vm5, %v2025_v50 }
 0xa48   :  { %v2027_v51 = vpop.permute.xlu1 %2026  ;;  %v2029_v55 = vpop.permute.xlu0 %2028 }
 0xa49   :  { %2036 = vst.msk [vmem:[#allocation6 + $0x10] sm:$0xff] %vm1395_vm5, %v2027_v51  ;;  %2037 = vst.msk [vmem:[#allocation6 + $0x18] sm:$0xff] %vm1395_vm5, %v2029_v55 }
 0xa4c   :  { %v2067_v54 = vpop.permute.xlu1 %2066  ;;  %v2069_v53 = vpop.permute.xlu0 %2068 }
 0xa4d   :  { %2078 = vst.msk [vmem:[#allocation6] sm:$0xff] %vm1459_vm6, %v2067_v54  ;;  %2079 = vst.msk [vmem:[#allocation6 + $0x8] sm:$0xff] %vm1459_vm6, %v2069_v53 }
 0xa50   :  { %v2071_v32 = vpop.permute.xlu1 %2070  ;;  %v2073_v24 = vpop.permute.xlu0 %2072 }
 0xa51   :  { %2080 = vst.msk [vmem:[#allocation6 + $0x10] sm:$0xff] %vm1459_vm6, %v2071_v32  ;;  %2081 = vst.msk [vmem:[#allocation6 + $0x18] sm:$0xff] %vm1459_vm6, %v2073_v24 }
 0xa54   :  { %v2111_v43 = vpop.permute.xlu1 %2110  ;;  %v2113_v57 = vpop.permute.xlu0 %2112 }
 0xa55   :  { %2122 = vst.msk [vmem:[#allocation6] sm:$0xff] %vm1480_vm7, %v2111_v43  ;;  %2123 = vst.msk [vmem:[#allocation6 + $0x8] sm:$0xff] %vm1480_vm7, %v2113_v57 }
 0xa58   :  { %v2115_v59 = vpop.permute.xlu1 %2114  ;;  %v2117_v60 = vpop.permute.xlu0 %2116 }
 0xa59   :  { %2124 = vst.msk [vmem:[#allocation6 + $0x10] sm:$0xff] %vm1480_vm7, %v2115_v59  ;;  %2125 = vst.msk [vmem:[#allocation6 + $0x18] sm:$0xff] %vm1480_vm7, %v2117_v60 }
 0xa5c   :  { %v2155_v52 = vpop.permute.xlu1 %2154  ;;  %v2157_v0 = vpop.permute.xlu0 %2156 }
 0xa5d   :  { %2166 = vst.msk [vmem:[#allocation6] sm:$0xff] %vm1517_vm8, %v2155_v52  ;;  %2167 = vst.msk [vmem:[#allocation6 + $0x8] sm:$0xff] %vm1517_vm8, %v2157_v0 }
 0xa60   :  { %v2159_v1 = vpop.permute.xlu1 %2158  ;;  %v2161_v44 = vpop.permute.xlu0 %2160 }
 0xa61   :  { %2168 = vst.msk [vmem:[#allocation6 + $0x10] sm:$0xff] %vm1517_vm8, %v2159_v1  ;;  %2169 = vst.msk [vmem:[#allocation6 + $0x18] sm:$0xff] %vm1517_vm8, %v2161_v44 }
 0xa64   :  { %v2199_v3 = vpop.permute.xlu1 %2198  ;;  %v2201_v40 = vpop.permute.xlu0 %2200 }
 0xa65   :  { %2210 = vst.msk [vmem:[#allocation6] sm:$0xff] %vm1554_vm9, %v2199_v3  ;;  %2211 = vst.msk [vmem:[#allocation6 + $0x8] sm:$0xff] %vm1554_vm9, %v2201_v40 }
 0xa68   :  { %v2203_v46 = vpop.permute.xlu1 %2202  ;;  %v2205_v39 = vpop.permute.xlu0 %2204 }
 0xa69   :  { %2212 = vst.msk [vmem:[#allocation6 + $0x10] sm:$0xff] %vm1554_vm9, %v2203_v46  ;;  %2213 = vst.msk [vmem:[#allocation6 + $0x18] sm:$0xff] %vm1554_vm9, %v2205_v39 }
 0xa6c   :  { %v2243_v63 = vpop.permute.xlu1 %2242  ;;  %v2245_v41 = vpop.permute.xlu0 %2244 }
 0xa6d   :  { %2254 = vst.msk [vmem:[#allocation6] sm:$0xff] %vm1591_vm11, %v2243_v63  ;;  %2255 = vst.msk [vmem:[#allocation6 + $0x8] sm:$0xff] %vm1591_vm11, %v2245_v41 }
 0xa70   :  { %v2247_v6 = vpop.permute.xlu1 %2246  ;;  %v2249_v8 = vpop.permute.xlu0 %2248 }
 0xa71   :  { %2256 = vst.msk [vmem:[#allocation6 + $0x10] sm:$0xff] %vm1591_vm11, %v2247_v6  ;;  %2257 = vst.msk [vmem:[#allocation6 + $0x18] sm:$0xff] %vm1591_vm11, %v2249_v8 }
 0xa74   :  { %v2287_v45 = vpop.permute.xlu1 %2286  ;;  %v2289_v9 = vpop.permute.xlu0 %2288 }
 0xa75   :  { %2298 = vst.msk [vmem:[#allocation6] sm:$0xff] %vm1628_vm13, %v2287_v45  ;;  %2299 = vst.msk [vmem:[#allocation6 + $0x8] sm:$0xff] %vm1628_vm13, %v2289_v9 }
 0xa78   :  { %v2291_v4 = vpop.permute.xlu1 %2290  ;;  %v2293_v11 = vpop.permute.xlu0 %2292 }
 0xa79   :  { %2300 = vst.msk [vmem:[#allocation6 + $0x10] sm:$0xff] %vm1628_vm13, %v2291_v4  ;;  %2301 = vst.msk [vmem:[#allocation6 + $0x18] sm:$0xff] %vm1628_vm13, %v2293_v11 }
 0xa7c   :  { %v2331_v12 = vpop.permute.xlu1 %2330  ;;  %v2333_v17 = vpop.permute.xlu0 %2332 }
 0xa7d   :  { %2342 = vst.msk [vmem:[#allocation6] sm:$0xff] %vm1665_vm15, %v2331_v12  ;;  %2343 = vst.msk [vmem:[#allocation6 + $0x8] sm:$0xff] %vm1665_vm15, %v2333_v17 }
 0xa80   :  { %v2335_v18 = vpop.permute.xlu1 %2334  ;;  %v2337_v19 = vpop.permute.xlu0 %2336 }
 0xa81   :  { %2344 = vst.msk [vmem:[#allocation6 + $0x10] sm:$0xff] %vm1665_vm15, %v2335_v18  ;;  %2345 = vst.msk [vmem:[#allocation6 + $0x18] sm:$0xff] %vm1665_vm15, %v2337_v19 }
 0xa84   :  { %v2375_v20 = vpop.permute.xlu1 %2374  ;;  %v2377_v36 = vpop.permute.xlu0 %2376 }
 0xa85   :  { %2386 = vst.msk [vmem:[#allocation6] sm:$0xff] %vm1706_vm10, %v2375_v20  ;;  %2387 = vst.msk [vmem:[#allocation6 + $0x8] sm:$0xff] %vm1706_vm10, %v2377_v36 }
 0xa88   :  { %v2379_v62 = vpop.permute.xlu1 %2378  ;;  %v2381_v33 = vpop.permute.xlu0 %2380 }
 0xa89   :  { %2388 = vst.msk [vmem:[#allocation6 + $0x10] sm:$0xff] %vm1706_vm10, %v2379_v62  ;;  %2389 = vst.msk [vmem:[#allocation6 + $0x18] sm:$0xff] %vm1706_vm10, %v2381_v33 }
 0xa8c   :  { %v2419_v35 = vpop.permute.xlu1 %2418  ;;  %v2421_v34 = vpop.permute.xlu0 %2420 }
 0xa8d   :  { %2430 = vst.msk [vmem:[#allocation6] sm:$0xff] %vm1747_vm0, %v2419_v35  ;;  %2431 = vst.msk [vmem:[#allocation6 + $0x8] sm:$0xff] %vm1747_vm0, %v2421_v34 }
 0xa90   :  { %v2423_v21 = vpop.permute.xlu1 %2422  ;;  %v2425_v42 = vpop.permute.xlu0 %2424 }
 0xa91   :  { %2432 = vst.msk [vmem:[#allocation6 + $0x10] sm:$0xff] %vm1747_vm0, %v2423_v21  ;;  %2433 = vst.msk [vmem:[#allocation6 + $0x18] sm:$0xff] %vm1747_vm0, %v2425_v42 }
 0xa92   :  { %vm4121_vm0 = vmmov %vm4120_vm14 }
 0xa93   :  { %vm4122_vm1 = vmmov %vm4121_vm0 }
 0xa94   :  { %v2445_v22 = vpop.permute.xlu1 %2444  ;;  %v2447_v25 = vpop.permute.xlu0 %2446  ;;  %v2434_v13 = vld [vmem:[#allocation6] sm:$0xff]  ;;  %v2435_v15 = vld [vmem:[#allocation6 + $0x8] sm:$0xff]  ;;  %vm4123_vm2 = vmmov %vm4121_vm0 }
 0xa95   :  { %v2450_v23 = vmul.f32 %v4038_v7, %v2445_v22  ;;  %v2451_v5 = vmul.f32 %v4043_v38, %v2447_v25  ;;  %v2456_v14 = vadd.f32 1e-12, %v2434_v13  ;;  %v2457_v29 = vadd.f32 1e-12, %v2435_v15 }
 0xa97   :  { %v2452_v31 = vmul.f32 1.442695, %v2450_v23  ;;  %v2454_v30 = vmul.f32 1.442695, %v2451_v5 }
 0xa98   :  { %v2436_v27 = vld [vmem:[#allocation6 + $0x10] sm:$0xff]  ;;  %v2437_v28 = vld [vmem:[#allocation6 + $0x18] sm:$0xff] }
 0xa99   :  { %2700 = vpow2.f32 %v2452_v31  ;;  %v2458_v56 = vadd.f32 1e-12, %v2436_v27  ;;  %v2459_v37 = vadd.f32 1e-12, %v2437_v28 }
 0xa9a   :  { %2702 = vpow2.f32 %v2454_v30 }
 0xa9b   :  { %2704 = vlog2.f32 %v2456_v14 }
 0xa9c   :  { %2706 = vlog2.f32 %v2457_v29 }
 0xa9d   :  { %2708 = vlog2.f32 %v2458_v56 }
 0xa9e   :  { %2710 = vlog2.f32 %v2459_v37 }
 0xaa3   :  { %v2701_v26 = vpop.eup %2700 }
 0xaa4   :  { %v2703_v16 = vpop.eup %2702  ;;  %2542 = vperm.xlu1 %2691, %v2701_v26  }
 0xaa5   :  { %2547 = vperm.xlu0 %2690, %v2703_v16   ;;  %v2705_v7 = vpop.eup %2704  ;;  %v2471_v48 = vpop.permute.xlu1 %2470 }
 0xaa6   :  { %v2707_v10 = vpop.eup %2706  ;;  %v2461_v51 = vmul.f32 0.6931472, %v2705_v7  ;;  %v2476_v55 = vpop.permute.xlu0 %2475 }
 0xaa7   :  { %v2709_v47 = vpop.eup %2708  ;;  %v2463_v54 = vmul.f32 0.6931472, %v2707_v10 }
 0xaa8   :  { %v2711_v38 = vpop.eup %2710  ;;  %v2465_v50 = vmul.f32 0.6931472, %v2709_v47  ;;  %v2478_v32 = vmul.f32 %v2471_v48, %v2461_v51 }
 0xaa9   :  { %v2467_v53 = vmul.f32 0.6931472, %v2711_v38  ;;  %v2479_v24 = vmul.f32 %v2476_v55, %v2463_v54 }
 0xaaa   :  { %v2480_v43 = vmul.f32 %v2471_v48, %v2465_v50  ;;  %v2482_v59 = vmul.f32 1.442695, %v2478_v32  ;;  %v2500_v46 = vpop.permute.xlu1 %2499 }
 0xaab   :  { %v2481_v57 = vmul.f32 %v2476_v55, %v2467_v53  ;;  %v2484_v60 = vmul.f32 1.442695, %v2479_v24 }
 0xaac   :  { %v2486_v52 = vmul.f32 1.442695, %v2480_v43  ;;  %2712 = vpow2.f32 %v2482_v59 }
 0xaad   :  { %v2488_v0 = vmul.f32 1.442695, %v2481_v57  ;;  %2714 = vpow2.f32 %v2484_v60 }
 0xaae   :  { %2716 = vpow2.f32 %v2486_v52  ;;  %v2504_v4 = vpop.permute.xlu1 %2503 }
 0xaaf   :  { %2718 = vpow2.f32 %v2488_v0 }
 0xab3   :  { %v2526_v34 = vpop.permute.xlu1 %2525 }
 0xab6   :  { %v2713_v1 = vpop.eup %2712 }
 0xab7   :  { %v2715_v44 = vpop.eup %2714  ;;  %2720 = vrcp.f32 %v2713_v1 }
 0xab8   :  { %v2717_v3 = vpop.eup %2716  ;;  %2722 = vrcp.f32 %v2715_v44 }
 0xab9   :  { %v2719_v40 = vpop.eup %2718  ;;  %2724 = vrcp.f32 %v2717_v3 }
 0xaba   :  { %2726 = vrcp.f32 %v2719_v40 }
 0xac1   :  { %v2721_v39 = vpop.eup %2720 }
 0xac2   :  { %v2723_v63 = vpop.eup %2722  ;;  %v2491_v8 = vmul.f32 %v2721_v39, %v3694_v61 }
 0xac3   :  { %v2725_v41 = vpop.eup %2724  ;;  %v2493_v45 = vmul.f32 %v2723_v63, %v3706_v2  ;;  %v2521_v2 = vpop.permute.xlu0 %2520 }
 0xac4   :  { %v2727_v6 = vpop.eup %2726  ;;  %v2495_v9 = vmul.f32 %v2725_v41, %v3696_v58  ;;  %v2506_v12 = vadd.f32 %v2500_v46, %v2491_v8 }
 0xac5   :  { %v2497_v11 = vmul.f32 %v2727_v6, %v3712_v49  ;;  %v2507_v17 = vadd.f32 %v2504_v4, %v2493_v45 }
 0xac6   :  { %v2508_v18 = vadd.f32 %v2500_v46, %v2495_v9  ;;  %2728 = vlog2.f32 %v2506_v12 }
 0xac7   :  { %v2509_v19 = vadd.f32 %v2504_v4, %v2497_v11  ;;  %2730 = vlog2.f32 %v2507_v17 }
 0xac8   :  { %2732 = vlog2.f32 %v2508_v18 }
 0xac9   :  { %2734 = vlog2.f32 %v2509_v19 }
 0xad0   :  { %v2729_v20 = vpop.eup %2728 }
 0xad1   :  { %v2731_v36 = vpop.eup %2730  ;;  %v2511_v61 = vmul.f32 0.6931472, %v2729_v20 }
 0xad2   :  { %v2733_v62 = vpop.eup %2732  ;;  %v2513_v35 = vmul.f32 0.6931472, %v2731_v36 }
 0xad3   :  { %v2735_v33 = vpop.eup %2734  ;;  %v2515_v58 = vmul.f32 0.6931472, %v2733_v62  ;;  %v2528_v42 = vmul.f32 %v2521_v2, %v2511_v61 }
 0xad4   :  { %v2517_v21 = vmul.f32 0.6931472, %v2735_v33  ;;  %v2529_v49 = vmul.f32 %v2526_v34, %v2513_v35 }
 0xad5   :  { %v2530_v22 = vmul.f32 %v2521_v2, %v2515_v58  ;;  %v2532_v25 = vmul.f32 1.442695, %v2528_v42 }
 0xad6   :  { %v2531_v23 = vmul.f32 %v2526_v34, %v2517_v21  ;;  %v2534_v5 = vmul.f32 1.442695, %v2529_v49 }
 0xad7   :  { %v2536_v31 = vmul.f32 1.442695, %v2530_v22  ;;  %2736 = vpow2.f32 %v2532_v25 }
 0xad8   :  { %v2538_v30 = vmul.f32 1.442695, %v2531_v23  ;;  %2738 = vpow2.f32 %v2534_v5 }
 0xad9   :  { %2740 = vpow2.f32 %v2536_v31 }
 0xada   :  { %2742 = vpow2.f32 %v2538_v30 }
 0xae1   :  { %v2737_v26 = vpop.eup %2736 }
 0xae2   :  { %v2739_v16 = vpop.eup %2738 }
 0xae3   :  { %v2741_v13 = vpop.eup %2740 }
 0xae4   :  { %v2743_v27 = vpop.eup %2742 }
 0xb23   :  { %v2543_v15 = vpop.permute.xlu1 %2542 }
 0xb24   :  { %v2550_v14 = vsub.f32 %v2737_v26, %v2543_v15  ;;  %v2552_v28 = vsub.f32 %v2741_v13, %v2543_v15  ;;  %v2548_v29 = vpop.permute.xlu0 %2547 }
 0xb25   :  { %v2551_v56 = vsub.f32 %v2739_v16, %v2548_v29  ;;  %v2553_v37 = vsub.f32 %v2743_v27, %v2548_v29 }
 0xb26   :  { %2554 = vst.msk [vmem:[#allocation10] sm:$0xff] %vm4120_vm14, %v2550_v14 }
 0xb27   :  { %2557 = vst.msk [vmem:[#allocation10 + $0x10] sm:$0xff] %vm4121_vm0, %v2552_v28 }
 0xb28   :  { %2555 = vst.msk [vmem:[#allocation10 + $0x8] sm:$0xff] %vm4122_vm1, %v2551_v56 }
 0xb29   :  { %2558 = vst.msk [vmem:[#allocation10 + $0x18] sm:$0xff] %vm4123_vm2, %v2553_v37 }
 0xb2a   :  { %2779 = shalt.err (!%p2776_p12)
}
 0xb2b   :  { %s2780_s1 = scalar_lea.hbm %s4114_s3, 512 }
 0xb2c   :  { %p2781_p13 = scmp.ne.s32.totalorder %s4114_s3, %s2780_s1  ;;  %p2784_p0 = scmp.lt.u32.totalorder %s2780_s1, %s4114_s3 }
 0xb2e   :  { %p2786_p1 = pnand %p2784_p0, %p2781_p13 }
 0xb30   :  { %2789 = shalt.err (!%p2786_p1)
}
 0xb31   :  { %2570 = dma.vmem_to_hbm [thread:$0]  %s2565_s9, 512, %s4114_s3, [#allocation9], %s2795_s22, %s2795_s22, %s2796_s23  }
 0xb32   :  { %2792 = dma.done.wait [#allocation9], 512  }
 0xb33   :  { %2793 = vsyncadd [#allocation9], 4294966784 }
 0xb34   :  { %2574 = vsyncpa [#allocation8], 1 }
 0xb35   :  { %2575 = vsyncpa [#allocation9], 1 }

</bundles_post_ra>
